<compile_context>
chip_gen: v5e
topology: v5e:2x2
jax: 0.10.0
libtpu: 0.0.40
codegen_flags: <defaults>
</compile_context>

<pallas_src>
import functools
import math

import numpy as np
import jax
import jax.numpy as jnp
from jax.experimental import pallas as pl
from jax.experimental.pallas import tpu as pltpu

_SQRT_2 = math.sqrt(2.0)


# ----------------------------------------------------------------------------
# In-kernel math helpers
# ----------------------------------------------------------------------------
def _erf_f32(x):
    # Abramowitz & Stegun 7.1.26 rational approximation (|err| <= 1.5e-7).
    # Keeps transcendental count at one exp per element (single EUP on v5e).
    z = jnp.abs(x)
    t = 1.0 / (1.0 + 0.3275911 * z)
    poly = t * (0.254829592 + t * (-0.284496736 + t * (1.421413741
             + t * (-1.453152027 + t * 1.061405429))))
    e = 1.0 - poly * jnp.exp(-z * z)
    return jnp.where(x < 0, -e, e)


def _gelu(x):
    # nn.GELU() default (approximate='none'): 0.5 * x * (1 + erf(x / sqrt(2)))
    return 0.5 * x * (1.0 + _erf_f32(x / _SQRT_2))


# ----------------------------------------------------------------------------
# Fused VAE kernel (consumes constant refs in the exact order prepare_vae()
# emits them).
# ----------------------------------------------------------------------------
def _make_vae_kernel(n_down):
    def kernel(*refs):
        o_ref = refs[-1]
        it = iter(refs[:-1])
        x_ref = next(it)      # (1, H, W*Cin)
        eps_ref = next(it)    # (1, 1, 2)

        def conv(a, act):
            # consumes: R (3,H,H), M (3, W*Cin, W*Cout), bias_row (1, W*Cout)
            r_ref = next(it)
            m_ref = next(it)
            b_ref = next(it)
            acc = None
            for d in range(3):
                t = jnp.dot(a, m_ref[d], preferred_element_type=jnp.float32)
                t = jnp.dot(r_ref[d], t, preferred_element_type=jnp.float32)
                acc = t if acc is None else acc + t
            y = acc + b_ref[...]
            return _gelu(y) if act else y

        def maxpool(y):
            # consumes: rowsel (2, Ho, H), colsel (2, W*C, Wo*C)
            rs_ref = next(it)
            cs_ref = next(it)
            rmax = jnp.maximum(
                jnp.dot(rs_ref[0], y, preferred_element_type=jnp.float32),
                jnp.dot(rs_ref[1], y, preferred_element_type=jnp.float32))
            return jnp.maximum(
                jnp.dot(rmax, cs_ref[0], preferred_element_type=jnp.float32),
                jnp.dot(rmax, cs_ref[1], preferred_element_type=jnp.float32))

        def upsample(y):
            # consumes: rowdup (2H, H), coldup (W*C, 2*W*C)
            rd_ref = next(it)
            cd_ref = next(it)
            t = jnp.dot(rd_ref[...], y, preferred_element_type=jnp.float32)
            return jnp.dot(t, cd_ref[...], preferred_element_type=jnp.float32)

        # ---- Encoder ----
        a = x_ref[0]                      # (H, W*Cin)
        a = conv(a, act=False)            # initial conv (no activation)
        for _ in range(n_down):
            a = conv(a, act=True)
            a = maxpool(a)

        # ---- Bottleneck (mu / logvar fused, reparameterize, decoder_fc) ----
        wml_ref = next(it)                # (4, H_b, W_b*C)  [mu0, mu1, lv0, lv1]
        bml_ref = next(it)                # (1, 4)
        wdec_ref = next(it)               # (2, H_b, W_b*C)
        bdec_ref = next(it)               # (H_b, W_b*C)

        def _sum11(m):                    # full reduction kept 2-D as (1, 1)
            return jnp.sum(jnp.sum(m, axis=1, keepdims=True),
                           axis=0, keepdims=True)

        bml = bml_ref[...]
        mu0 = _sum11(a * wml_ref[0]) + bml[:, 0:1]
        mu1 = _sum11(a * wml_ref[1]) + bml[:, 1:2]
        lv0 = _sum11(a * wml_ref[2]) + bml[:, 2:3]
        lv1 = _sum11(a * wml_ref[3]) + bml[:, 3:4]

        e = eps_ref[0]                    # (1, 2)
        z0 = mu0 + e[:, 0:1] * jnp.exp(0.5 * lv0)
        z1 = mu1 + e[:, 1:2] * jnp.exp(0.5 * lv1)

        z = z0 * wdec_ref[0] + z1 * wdec_ref[1] + bdec_ref[...]

        # ---- Decoder ----
        for _ in range(n_down):
            z = conv(z, act=True)
            z = upsample(z)
        z = conv(z, act=False)            # last conv (no activation)

        o_ref[0] = z

    return kernel


# ----------------------------------------------------------------------------
# One-time constant preparation (weight re-layout hoisted out of the forward)
# ----------------------------------------------------------------------------
def _conv_consts(w, b, width):
    # w: (Cout, Cin, 3, 3), b: (Cout,) -> banded matrices M_dy (3, W*Cin, W*Cout)
    cout, cin = w.shape[0], w.shape[1]
    m = np.zeros((3, width * cin, width * cout), np.float32)
    for dyi, dy in enumerate((-1, 0, 1)):
        for wo in range(width):
            for dx in (-1, 0, 1):
                wi = wo + dx
                if 0 <= wi < width:
                    m[dyi, wi * cin:(wi + 1) * cin, wo * cout:(wo + 1) * cout] = \
                        w[:, :, dy + 1, dx + 1].T
    brow = np.tile(b.astype(np.float32), width).reshape(1, width * cout)
    return m, brow


def _shift_mats(h):
    # R_dy[h, h'] = 1 iff h' == h + dy (zero rows at the padded boundary)
    r = np.zeros((3, h, h), np.float32)
    for dyi, dy in enumerate((-1, 0, 1)):
        for i in range(h):
            j = i + dy
            if 0 <= j < h:
                r[dyi, i, j] = 1.0
    return r


def _pool_consts(h, w, c):
    ho, wo = h // 2, w // 2
    rowsel = np.zeros((2, ho, h), np.float32)
    for u in range(ho):
        rowsel[0, u, 2 * u] = 1.0
        rowsel[1, u, 2 * u + 1] = 1.0
    colsel = np.zeros((2, w * c, wo * c), np.float32)
    for v in range(wo):
        for ci in range(c):
            colsel[0, (2 * v) * c + ci, v * c + ci] = 1.0
            colsel[1, (2 * v + 1) * c + ci, v * c + ci] = 1.0
    return rowsel, colsel


def _upsample_consts(h, w, c):
    rowdup = np.zeros((2 * h, h), np.float32)
    for i in range(2 * h):
        rowdup[i, i // 2] = 1.0
    coldup = np.zeros((w * c, 2 * w * c), np.float32)
    for w2 in range(2 * w):
        for ci in range(c):
            coldup[(w2 // 2) * c + ci, w2 * c + ci] = 1.0
    return rowdup, coldup


def _bottleneck_consts(wmu, bmu, wlv, blv, wdec, bdec, h, w, c):
    # Linear weights are torch-layout: wmu/wlv (2, F), wdec (F, 2).
    # Permute rows from NCHW-flatten order (f = c*H*W + h*W + w) into the
    # kernel's (H, W*C) activation layout.
    wml = np.zeros((4, h, w * c), np.float32)
    wdc = np.zeros((2, h, w * c), np.float32)
    bdc = np.zeros((h, w * c), np.float32)
    for hh in range(h):
        for ww in range(w):
            for ci in range(c):
                f = ci * h * w + hh * w + ww
                col = ww * c + ci
                wml[0, hh, col] = wmu[0, f]
                wml[1, hh, col] = wmu[1, f]
                wml[2, hh, col] = wlv[0, f]
                wml[3, hh, col] = wlv[1, f]
                wdc[0, hh, col] = wdec[f, 0]
                wdc[1, hh, col] = wdec[f, 1]
                bdc[hh, col] = bdec[f]
    bml = np.array([bmu[0], bmu[1], blv[0], blv[1]], np.float32).reshape(1, 4)
    return wml, bml, wdc, bdc


def prepare_vae(params, *, in_channels, input_size, latent_sizes):
    """Builds the flat list of kernel-layout constants (order == kernel order)."""
    n_down = len(latent_sizes) - 1
    btln = input_size // (2 ** n_down)
    # The PyTorch module's Linear sizing only works when the bottleneck is 2x2.
    assert latent_sizes[-1] * (btln * 2) == latent_sizes[-1] * btln * btln

    npa = lambda t: np.asarray(t, np.float32)
    consts = []

    def add_conv(cp, size):
        m, brow = _conv_consts(npa(cp["w"]), npa(cp["b"]), size)
        consts.append(_shift_mats(size))
        consts.append(m)
        consts.append(brow)

    size = input_size
    add_conv(params["enc_initial"], size)
    for i in range(n_down):
        add_conv(params["enc_downs"][i], size)
        cout = latent_sizes[i] * 2
        rowsel, colsel = _pool_consts(size, size, cout)
        consts.append(rowsel)
        consts.append(colsel)
        size //= 2

    wml, bml, wdc, bdc = _bottleneck_consts(
        npa(params["mu"]["w"]), npa(params["mu"]["b"]),
        npa(params["logvar"]["w"]), npa(params["logvar"]["b"]),
        npa(params["decoder_fc"]["w"]), npa(params["decoder_fc"]["b"]),
        btln, btln, latent_sizes[-1])
    consts.extend([wml, bml, wdc, bdc])

    rev = list(latent_sizes[::-1])
    for i in range(n_down):
        add_conv(params["dec_ups"][i], size)
        cout = rev[i] // 2
        rowdup, coldup = _upsample_consts(size, size, cout)
        consts.append(rowdup)
        consts.append(coldup)
        size *= 2
    add_conv(params["dec_last"], size)

    return [jnp.asarray(c) for c in consts], n_down


# ----------------------------------------------------------------------------
# Forward wrapper: one fused pallas_call
# ----------------------------------------------------------------------------
def vae_forward(consts, x_nchw, eps, *, n_down, in_channels, input_size):
    b = x_nchw.shape[0]
    h = w = input_size
    cin = in_channels
    # NCHW -> (B, H, W*C) kernel layout (only glue left in the forward).
    x = jnp.transpose(x_nchw.astype(jnp.float32), (0, 2, 3, 1)).reshape(b, h, w * cin)
    eps3 = eps.astype(jnp.float32).reshape(b, 1, 2)

    kernel = _make_vae_kernel(n_down)
    const_specs = [pl.BlockSpec(c.shape, (lambda bi, _nd=c.ndim: (0,) * _nd))
                   for c in consts]
    in_specs = ([pl.BlockSpec((1, h, w * cin), lambda bi: (bi, 0, 0)),
                 pl.BlockSpec((1, 1, 2), lambda bi: (bi, 0, 0))]
                + const_specs)

    out = pl.pallas_call(
        kernel,
        out_shape=jax.ShapeDtypeStruct((b, h, w * in_channels), jnp.float32),
        grid=(b,),
        in_specs=in_specs,
        out_specs=pl.BlockSpec((1, h, w * in_channels), lambda bi: (bi, 0, 0)),
        compiler_params=pltpu.CompilerParams(
            dimension_semantics=("parallel",),          # 2-TC split on v7x
            vmem_limit_bytes=32 * 1024 * 1024,          # explicit, v7x-safe
        ),
    )(x, eps3, *consts)

    # (B, H, W*Cout) -> NCHW
    out = out.reshape(b, h, w, in_channels)
    return jnp.transpose(out, (0, 3, 1, 2))


# ----------------------------------------------------------------------------
# Parameters (PyTorch-like uniform(-1/sqrt(fan_in), 1/sqrt(fan_in)), torch layouts)
# ----------------------------------------------------------------------------
def _uniform(key, shape, fan_in):
    bound = 1.0 / math.sqrt(fan_in)
    return jax.random.uniform(key, shape, jnp.float32, -bound, bound)


def _conv_p(key, cin, cout):
    kw, kb = jax.random.split(key)
    fan_in = cin * 9
    return {"w": _uniform(kw, (cout, cin, 3, 3), fan_in),
            "b": _uniform(kb, (cout,), fan_in)}


def _lin_p(key, fin, fout):
    kw, kb = jax.random.split(key)
    return {"w": _uniform(kw, (fout, fin), fin),   # torch layout (out, in)
            "b": _uniform(kb, (fout,), fin)}


def make_vae_params(key, in_channels, input_size, latent_sizes):
    n_down = len(latent_sizes) - 1
    btln = input_size // (2 ** n_down)
    feat = latent_sizes[-1] * (btln * 2)
    assert feat == latent_sizes[-1] * btln * btln
    keys = list(jax.random.split(key, 2 * n_down + 5))
    k = iter(keys)
    rev = latent_sizes[::-1]
    params = {
        "enc_initial": _conv_p(next(k), in_channels, latent_sizes[0]),
        "enc_downs": [_conv_p(next(k), latent_sizes[i], latent_sizes[i] * 2)
                      for i in range(n_down)],
        "mu": _lin_p(next(k), feat, 2),
        "logvar": _lin_p(next(k), feat, 2),
        "decoder_fc": _lin_p(next(k), 2, feat),
        "dec_ups": [_conv_p(next(k), rev[i], rev[i] // 2) for i in range(n_down)],
        "dec_last": _conv_p(next(k), rev[-1], in_channels),
    }
    return params, btln


# ----------------------------------------------------------------------------
# Plain-JAX reference (for a loose numerical sanity check)
# ----------------------------------------------------------------------------
def _vae_reference(params, x, eps):
    hp = jax.lax.Precision.HIGHEST

    def conv(t, w, b):
        y = jax.lax.conv_general_dilated(
            t, w, window_strides=(1, 1), padding=((1, 1), (1, 1)),
            dimension_numbers=("NCHW", "OIHW", "NCHW"), precision=hp)
        return y + b.reshape(1, -1, 1, 1)

    gelu = lambda t: jax.nn.gelu(t, approximate=False)

    h = conv(x, params["enc_initial"]["w"], params["enc_initial"]["b"])
    for cp in params["enc_downs"]:
        h = gelu(conv(h, cp["w"], cp["b"]))
        h = jax.lax.reduce_window(h, -jnp.inf, jax.lax.max,
                                  (1, 1, 2, 2), (1, 1, 2, 2), "VALID")
    bsz, c_last, btln = h.shape[0], h.shape[1], h.shape[2]
    hf = h.reshape(bsz, -1)
    mu = jnp.dot(hf, params["mu"]["w"].T, precision=hp) + params["mu"]["b"]
    lv = jnp.dot(hf, params["logvar"]["w"].T, precision=hp) + params["logvar"]["b"]
    z = mu + eps * jnp.exp(0.5 * lv)
    zf = jnp.dot(z, params["decoder_fc"]["w"].T, precision=hp) + params["decoder_fc"]["b"]
    d = zf.reshape(bsz, c_last, btln, btln)
    for cp in params["dec_ups"]:
        d = gelu(conv(d, cp["w"], cp["b"]))
        d = jnp.repeat(jnp.repeat(d, 2, axis=2), 2, axis=3)
    return conv(d, params["dec_last"]["w"], params["dec_last"]["b"])


# ----------------------------------------------------------------------------
if __name__ == "__main__":
    # Small but structurally faithful config: VAE(input_size=16, in_channels=1,
    # latent_sizes=[4, 8, 16, 32]) -> bottleneck spatial size 2 (required by
    # the module's Linear sizing).
    in_channels = 1
    input_size = 16
    latent_sizes = (4, 8, 16, 32)
    batch = 2

    key = jax.random.PRNGKey(0)
    kp, kx, keps = jax.random.split(key, 3)
    params, btln = make_vae_params(kp, in_channels, input_size, latent_sizes)
    consts, n_down = prepare_vae(params, in_channels=in_channels,
                                 input_size=input_size, latent_sizes=latent_sizes)

    x = jax.random.normal(kx, (batch, in_channels, input_size, input_size),
                          jnp.float32)
    # TODO(synk): torch.randn_like uses torch's RNG stream; eps here is a
    # deterministic jax.random normal with the same shape/dtype semantics.
    eps = jax.random.normal(keps, (batch, 2), jnp.float32)

    fwd = jax.jit(functools.partial(vae_forward, n_down=n_down,
                                    in_channels=in_channels,
                                    input_size=input_size))
    out = fwd(consts, x, eps)
    jax.block_until_ready(out)

    assert out.shape == (batch, in_channels, input_size, input_size), out.shape
    assert out.dtype == jnp.float32

    ref = jax.jit(_vae_reference)(params, x, eps)
    jax.block_until_ready(ref)
    assert bool(jnp.allclose(out, ref, rtol=1e-2, atol=1e-2)), (
        float(jnp.max(jnp.abs(out - ref))))

    print("KERNEL_OK")
</pallas_src>

<mosaic_0001>
module attributes {stable_mosaic.version = 11 : i64} {
  func.func @kernel(%arg0: i32, %arg1: memref<1x16x16xf32, #tpu.memory_space<vmem>>, %arg2: memref<1x1x2xf32, #tpu.memory_space<vmem>>, %arg3: memref<3x16x16xf32, #tpu.memory_space<vmem>>, %arg4: memref<3x16x64xf32, #tpu.memory_space<vmem>>, %arg5: memref<1x64xf32, #tpu.memory_space<vmem>>, %arg6: memref<3x16x16xf32, #tpu.memory_space<vmem>>, %arg7: memref<3x64x128xf32, #tpu.memory_space<vmem>>, %arg8: memref<1x128xf32, #tpu.memory_space<vmem>>, %arg9: memref<2x8x16xf32, #tpu.memory_space<vmem>>, %arg10: memref<2x128x64xf32, #tpu.memory_space<vmem>>, %arg11: memref<3x8x8xf32, #tpu.memory_space<vmem>>, %arg12: memref<3x64x128xf32, #tpu.memory_space<vmem>>, %arg13: memref<1x128xf32, #tpu.memory_space<vmem>>, %arg14: memref<2x4x8xf32, #tpu.memory_space<vmem>>, %arg15: memref<2x128x64xf32, #tpu.memory_space<vmem>>, %arg16: memref<3x4x4xf32, #tpu.memory_space<vmem>>, %arg17: memref<3x64x128xf32, #tpu.memory_space<vmem>>, %arg18: memref<1x128xf32, #tpu.memory_space<vmem>>, %arg19: memref<2x2x4xf32, #tpu.memory_space<vmem>>, %arg20: memref<2x128x64xf32, #tpu.memory_space<vmem>>, %arg21: memref<4x2x64xf32, #tpu.memory_space<vmem>>, %arg22: memref<1x4xf32, #tpu.memory_space<vmem>>, %arg23: memref<2x2x64xf32, #tpu.memory_space<vmem>>, %arg24: memref<2x64xf32, #tpu.memory_space<vmem>>, %arg25: memref<3x2x2xf32, #tpu.memory_space<vmem>>, %arg26: memref<3x64x32xf32, #tpu.memory_space<vmem>>, %arg27: memref<1x32xf32, #tpu.memory_space<vmem>>, %arg28: memref<4x2xf32, #tpu.memory_space<vmem>>, %arg29: memref<32x64xf32, #tpu.memory_space<vmem>>, %arg30: memref<3x4x4xf32, #tpu.memory_space<vmem>>, %arg31: memref<3x64x32xf32, #tpu.memory_space<vmem>>, %arg32: memref<1x32xf32, #tpu.memory_space<vmem>>, %arg33: memref<8x4xf32, #tpu.memory_space<vmem>>, %arg34: memref<32x64xf32, #tpu.memory_space<vmem>>, %arg35: memref<3x8x8xf32, #tpu.memory_space<vmem>>, %arg36: memref<3x64x32xf32, #tpu.memory_space<vmem>>, %arg37: memref<1x32xf32, #tpu.memory_space<vmem>>, %arg38: memref<16x8xf32, #tpu.memory_space<vmem>>, %arg39: memref<32x64xf32, #tpu.memory_space<vmem>>, %arg40: memref<3x16x16xf32, #tpu.memory_space<vmem>>, %arg41: memref<3x64x16xf32, #tpu.memory_space<vmem>>, %arg42: memref<1x16xf32, #tpu.memory_space<vmem>>, %arg43: memref<1x16x16xf32, #tpu.memory_space<vmem>>) attributes {dimension_semantics = [#tpu.dimension_semantics<parallel>], iteration_bounds = array<i64: 2>, scalar_prefetch = 0 : i64, scratch_operands = 0 : i64, tpu.core_type = #tpu.core_type<tc>, window_params = [{transform_indices = @transform_0, window_bounds = array<i64: 1, 16, 16>}, {transform_indices = @transform_1, window_bounds = array<i64: 1, 1, 2>}, {pipeline_mode = #tpu.pipeline_mode<synchronous>, transform_indices = @transform_2, window_bounds = array<i64: 3, 16, 16>}, {pipeline_mode = #tpu.pipeline_mode<synchronous>, transform_indices = @transform_3, window_bounds = array<i64: 3, 16, 64>}, {pipeline_mode = #tpu.pipeline_mode<synchronous>, transform_indices = @transform_4, window_bounds = array<i64: 1, 64>}, {pipeline_mode = #tpu.pipeline_mode<synchronous>, transform_indices = @transform_5, window_bounds = array<i64: 3, 16, 16>}, {pipeline_mode = #tpu.pipeline_mode<synchronous>, transform_indices = @transform_6, window_bounds = array<i64: 3, 64, 128>}, {pipeline_mode = #tpu.pipeline_mode<synchronous>, transform_indices = @transform_7, window_bounds = array<i64: 1, 128>}, {pipeline_mode = #tpu.pipeline_mode<synchronous>, transform_indices = @transform_8, window_bounds = array<i64: 2, 8, 16>}, {pipeline_mode = #tpu.pipeline_mode<synchronous>, transform_indices = @transform_9, window_bounds = array<i64: 2, 128, 64>}, {pipeline_mode = #tpu.pipeline_mode<synchronous>, transform_indices = @transform_10, window_bounds = array<i64: 3, 8, 8>}, {pipeline_mode = #tpu.pipeline_mode<synchronous>, transform_indices = @transform_11, window_bounds = array<i64: 3, 64, 128>}, {pipeline_mode = #tpu.pipeline_mode<synchronous>, transform_indices = @transform_12, window_bounds = array<i64: 1, 128>}, {pipeline_mode = #tpu.pipeline_mode<synchronous>, transform_indices = @transform_13, window_bounds = array<i64: 2, 4, 8>}, {pipeline_mode = #tpu.pipeline_mode<synchronous>, transform_indices = @transform_14, window_bounds = array<i64: 2, 128, 64>}, {pipeline_mode = #tpu.pipeline_mode<synchronous>, transform_indices = @transform_15, window_bounds = array<i64: 3, 4, 4>}, {pipeline_mode = #tpu.pipeline_mode<synchronous>, transform_indices = @transform_16, window_bounds = array<i64: 3, 64, 128>}, {pipeline_mode = #tpu.pipeline_mode<synchronous>, transform_indices = @transform_17, window_bounds = array<i64: 1, 128>}, {pipeline_mode = #tpu.pipeline_mode<synchronous>, transform_indices = @transform_18, window_bounds = array<i64: 2, 2, 4>}, {pipeline_mode = #tpu.pipeline_mode<synchronous>, transform_indices = @transform_19, window_bounds = array<i64: 2, 128, 64>}, {pipeline_mode = #tpu.pipeline_mode<synchronous>, transform_indices = @transform_20, window_bounds = array<i64: 4, 2, 64>}, {pipeline_mode = #tpu.pipeline_mode<synchronous>, transform_indices = @transform_21, window_bounds = array<i64: 1, 4>}, {pipeline_mode = #tpu.pipeline_mode<synchronous>, transform_indices = @transform_22, window_bounds = array<i64: 2, 2, 64>}, {pipeline_mode = #tpu.pipeline_mode<synchronous>, transform_indices = @transform_23, window_bounds = array<i64: 2, 64>}, {pipeline_mode = #tpu.pipeline_mode<synchronous>, transform_indices = @transform_24, window_bounds = array<i64: 3, 2, 2>}, {pipeline_mode = #tpu.pipeline_mode<synchronous>, transform_indices = @transform_25, window_bounds = array<i64: 3, 64, 32>}, {pipeline_mode = #tpu.pipeline_mode<synchronous>, transform_indices = @transform_26, window_bounds = array<i64: 1, 32>}, {pipeline_mode = #tpu.pipeline_mode<synchronous>, transform_indices = @transform_27, window_bounds = array<i64: 4, 2>}, {pipeline_mode = #tpu.pipeline_mode<synchronous>, transform_indices = @transform_28, window_bounds = array<i64: 32, 64>}, {pipeline_mode = #tpu.pipeline_mode<synchronous>, transform_indices = @transform_29, window_bounds = array<i64: 3, 4, 4>}, {pipeline_mode = #tpu.pipeline_mode<synchronous>, transform_indices = @transform_30, window_bounds = array<i64: 3, 64, 32>}, {pipeline_mode = #tpu.pipeline_mode<synchronous>, transform_indices = @transform_31, window_bounds = array<i64: 1, 32>}, {pipeline_mode = #tpu.pipeline_mode<synchronous>, transform_indices = @transform_32, window_bounds = array<i64: 8, 4>}, {pipeline_mode = #tpu.pipeline_mode<synchronous>, transform_indices = @transform_33, window_bounds = array<i64: 32, 64>}, {pipeline_mode = #tpu.pipeline_mode<synchronous>, transform_indices = @transform_34, window_bounds = array<i64: 3, 8, 8>}, {pipeline_mode = #tpu.pipeline_mode<synchronous>, transform_indices = @transform_35, window_bounds = array<i64: 3, 64, 32>}, {pipeline_mode = #tpu.pipeline_mode<synchronous>, transform_indices = @transform_36, window_bounds = array<i64: 1, 32>}, {pipeline_mode = #tpu.pipeline_mode<synchronous>, transform_indices = @transform_37, window_bounds = array<i64: 16, 8>}, {pipeline_mode = #tpu.pipeline_mode<synchronous>, transform_indices = @transform_38, window_bounds = array<i64: 32, 64>}, {pipeline_mode = #tpu.pipeline_mode<synchronous>, transform_indices = @transform_39, window_bounds = array<i64: 3, 16, 16>}, {pipeline_mode = #tpu.pipeline_mode<synchronous>, transform_indices = @transform_40, window_bounds = array<i64: 3, 64, 16>}, {pipeline_mode = #tpu.pipeline_mode<synchronous>, transform_indices = @transform_41, window_bounds = array<i64: 1, 16>}, {transform_indices = @transform_42, window_bounds = array<i64: 1, 16, 16>}]} {
    %c0 = arith.constant 0 : index
    %c0_0 = arith.constant 0 : index
    %c0_1 = arith.constant 0 : index
    %0 = vector.load %arg1[%c0, %c0_0, %c0_1] : memref<1x16x16xf32, #tpu.memory_space<vmem>>, vector<1x16x16xf32>
    %1 = vector.shape_cast %0 : vector<1x16x16xf32> to vector<16x16xf32>
    %c0_2 = arith.constant 0 : index
    %c0_3 = arith.constant 0 : index
    %c0_4 = arith.constant 0 : index
    %2 = vector.load %arg4[%c0_2, %c0_3, %c0_4] : memref<3x16x64xf32, #tpu.memory_space<vmem>>, vector<1x16x64xf32>
    %3 = vector.shape_cast %2 : vector<1x16x64xf32> to vector<16x64xf32>
    %cst = arith.constant dense<0.000000e+00> : vector<16x64xf32>
    %4 = tpu.matmul %1, %3, %cst {dimension_numbers = #tpu.dot_dimension_numbers<[1], [0], [0], [1], [0, 0, 1, 1], [], []>} : vector<16x16xf32>, vector<16x64xf32>, vector<16x64xf32> -> vector<16x64xf32>
    %c0_5 = arith.constant 0 : index
    %c0_6 = arith.constant 0 : index
    %c0_7 = arith.constant 0 : index
    %5 = vector.load %arg3[%c0_5, %c0_6, %c0_7] : memref<3x16x16xf32, #tpu.memory_space<vmem>>, vector<1x16x16xf32>
    %6 = vector.shape_cast %5 : vector<1x16x16xf32> to vector<16x16xf32>
    %cst_8 = arith.constant dense<0.000000e+00> : vector<16x64xf32>
    %7 = tpu.matmul %6, %4, %cst_8 {dimension_numbers = #tpu.dot_dimension_numbers<[1], [0], [0], [1], [0, 0, 1, 1], [], []>} : vector<16x16xf32>, vector<16x64xf32>, vector<16x64xf32> -> vector<16x64xf32>
    %c1 = arith.constant 1 : index
    %c0_9 = arith.constant 0 : index
    %c0_10 = arith.constant 0 : index
    %8 = vector.load %arg4[%c1, %c0_9, %c0_10] : memref<3x16x64xf32, #tpu.memory_space<vmem>>, vector<1x16x64xf32>
    %9 = vector.shape_cast %8 : vector<1x16x64xf32> to vector<16x64xf32>
    %cst_11 = arith.constant dense<0.000000e+00> : vector<16x64xf32>
    %10 = tpu.matmul %1, %9, %cst_11 {dimension_numbers = #tpu.dot_dimension_numbers<[1], [0], [0], [1], [0, 0, 1, 1], [], []>} : vector<16x16xf32>, vector<16x64xf32>, vector<16x64xf32> -> vector<16x64xf32>
    %c1_12 = arith.constant 1 : index
    %c0_13 = arith.constant 0 : index
    %c0_14 = arith.constant 0 : index
    %11 = vector.load %arg3[%c1_12, %c0_13, %c0_14] : memref<3x16x16xf32, #tpu.memory_space<vmem>>, vector<1x16x16xf32>
    %12 = vector.shape_cast %11 : vector<1x16x16xf32> to vector<16x16xf32>
    %cst_15 = arith.constant dense<0.000000e+00> : vector<16x64xf32>
    %13 = tpu.matmul %12, %10, %cst_15 {dimension_numbers = #tpu.dot_dimension_numbers<[1], [0], [0], [1], [0, 0, 1, 1], [], []>} : vector<16x16xf32>, vector<16x64xf32>, vector<16x64xf32> -> vector<16x64xf32>
    %14 = arith.addf %7, %13 : vector<16x64xf32>
    %c2 = arith.constant 2 : index
    %c0_16 = arith.constant 0 : index
    %c0_17 = arith.constant 0 : index
    %15 = vector.load %arg4[%c2, %c0_16, %c0_17] : memref<3x16x64xf32, #tpu.memory_space<vmem>>, vector<1x16x64xf32>
    %16 = vector.shape_cast %15 : vector<1x16x64xf32> to vector<16x64xf32>
    %cst_18 = arith.constant dense<0.000000e+00> : vector<16x64xf32>
    %17 = tpu.matmul %1, %16, %cst_18 {dimension_numbers = #tpu.dot_dimension_numbers<[1], [0], [0], [1], [0, 0, 1, 1], [], []>} : vector<16x16xf32>, vector<16x64xf32>, vector<16x64xf32> -> vector<16x64xf32>
    %c2_19 = arith.constant 2 : index
    %c0_20 = arith.constant 0 : index
    %c0_21 = arith.constant 0 : index
    %18 = vector.load %arg3[%c2_19, %c0_20, %c0_21] : memref<3x16x16xf32, #tpu.memory_space<vmem>>, vector<1x16x16xf32>
    %19 = vector.shape_cast %18 : vector<1x16x16xf32> to vector<16x16xf32>
    %cst_22 = arith.constant dense<0.000000e+00> : vector<16x64xf32>
    %20 = tpu.matmul %19, %17, %cst_22 {dimension_numbers = #tpu.dot_dimension_numbers<[1], [0], [0], [1], [0, 0, 1, 1], [], []>} : vector<16x16xf32>, vector<16x64xf32>, vector<16x64xf32> -> vector<16x64xf32>
    %21 = arith.addf %14, %20 : vector<16x64xf32>
    %c0_23 = arith.constant 0 : index
    %c0_24 = arith.constant 0 : index
    %22 = vector.load %arg5[%c0_23, %c0_24] : memref<1x64xf32, #tpu.memory_space<vmem>>, vector<1x64xf32>
    %23 = vector.broadcast %22 : vector<1x64xf32> to vector<16x64xf32>
    %24 = arith.addf %21, %23 : vector<16x64xf32>
    %c0_25 = arith.constant 0 : index
    %c0_26 = arith.constant 0 : index
    %c0_27 = arith.constant 0 : index
    %25 = vector.load %arg7[%c0_25, %c0_26, %c0_27] : memref<3x64x128xf32, #tpu.memory_space<vmem>>, vector<1x64x128xf32>
    %26 = vector.shape_cast %25 : vector<1x64x128xf32> to vector<64x128xf32>
    %cst_28 = arith.constant dense<0.000000e+00> : vector<16x128xf32>
    %27 = tpu.matmul %24, %26, %cst_28 {dimension_numbers = #tpu.dot_dimension_numbers<[1], [0], [0], [1], [0, 0, 1, 1], [], []>} : vector<16x64xf32>, vector<64x128xf32>, vector<16x128xf32> -> vector<16x128xf32>
    %c0_29 = arith.constant 0 : index
    %c0_30 = arith.constant 0 : index
    %c0_31 = arith.constant 0 : index
    %28 = vector.load %arg6[%c0_29, %c0_30, %c0_31] : memref<3x16x16xf32, #tpu.memory_space<vmem>>, vector<1x16x16xf32>
    %29 = vector.shape_cast %28 : vector<1x16x16xf32> to vector<16x16xf32>
    %cst_32 = arith.constant dense<0.000000e+00> : vector<16x128xf32>
    %30 = tpu.matmul %29, %27, %cst_32 {dimension_numbers = #tpu.dot_dimension_numbers<[1], [0], [0], [1], [0, 0, 1, 1], [], []>} : vector<16x16xf32>, vector<16x128xf32>, vector<16x128xf32> -> vector<16x128xf32>
    %c1_33 = arith.constant 1 : index
    %c0_34 = arith.constant 0 : index
    %c0_35 = arith.constant 0 : index
    %31 = vector.load %arg7[%c1_33, %c0_34, %c0_35] : memref<3x64x128xf32, #tpu.memory_space<vmem>>, vector<1x64x128xf32>
    %32 = vector.shape_cast %31 : vector<1x64x128xf32> to vector<64x128xf32>
    %cst_36 = arith.constant dense<0.000000e+00> : vector<16x128xf32>
    %33 = tpu.matmul %24, %32, %cst_36 {dimension_numbers = #tpu.dot_dimension_numbers<[1], [0], [0], [1], [0, 0, 1, 1], [], []>} : vector<16x64xf32>, vector<64x128xf32>, vector<16x128xf32> -> vector<16x128xf32>
    %c1_37 = arith.constant 1 : index
    %c0_38 = arith.constant 0 : index
    %c0_39 = arith.constant 0 : index
    %34 = vector.load %arg6[%c1_37, %c0_38, %c0_39] : memref<3x16x16xf32, #tpu.memory_space<vmem>>, vector<1x16x16xf32>
    %35 = vector.shape_cast %34 : vector<1x16x16xf32> to vector<16x16xf32>
    %cst_40 = arith.constant dense<0.000000e+00> : vector<16x128xf32>
    %36 = tpu.matmul %35, %33, %cst_40 {dimension_numbers = #tpu.dot_dimension_numbers<[1], [0], [0], [1], [0, 0, 1, 1], [], []>} : vector<16x16xf32>, vector<16x128xf32>, vector<16x128xf32> -> vector<16x128xf32>
    %37 = arith.addf %30, %36 : vector<16x128xf32>
    %c2_41 = arith.constant 2 : index
    %c0_42 = arith.constant 0 : index
    %c0_43 = arith.constant 0 : index
    %38 = vector.load %arg7[%c2_41, %c0_42, %c0_43] : memref<3x64x128xf32, #tpu.memory_space<vmem>>, vector<1x64x128xf32>
    %39 = vector.shape_cast %38 : vector<1x64x128xf32> to vector<64x128xf32>
    %cst_44 = arith.constant dense<0.000000e+00> : vector<16x128xf32>
    %40 = tpu.matmul %24, %39, %cst_44 {dimension_numbers = #tpu.dot_dimension_numbers<[1], [0], [0], [1], [0, 0, 1, 1], [], []>} : vector<16x64xf32>, vector<64x128xf32>, vector<16x128xf32> -> vector<16x128xf32>
    %c2_45 = arith.constant 2 : index
    %c0_46 = arith.constant 0 : index
    %c0_47 = arith.constant 0 : index
    %41 = vector.load %arg6[%c2_45, %c0_46, %c0_47] : memref<3x16x16xf32, #tpu.memory_space<vmem>>, vector<1x16x16xf32>
    %42 = vector.shape_cast %41 : vector<1x16x16xf32> to vector<16x16xf32>
    %cst_48 = arith.constant dense<0.000000e+00> : vector<16x128xf32>
    %43 = tpu.matmul %42, %40, %cst_48 {dimension_numbers = #tpu.dot_dimension_numbers<[1], [0], [0], [1], [0, 0, 1, 1], [], []>} : vector<16x16xf32>, vector<16x128xf32>, vector<16x128xf32> -> vector<16x128xf32>
    %44 = arith.addf %37, %43 : vector<16x128xf32>
    %c0_49 = arith.constant 0 : index
    %c0_50 = arith.constant 0 : index
    %45 = vector.load %arg8[%c0_49, %c0_50] : memref<1x128xf32, #tpu.memory_space<vmem>>, vector<1x128xf32>
    %46 = vector.broadcast %45 : vector<1x128xf32> to vector<16x128xf32>
    %47 = arith.addf %44, %46 : vector<16x128xf32>
    %cst_51 = arith.constant 5.000000e-01 : f32
    %48 = vector.broadcast %cst_51 : f32 to vector<16x128xf32>
    %49 = arith.mulf %48, %47 : vector<16x128xf32>
    %cst_52 = arith.constant 1.41421354 : f32
    %50 = vector.broadcast %cst_52 : f32 to vector<16x128xf32>
    %51 = arith.divf %47, %50 : vector<16x128xf32>
    %52 = math.absf %51 : vector<16x128xf32>
    %cst_53 = arith.constant 0.327591091 : f32
    %53 = vector.broadcast %cst_53 : f32 to vector<16x128xf32>
    %54 = arith.mulf %53, %52 : vector<16x128xf32>
    %cst_54 = arith.constant 1.000000e+00 : f32
    %55 = vector.broadcast %cst_54 : f32 to vector<16x128xf32>
    %56 = arith.addf %55, %54 : vector<16x128xf32>
    %cst_55 = arith.constant 1.000000e+00 : f32
    %57 = vector.broadcast %cst_55 : f32 to vector<16x128xf32>
    %58 = arith.divf %57, %56 : vector<16x128xf32>
    %cst_56 = arith.constant 1.06140542 : f32
    %59 = vector.broadcast %cst_56 : f32 to vector<16x128xf32>
    %60 = arith.mulf %58, %59 : vector<16x128xf32>
    %cst_57 = arith.constant -1.45315206 : f32
    %61 = vector.broadcast %cst_57 : f32 to vector<16x128xf32>
    %62 = arith.addf %61, %60 : vector<16x128xf32>
    %63 = arith.mulf %58, %62 : vector<16x128xf32>
    %cst_58 = arith.constant 1.42141378 : f32
    %64 = vector.broadcast %cst_58 : f32 to vector<16x128xf32>
    %65 = arith.addf %64, %63 : vector<16x128xf32>
    %66 = arith.mulf %58, %65 : vector<16x128xf32>
    %cst_59 = arith.constant -0.284496725 : f32
    %67 = vector.broadcast %cst_59 : f32 to vector<16x128xf32>
    %68 = arith.addf %67, %66 : vector<16x128xf32>
    %69 = arith.mulf %58, %68 : vector<16x128xf32>
    %cst_60 = arith.constant 0.254829586 : f32
    %70 = vector.broadcast %cst_60 : f32 to vector<16x128xf32>
    %71 = arith.addf %70, %69 : vector<16x128xf32>
    %72 = arith.mulf %58, %71 : vector<16x128xf32>
    %cst_61 = arith.constant 0.000000e+00 : f32
    %73 = vector.broadcast %cst_61 : f32 to vector<16x128xf32>
    %74 = arith.subf %73, %52 : vector<16x128xf32>
    %75 = arith.mulf %74, %52 : vector<16x128xf32>
    %76 = math.exp %75 : vector<16x128xf32>
    %77 = arith.mulf %72, %76 : vector<16x128xf32>
    %cst_62 = arith.constant 1.000000e+00 : f32
    %78 = vector.broadcast %cst_62 : f32 to vector<16x128xf32>
    %79 = arith.subf %78, %77 : vector<16x128xf32>
    %cst_63 = arith.constant 0.000000e+00 : f32
    %80 = vector.broadcast %cst_63 : f32 to vector<16x128xf32>
    %81 = arith.cmpf olt, %51, %80 : vector<16x128xf32>
    %cst_64 = arith.constant 0.000000e+00 : f32
    %82 = vector.broadcast %cst_64 : f32 to vector<16x128xf32>
    %83 = arith.subf %82, %79 : vector<16x128xf32>
    %84 = arith.select %81, %83, %79 : vector<16x128xi1>, vector<16x128xf32>
    %cst_65 = arith.constant 1.000000e+00 : f32
    %85 = vector.broadcast %cst_65 : f32 to vector<16x128xf32>
    %86 = arith.addf %85, %84 : vector<16x128xf32>
    %87 = arith.mulf %49, %86 : vector<16x128xf32>
    %c0_66 = arith.constant 0 : index
    %c0_67 = arith.constant 0 : index
    %c0_68 = arith.constant 0 : index
    %88 = vector.load %arg9[%c0_66, %c0_67, %c0_68] : memref<2x8x16xf32, #tpu.memory_space<vmem>>, vector<1x8x16xf32>
    %89 = vector.shape_cast %88 : vector<1x8x16xf32> to vector<8x16xf32>
    %cst_69 = arith.constant dense<0.000000e+00> : vector<8x128xf32>
    %90 = tpu.matmul %89, %87, %cst_69 {dimension_numbers = #tpu.dot_dimension_numbers<[1], [0], [0], [1], [0, 0, 1, 1], [], []>} : vector<8x16xf32>, vector<16x128xf32>, vector<8x128xf32> -> vector<8x128xf32>
    %c1_70 = arith.constant 1 : index
    %c0_71 = arith.constant 0 : index
    %c0_72 = arith.constant 0 : index
    %91 = vector.load %arg9[%c1_70, %c0_71, %c0_72] : memref<2x8x16xf32, #tpu.memory_space<vmem>>, vector<1x8x16xf32>
    %92 = vector.shape_cast %91 : vector<1x8x16xf32> to vector<8x16xf32>
    %cst_73 = arith.constant dense<0.000000e+00> : vector<8x128xf32>
    %93 = tpu.matmul %92, %87, %cst_73 {dimension_numbers = #tpu.dot_dimension_numbers<[1], [0], [0], [1], [0, 0, 1, 1], [], []>} : vector<8x16xf32>, vector<16x128xf32>, vector<8x128xf32> -> vector<8x128xf32>
    %94 = arith.maximumf %90, %93 : vector<8x128xf32>
    %c0_74 = arith.constant 0 : index
    %c0_75 = arith.constant 0 : index
    %c0_76 = arith.constant 0 : index
    %95 = vector.load %arg10[%c0_74, %c0_75, %c0_76] : memref<2x128x64xf32, #tpu.memory_space<vmem>>, vector<1x128x64xf32>
    %96 = vector.shape_cast %95 : vector<1x128x64xf32> to vector<128x64xf32>
    %cst_77 = arith.constant dense<0.000000e+00> : vector<8x64xf32>
    %97 = tpu.matmul %94, %96, %cst_77 {dimension_numbers = #tpu.dot_dimension_numbers<[1], [0], [0], [1], [0, 0, 1, 1], [], []>} : vector<8x128xf32>, vector<128x64xf32>, vector<8x64xf32> -> vector<8x64xf32>
    %c1_78 = arith.constant 1 : index
    %c0_79 = arith.constant 0 : index
    %c0_80 = arith.constant 0 : index
    %98 = vector.load %arg10[%c1_78, %c0_79, %c0_80] : memref<2x128x64xf32, #tpu.memory_space<vmem>>, vector<1x128x64xf32>
    %99 = vector.shape_cast %98 : vector<1x128x64xf32> to vector<128x64xf32>
    %cst_81 = arith.constant dense<0.000000e+00> : vector<8x64xf32>
    %100 = tpu.matmul %94, %99, %cst_81 {dimension_numbers = #tpu.dot_dimension_numbers<[1], [0], [0], [1], [0, 0, 1, 1], [], []>} : vector<8x128xf32>, vector<128x64xf32>, vector<8x64xf32> -> vector<8x64xf32>
    %101 = arith.maximumf %97, %100 : vector<8x64xf32>
    %c0_82 = arith.constant 0 : index
    %c0_83 = arith.constant 0 : index
    %c0_84 = arith.constant 0 : index
    %102 = vector.load %arg12[%c0_82, %c0_83, %c0_84] : memref<3x64x128xf32, #tpu.memory_space<vmem>>, vector<1x64x128xf32>
    %103 = vector.shape_cast %102 : vector<1x64x128xf32> to vector<64x128xf32>
    %cst_85 = arith.constant dense<0.000000e+00> : vector<8x128xf32>
    %104 = tpu.matmul %101, %103, %cst_85 {dimension_numbers = #tpu.dot_dimension_numbers<[1], [0], [0], [1], [0, 0, 1, 1], [], []>} : vector<8x64xf32>, vector<64x128xf32>, vector<8x128xf32> -> vector<8x128xf32>
    %c0_86 = arith.constant 0 : index
    %c0_87 = arith.constant 0 : index
    %c0_88 = arith.constant 0 : index
    %105 = vector.load %arg11[%c0_86, %c0_87, %c0_88] : memref<3x8x8xf32, #tpu.memory_space<vmem>>, vector<1x8x8xf32>
    %106 = vector.shape_cast %105 : vector<1x8x8xf32> to vector<8x8xf32>
    %cst_89 = arith.constant dense<0.000000e+00> : vector<8x128xf32>
    %107 = tpu.matmul %106, %104, %cst_89 {dimension_numbers = #tpu.dot_dimension_numbers<[1], [0], [0], [1], [0, 0, 1, 1], [], []>} : vector<8x8xf32>, vector<8x128xf32>, vector<8x128xf32> -> vector<8x128xf32>
    %c1_90 = arith.constant 1 : index
    %c0_91 = arith.constant 0 : index
    %c0_92 = arith.constant 0 : index
    %108 = vector.load %arg12[%c1_90, %c0_91, %c0_92] : memref<3x64x128xf32, #tpu.memory_space<vmem>>, vector<1x64x128xf32>
    %109 = vector.shape_cast %108 : vector<1x64x128xf32> to vector<64x128xf32>
    %cst_93 = arith.constant dense<0.000000e+00> : vector<8x128xf32>
    %110 = tpu.matmul %101, %109, %cst_93 {dimension_numbers = #tpu.dot_dimension_numbers<[1], [0], [0], [1], [0, 0, 1, 1], [], []>} : vector<8x64xf32>, vector<64x128xf32>, vector<8x128xf32> -> vector<8x128xf32>
    %c1_94 = arith.constant 1 : index
    %c0_95 = arith.constant 0 : index
    %c0_96 = arith.constant 0 : index
    %111 = vector.load %arg11[%c1_94, %c0_95, %c0_96] : memref<3x8x8xf32, #tpu.memory_space<vmem>>, vector<1x8x8xf32>
    %112 = vector.shape_cast %111 : vector<1x8x8xf32> to vector<8x8xf32>
    %cst_97 = arith.constant dense<0.000000e+00> : vector<8x128xf32>
    %113 = tpu.matmul %112, %110, %cst_97 {dimension_numbers = #tpu.dot_dimension_numbers<[1], [0], [0], [1], [0, 0, 1, 1], [], []>} : vector<8x8xf32>, vector<8x128xf32>, vector<8x128xf32> -> vector<8x128xf32>
    %114 = arith.addf %107, %113 : vector<8x128xf32>
    %c2_98 = arith.constant 2 : index
    %c0_99 = arith.constant 0 : index
    %c0_100 = arith.constant 0 : index
    %115 = vector.load %arg12[%c2_98, %c0_99, %c0_100] : memref<3x64x128xf32, #tpu.memory_space<vmem>>, vector<1x64x128xf32>
    %116 = vector.shape_cast %115 : vector<1x64x128xf32> to vector<64x128xf32>
    %cst_101 = arith.constant dense<0.000000e+00> : vector<8x128xf32>
    %117 = tpu.matmul %101, %116, %cst_101 {dimension_numbers = #tpu.dot_dimension_numbers<[1], [0], [0], [1], [0, 0, 1, 1], [], []>} : vector<8x64xf32>, vector<64x128xf32>, vector<8x128xf32> -> vector<8x128xf32>
    %c2_102 = arith.constant 2 : index
    %c0_103 = arith.constant 0 : index
    %c0_104 = arith.constant 0 : index
    %118 = vector.load %arg11[%c2_102, %c0_103, %c0_104] : memref<3x8x8xf32, #tpu.memory_space<vmem>>, vector<1x8x8xf32>
    %119 = vector.shape_cast %118 : vector<1x8x8xf32> to vector<8x8xf32>
    %cst_105 = arith.constant dense<0.000000e+00> : vector<8x128xf32>
    %120 = tpu.matmul %119, %117, %cst_105 {dimension_numbers = #tpu.dot_dimension_numbers<[1], [0], [0], [1], [0, 0, 1, 1], [], []>} : vector<8x8xf32>, vector<8x128xf32>, vector<8x128xf32> -> vector<8x128xf32>
    %121 = arith.addf %114, %120 : vector<8x128xf32>
    %c0_106 = arith.constant 0 : index
    %c0_107 = arith.constant 0 : index
    %122 = vector.load %arg13[%c0_106, %c0_107] : memref<1x128xf32, #tpu.memory_space<vmem>>, vector<1x128xf32>
    %123 = vector.broadcast %122 : vector<1x128xf32> to vector<8x128xf32>
    %124 = arith.addf %121, %123 : vector<8x128xf32>
    %cst_108 = arith.constant 5.000000e-01 : f32
    %125 = vector.broadcast %cst_108 : f32 to vector<8x128xf32>
    %126 = arith.mulf %125, %124 : vector<8x128xf32>
    %cst_109 = arith.constant 1.41421354 : f32
    %127 = vector.broadcast %cst_109 : f32 to vector<8x128xf32>
    %128 = arith.divf %124, %127 : vector<8x128xf32>
    %129 = math.absf %128 : vector<8x128xf32>
    %cst_110 = arith.constant 0.327591091 : f32
    %130 = vector.broadcast %cst_110 : f32 to vector<8x128xf32>
    %131 = arith.mulf %130, %129 : vector<8x128xf32>
    %cst_111 = arith.constant 1.000000e+00 : f32
    %132 = vector.broadcast %cst_111 : f32 to vector<8x128xf32>
    %133 = arith.addf %132, %131 : vector<8x128xf32>
    %cst_112 = arith.constant 1.000000e+00 : f32
    %134 = vector.broadcast %cst_112 : f32 to vector<8x128xf32>
    %135 = arith.divf %134, %133 : vector<8x128xf32>
    %cst_113 = arith.constant 1.06140542 : f32
    %136 = vector.broadcast %cst_113 : f32 to vector<8x128xf32>
    %137 = arith.mulf %135, %136 : vector<8x128xf32>
    %cst_114 = arith.constant -1.45315206 : f32
    %138 = vector.broadcast %cst_114 : f32 to vector<8x128xf32>
    %139 = arith.addf %138, %137 : vector<8x128xf32>
    %140 = arith.mulf %135, %139 : vector<8x128xf32>
    %cst_115 = arith.constant 1.42141378 : f32
    %141 = vector.broadcast %cst_115 : f32 to vector<8x128xf32>
    %142 = arith.addf %141, %140 : vector<8x128xf32>
    %143 = arith.mulf %135, %142 : vector<8x128xf32>
    %cst_116 = arith.constant -0.284496725 : f32
    %144 = vector.broadcast %cst_116 : f32 to vector<8x128xf32>
    %145 = arith.addf %144, %143 : vector<8x128xf32>
    %146 = arith.mulf %135, %145 : vector<8x128xf32>
    %cst_117 = arith.constant 0.254829586 : f32
    %147 = vector.broadcast %cst_117 : f32 to vector<8x128xf32>
    %148 = arith.addf %147, %146 : vector<8x128xf32>
    %149 = arith.mulf %135, %148 : vector<8x128xf32>
    %cst_118 = arith.constant 0.000000e+00 : f32
    %150 = vector.broadcast %cst_118 : f32 to vector<8x128xf32>
    %151 = arith.subf %150, %129 : vector<8x128xf32>
    %152 = arith.mulf %151, %129 : vector<8x128xf32>
    %153 = math.exp %152 : vector<8x128xf32>
    %154 = arith.mulf %149, %153 : vector<8x128xf32>
    %cst_119 = arith.constant 1.000000e+00 : f32
    %155 = vector.broadcast %cst_119 : f32 to vector<8x128xf32>
    %156 = arith.subf %155, %154 : vector<8x128xf32>
    %cst_120 = arith.constant 0.000000e+00 : f32
    %157 = vector.broadcast %cst_120 : f32 to vector<8x128xf32>
    %158 = arith.cmpf olt, %128, %157 : vector<8x128xf32>
    %cst_121 = arith.constant 0.000000e+00 : f32
    %159 = vector.broadcast %cst_121 : f32 to vector<8x128xf32>
    %160 = arith.subf %159, %156 : vector<8x128xf32>
    %161 = arith.select %158, %160, %156 : vector<8x128xi1>, vector<8x128xf32>
    %cst_122 = arith.constant 1.000000e+00 : f32
    %162 = vector.broadcast %cst_122 : f32 to vector<8x128xf32>
    %163 = arith.addf %162, %161 : vector<8x128xf32>
    %164 = arith.mulf %126, %163 : vector<8x128xf32>
    %c0_123 = arith.constant 0 : index
    %c0_124 = arith.constant 0 : index
    %c0_125 = arith.constant 0 : index
    %165 = vector.load %arg14[%c0_123, %c0_124, %c0_125] : memref<2x4x8xf32, #tpu.memory_space<vmem>>, vector<1x4x8xf32>
    %166 = vector.shape_cast %165 : vector<1x4x8xf32> to vector<4x8xf32>
    %cst_126 = arith.constant dense<0.000000e+00> : vector<4x128xf32>
    %167 = tpu.matmul %166, %164, %cst_126 {dimension_numbers = #tpu.dot_dimension_numbers<[1], [0], [0], [1], [0, 0, 1, 1], [], []>} : vector<4x8xf32>, vector<8x128xf32>, vector<4x128xf32> -> vector<4x128xf32>
    %c1_127 = arith.constant 1 : index
    %c0_128 = arith.constant 0 : index
    %c0_129 = arith.constant 0 : index
    %168 = vector.load %arg14[%c1_127, %c0_128, %c0_129] : memref<2x4x8xf32, #tpu.memory_space<vmem>>, vector<1x4x8xf32>
    %169 = vector.shape_cast %168 : vector<1x4x8xf32> to vector<4x8xf32>
    %cst_130 = arith.constant dense<0.000000e+00> : vector<4x128xf32>
    %170 = tpu.matmul %169, %164, %cst_130 {dimension_numbers = #tpu.dot_dimension_numbers<[1], [0], [0], [1], [0, 0, 1, 1], [], []>} : vector<4x8xf32>, vector<8x128xf32>, vector<4x128xf32> -> vector<4x128xf32>
    %171 = arith.maximumf %167, %170 : vector<4x128xf32>
    %c0_131 = arith.constant 0 : index
    %c0_132 = arith.constant 0 : index
    %c0_133 = arith.constant 0 : index
    %172 = vector.load %arg15[%c0_131, %c0_132, %c0_133] : memref<2x128x64xf32, #tpu.memory_space<vmem>>, vector<1x128x64xf32>
    %173 = vector.shape_cast %172 : vector<1x128x64xf32> to vector<128x64xf32>
    %cst_134 = arith.constant dense<0.000000e+00> : vector<4x64xf32>
    %174 = tpu.matmul %171, %173, %cst_134 {dimension_numbers = #tpu.dot_dimension_numbers<[1], [0], [0], [1], [0, 0, 1, 1], [], []>} : vector<4x128xf32>, vector<128x64xf32>, vector<4x64xf32> -> vector<4x64xf32>
    %c1_135 = arith.constant 1 : index
    %c0_136 = arith.constant 0 : index
    %c0_137 = arith.constant 0 : index
    %175 = vector.load %arg15[%c1_135, %c0_136, %c0_137] : memref<2x128x64xf32, #tpu.memory_space<vmem>>, vector<1x128x64xf32>
    %176 = vector.shape_cast %175 : vector<1x128x64xf32> to vector<128x64xf32>
    %cst_138 = arith.constant dense<0.000000e+00> : vector<4x64xf32>
    %177 = tpu.matmul %171, %176, %cst_138 {dimension_numbers = #tpu.dot_dimension_numbers<[1], [0], [0], [1], [0, 0, 1, 1], [], []>} : vector<4x128xf32>, vector<128x64xf32>, vector<4x64xf32> -> vector<4x64xf32>
    %178 = arith.maximumf %174, %177 : vector<4x64xf32>
    %c0_139 = arith.constant 0 : index
    %c0_140 = arith.constant 0 : index
    %c0_141 = arith.constant 0 : index
    %179 = vector.load %arg17[%c0_139, %c0_140, %c0_141] : memref<3x64x128xf32, #tpu.memory_space<vmem>>, vector<1x64x128xf32>
    %180 = vector.shape_cast %179 : vector<1x64x128xf32> to vector<64x128xf32>
    %cst_142 = arith.constant dense<0.000000e+00> : vector<4x128xf32>
    %181 = tpu.matmul %178, %180, %cst_142 {dimension_numbers = #tpu.dot_dimension_numbers<[1], [0], [0], [1], [0, 0, 1, 1], [], []>} : vector<4x64xf32>, vector<64x128xf32>, vector<4x128xf32> -> vector<4x128xf32>
    %c0_143 = arith.constant 0 : index
    %c0_144 = arith.constant 0 : index
    %c0_145 = arith.constant 0 : index
    %182 = vector.load %arg16[%c0_143, %c0_144, %c0_145] : memref<3x4x4xf32, #tpu.memory_space<vmem>>, vector<1x4x4xf32>
    %183 = vector.shape_cast %182 : vector<1x4x4xf32> to vector<4x4xf32>
    %cst_146 = arith.constant dense<0.000000e+00> : vector<4x128xf32>
    %184 = tpu.matmul %183, %181, %cst_146 {dimension_numbers = #tpu.dot_dimension_numbers<[1], [0], [0], [1], [0, 0, 1, 1], [], []>} : vector<4x4xf32>, vector<4x128xf32>, vector<4x128xf32> -> vector<4x128xf32>
    %c1_147 = arith.constant 1 : index
    %c0_148 = arith.constant 0 : index
    %c0_149 = arith.constant 0 : index
    %185 = vector.load %arg17[%c1_147, %c0_148, %c0_149] : memref<3x64x128xf32, #tpu.memory_space<vmem>>, vector<1x64x128xf32>
    %186 = vector.shape_cast %185 : vector<1x64x128xf32> to vector<64x128xf32>
    %cst_150 = arith.constant dense<0.000000e+00> : vector<4x128xf32>
    %187 = tpu.matmul %178, %186, %cst_150 {dimension_numbers = #tpu.dot_dimension_numbers<[1], [0], [0], [1], [0, 0, 1, 1], [], []>} : vector<4x64xf32>, vector<64x128xf32>, vector<4x128xf32> -> vector<4x128xf32>
    %c1_151 = arith.constant 1 : index
    %c0_152 = arith.constant 0 : index
    %c0_153 = arith.constant 0 : index
    %188 = vector.load %arg16[%c1_151, %c0_152, %c0_153] : memref<3x4x4xf32, #tpu.memory_space<vmem>>, vector<1x4x4xf32>
    %189 = vector.shape_cast %188 : vector<1x4x4xf32> to vector<4x4xf32>
    %cst_154 = arith.constant dense<0.000000e+00> : vector<4x128xf32>
    %190 = tpu.matmul %189, %187, %cst_154 {dimension_numbers = #tpu.dot_dimension_numbers<[1], [0], [0], [1], [0, 0, 1, 1], [], []>} : vector<4x4xf32>, vector<4x128xf32>, vector<4x128xf32> -> vector<4x128xf32>
    %191 = arith.addf %184, %190 : vector<4x128xf32>
    %c2_155 = arith.constant 2 : index
    %c0_156 = arith.constant 0 : index
    %c0_157 = arith.constant 0 : index
    %192 = vector.load %arg17[%c2_155, %c0_156, %c0_157] : memref<3x64x128xf32, #tpu.memory_space<vmem>>, vector<1x64x128xf32>
    %193 = vector.shape_cast %192 : vector<1x64x128xf32> to vector<64x128xf32>
    %cst_158 = arith.constant dense<0.000000e+00> : vector<4x128xf32>
    %194 = tpu.matmul %178, %193, %cst_158 {dimension_numbers = #tpu.dot_dimension_numbers<[1], [0], [0], [1], [0, 0, 1, 1], [], []>} : vector<4x64xf32>, vector<64x128xf32>, vector<4x128xf32> -> vector<4x128xf32>
    %c2_159 = arith.constant 2 : index
    %c0_160 = arith.constant 0 : index
    %c0_161 = arith.constant 0 : index
    %195 = vector.load %arg16[%c2_159, %c0_160, %c0_161] : memref<3x4x4xf32, #tpu.memory_space<vmem>>, vector<1x4x4xf32>
    %196 = vector.shape_cast %195 : vector<1x4x4xf32> to vector<4x4xf32>
    %cst_162 = arith.constant dense<0.000000e+00> : vector<4x128xf32>
    %197 = tpu.matmul %196, %194, %cst_162 {dimension_numbers = #tpu.dot_dimension_numbers<[1], [0], [0], [1], [0, 0, 1, 1], [], []>} : vector<4x4xf32>, vector<4x128xf32>, vector<4x128xf32> -> vector<4x128xf32>
    %198 = arith.addf %191, %197 : vector<4x128xf32>
    %c0_163 = arith.constant 0 : index
    %c0_164 = arith.constant 0 : index
    %199 = vector.load %arg18[%c0_163, %c0_164] : memref<1x128xf32, #tpu.memory_space<vmem>>, vector<1x128xf32>
    %200 = vector.broadcast %199 : vector<1x128xf32> to vector<4x128xf32>
    %201 = arith.addf %198, %200 : vector<4x128xf32>
    %cst_165 = arith.constant 5.000000e-01 : f32
    %202 = vector.broadcast %cst_165 : f32 to vector<4x128xf32>
    %203 = arith.mulf %202, %201 : vector<4x128xf32>
    %cst_166 = arith.constant 1.41421354 : f32
    %204 = vector.broadcast %cst_166 : f32 to vector<4x128xf32>
    %205 = arith.divf %201, %204 : vector<4x128xf32>
    %206 = math.absf %205 : vector<4x128xf32>
    %cst_167 = arith.constant 0.327591091 : f32
    %207 = vector.broadcast %cst_167 : f32 to vector<4x128xf32>
    %208 = arith.mulf %207, %206 : vector<4x128xf32>
    %cst_168 = arith.constant 1.000000e+00 : f32
    %209 = vector.broadcast %cst_168 : f32 to vector<4x128xf32>
    %210 = arith.addf %209, %208 : vector<4x128xf32>
    %cst_169 = arith.constant 1.000000e+00 : f32
    %211 = vector.broadcast %cst_169 : f32 to vector<4x128xf32>
    %212 = arith.divf %211, %210 : vector<4x128xf32>
    %cst_170 = arith.constant 1.06140542 : f32
    %213 = vector.broadcast %cst_170 : f32 to vector<4x128xf32>
    %214 = arith.mulf %212, %213 : vector<4x128xf32>
    %cst_171 = arith.constant -1.45315206 : f32
    %215 = vector.broadcast %cst_171 : f32 to vector<4x128xf32>
    %216 = arith.addf %215, %214 : vector<4x128xf32>
    %217 = arith.mulf %212, %216 : vector<4x128xf32>
    %cst_172 = arith.constant 1.42141378 : f32
    %218 = vector.broadcast %cst_172 : f32 to vector<4x128xf32>
    %219 = arith.addf %218, %217 : vector<4x128xf32>
    %220 = arith.mulf %212, %219 : vector<4x128xf32>
    %cst_173 = arith.constant -0.284496725 : f32
    %221 = vector.broadcast %cst_173 : f32 to vector<4x128xf32>
    %222 = arith.addf %221, %220 : vector<4x128xf32>
    %223 = arith.mulf %212, %222 : vector<4x128xf32>
    %cst_174 = arith.constant 0.254829586 : f32
    %224 = vector.broadcast %cst_174 : f32 to vector<4x128xf32>
    %225 = arith.addf %224, %223 : vector<4x128xf32>
    %226 = arith.mulf %212, %225 : vector<4x128xf32>
    %cst_175 = arith.constant 0.000000e+00 : f32
    %227 = vector.broadcast %cst_175 : f32 to vector<4x128xf32>
    %228 = arith.subf %227, %206 : vector<4x128xf32>
    %229 = arith.mulf %228, %206 : vector<4x128xf32>
    %230 = math.exp %229 : vector<4x128xf32>
    %231 = arith.mulf %226, %230 : vector<4x128xf32>
    %cst_176 = arith.constant 1.000000e+00 : f32
    %232 = vector.broadcast %cst_176 : f32 to vector<4x128xf32>
    %233 = arith.subf %232, %231 : vector<4x128xf32>
    %cst_177 = arith.constant 0.000000e+00 : f32
    %234 = vector.broadcast %cst_177 : f32 to vector<4x128xf32>
    %235 = arith.cmpf olt, %205, %234 : vector<4x128xf32>
    %cst_178 = arith.constant 0.000000e+00 : f32
    %236 = vector.broadcast %cst_178 : f32 to vector<4x128xf32>
    %237 = arith.subf %236, %233 : vector<4x128xf32>
    %238 = arith.select %235, %237, %233 : vector<4x128xi1>, vector<4x128xf32>
    %cst_179 = arith.constant 1.000000e+00 : f32
    %239 = vector.broadcast %cst_179 : f32 to vector<4x128xf32>
    %240 = arith.addf %239, %238 : vector<4x128xf32>
    %241 = arith.mulf %203, %240 : vector<4x128xf32>
    %c0_180 = arith.constant 0 : index
    %c0_181 = arith.constant 0 : index
    %c0_182 = arith.constant 0 : index
    %242 = vector.load %arg19[%c0_180, %c0_181, %c0_182] : memref<2x2x4xf32, #tpu.memory_space<vmem>>, vector<1x2x4xf32>
    %243 = vector.shape_cast %242 : vector<1x2x4xf32> to vector<2x4xf32>
    %cst_183 = arith.constant dense<0.000000e+00> : vector<2x128xf32>
    %244 = tpu.matmul %243, %241, %cst_183 {dimension_numbers = #tpu.dot_dimension_numbers<[1], [0], [0], [1], [0, 0, 1, 1], [], []>} : vector<2x4xf32>, vector<4x128xf32>, vector<2x128xf32> -> vector<2x128xf32>
    %c1_184 = arith.constant 1 : index
    %c0_185 = arith.constant 0 : index
    %c0_186 = arith.constant 0 : index
    %245 = vector.load %arg19[%c1_184, %c0_185, %c0_186] : memref<2x2x4xf32, #tpu.memory_space<vmem>>, vector<1x2x4xf32>
    %246 = vector.shape_cast %245 : vector<1x2x4xf32> to vector<2x4xf32>
    %cst_187 = arith.constant dense<0.000000e+00> : vector<2x128xf32>
    %247 = tpu.matmul %246, %241, %cst_187 {dimension_numbers = #tpu.dot_dimension_numbers<[1], [0], [0], [1], [0, 0, 1, 1], [], []>} : vector<2x4xf32>, vector<4x128xf32>, vector<2x128xf32> -> vector<2x128xf32>
    %248 = arith.maximumf %244, %247 : vector<2x128xf32>
    %c0_188 = arith.constant 0 : index
    %c0_189 = arith.constant 0 : index
    %c0_190 = arith.constant 0 : index
    %249 = vector.load %arg20[%c0_188, %c0_189, %c0_190] : memref<2x128x64xf32, #tpu.memory_space<vmem>>, vector<1x128x64xf32>
    %250 = vector.shape_cast %249 : vector<1x128x64xf32> to vector<128x64xf32>
    %cst_191 = arith.constant dense<0.000000e+00> : vector<2x64xf32>
    %251 = tpu.matmul %248, %250, %cst_191 {dimension_numbers = #tpu.dot_dimension_numbers<[1], [0], [0], [1], [0, 0, 1, 1], [], []>} : vector<2x128xf32>, vector<128x64xf32>, vector<2x64xf32> -> vector<2x64xf32>
    %c1_192 = arith.constant 1 : index
    %c0_193 = arith.constant 0 : index
    %c0_194 = arith.constant 0 : index
    %252 = vector.load %arg20[%c1_192, %c0_193, %c0_194] : memref<2x128x64xf32, #tpu.memory_space<vmem>>, vector<1x128x64xf32>
    %253 = vector.shape_cast %252 : vector<1x128x64xf32> to vector<128x64xf32>
    %cst_195 = arith.constant dense<0.000000e+00> : vector<2x64xf32>
    %254 = tpu.matmul %248, %253, %cst_195 {dimension_numbers = #tpu.dot_dimension_numbers<[1], [0], [0], [1], [0, 0, 1, 1], [], []>} : vector<2x128xf32>, vector<128x64xf32>, vector<2x64xf32> -> vector<2x64xf32>
    %255 = arith.maximumf %251, %254 : vector<2x64xf32>
    %c0_196 = arith.constant 0 : index
    %c0_197 = arith.constant 0 : index
    %256 = vector.load %arg22[%c0_196, %c0_197] : memref<1x4xf32, #tpu.memory_space<vmem>>, vector<1x4xf32>
    %c0_198 = arith.constant 0 : index
    %c0_199 = arith.constant 0 : index
    %c0_200 = arith.constant 0 : index
    %257 = vector.load %arg21[%c0_198, %c0_199, %c0_200] : memref<4x2x64xf32, #tpu.memory_space<vmem>>, vector<1x2x64xf32>
    %258 = vector.shape_cast %257 : vector<1x2x64xf32> to vector<2x64xf32>
    %259 = arith.mulf %255, %258 : vector<2x64xf32>
    %cst_201 = arith.constant dense<0.000000e+00> : vector<2xf32>
    %260 = vector.multi_reduction <add>, %259, %cst_201 [1] : vector<2x64xf32> to vector<2xf32>
    %261 = vector.shape_cast %260 : vector<2xf32> to vector<2x1xf32>
    %cst_202 = arith.constant dense<0.000000e+00> : vector<1xf32>
    %262 = vector.multi_reduction <add>, %261, %cst_202 [0] : vector<2x1xf32> to vector<1xf32>
    %263 = vector.shape_cast %262 : vector<1xf32> to vector<1x1xf32>
    %264 = vector.extract_strided_slice %256 {offsets = [0, 0], sizes = [1, 1], strides = [1, 1]} : vector<1x4xf32> to vector<1x1xf32>
    %265 = arith.addf %263, %264 : vector<1x1xf32>
    %c1_203 = arith.constant 1 : index
    %c0_204 = arith.constant 0 : index
    %c0_205 = arith.constant 0 : index
    %266 = vector.load %arg21[%c1_203, %c0_204, %c0_205] : memref<4x2x64xf32, #tpu.memory_space<vmem>>, vector<1x2x64xf32>
    %267 = vector.shape_cast %266 : vector<1x2x64xf32> to vector<2x64xf32>
    %268 = arith.mulf %255, %267 : vector<2x64xf32>
    %cst_206 = arith.constant dense<0.000000e+00> : vector<2xf32>
    %269 = vector.multi_reduction <add>, %268, %cst_206 [1] : vector<2x64xf32> to vector<2xf32>
    %270 = vector.shape_cast %269 : vector<2xf32> to vector<2x1xf32>
    %cst_207 = arith.constant dense<0.000000e+00> : vector<1xf32>
    %271 = vector.multi_reduction <add>, %270, %cst_207 [0] : vector<2x1xf32> to vector<1xf32>
    %272 = vector.shape_cast %271 : vector<1xf32> to vector<1x1xf32>
    %273 = vector.extract_strided_slice %256 {offsets = [0, 1], sizes = [1, 1], strides = [1, 1]} : vector<1x4xf32> to vector<1x1xf32>
    %274 = arith.addf %272, %273 : vector<1x1xf32>
    %c2_208 = arith.constant 2 : index
    %c0_209 = arith.constant 0 : index
    %c0_210 = arith.constant 0 : index
    %275 = vector.load %arg21[%c2_208, %c0_209, %c0_210] : memref<4x2x64xf32, #tpu.memory_space<vmem>>, vector<1x2x64xf32>
    %276 = vector.shape_cast %275 : vector<1x2x64xf32> to vector<2x64xf32>
    %277 = arith.mulf %255, %276 : vector<2x64xf32>
    %cst_211 = arith.constant dense<0.000000e+00> : vector<2xf32>
    %278 = vector.multi_reduction <add>, %277, %cst_211 [1] : vector<2x64xf32> to vector<2xf32>
    %279 = vector.shape_cast %278 : vector<2xf32> to vector<2x1xf32>
    %cst_212 = arith.constant dense<0.000000e+00> : vector<1xf32>
    %280 = vector.multi_reduction <add>, %279, %cst_212 [0] : vector<2x1xf32> to vector<1xf32>
    %281 = vector.shape_cast %280 : vector<1xf32> to vector<1x1xf32>
    %282 = vector.extract_strided_slice %256 {offsets = [0, 2], sizes = [1, 1], strides = [1, 1]} : vector<1x4xf32> to vector<1x1xf32>
    %283 = arith.addf %281, %282 : vector<1x1xf32>
    %c3 = arith.constant 3 : index
    %c0_213 = arith.constant 0 : index
    %c0_214 = arith.constant 0 : index
    %284 = vector.load %arg21[%c3, %c0_213, %c0_214] : memref<4x2x64xf32, #tpu.memory_space<vmem>>, vector<1x2x64xf32>
    %285 = vector.shape_cast %284 : vector<1x2x64xf32> to vector<2x64xf32>
    %286 = arith.mulf %255, %285 : vector<2x64xf32>
    %cst_215 = arith.constant dense<0.000000e+00> : vector<2xf32>
    %287 = vector.multi_reduction <add>, %286, %cst_215 [1] : vector<2x64xf32> to vector<2xf32>
    %288 = vector.shape_cast %287 : vector<2xf32> to vector<2x1xf32>
    %cst_216 = arith.constant dense<0.000000e+00> : vector<1xf32>
    %289 = vector.multi_reduction <add>, %288, %cst_216 [0] : vector<2x1xf32> to vector<1xf32>
    %290 = vector.shape_cast %289 : vector<1xf32> to vector<1x1xf32>
    %291 = vector.extract_strided_slice %256 {offsets = [0, 3], sizes = [1, 1], strides = [1, 1]} : vector<1x4xf32> to vector<1x1xf32>
    %292 = arith.addf %290, %291 : vector<1x1xf32>
    %c0_217 = arith.constant 0 : index
    %c0_218 = arith.constant 0 : index
    %c0_219 = arith.constant 0 : index
    %293 = vector.load %arg2[%c0_217, %c0_218, %c0_219] : memref<1x1x2xf32, #tpu.memory_space<vmem>>, vector<1x1x2xf32>
    %294 = vector.shape_cast %293 : vector<1x1x2xf32> to vector<1x2xf32>
    %295 = vector.extract_strided_slice %294 {offsets = [0, 0], sizes = [1, 1], strides = [1, 1]} : vector<1x2xf32> to vector<1x1xf32>
    %cst_220 = arith.constant 5.000000e-01 : f32
    %296 = vector.broadcast %cst_220 : f32 to vector<1x1xf32>
    %297 = arith.mulf %296, %283 : vector<1x1xf32>
    %298 = math.exp %297 : vector<1x1xf32>
    %299 = arith.mulf %295, %298 : vector<1x1xf32>
    %300 = arith.addf %265, %299 : vector<1x1xf32>
    %301 = vector.extract_strided_slice %294 {offsets = [0, 1], sizes = [1, 1], strides = [1, 1]} : vector<1x2xf32> to vector<1x1xf32>
    %cst_221 = arith.constant 5.000000e-01 : f32
    %302 = vector.broadcast %cst_221 : f32 to vector<1x1xf32>
    %303 = arith.mulf %302, %292 : vector<1x1xf32>
    %304 = math.exp %303 : vector<1x1xf32>
    %305 = arith.mulf %301, %304 : vector<1x1xf32>
    %306 = arith.addf %274, %305 : vector<1x1xf32>
    %c0_222 = arith.constant 0 : index
    %c0_223 = arith.constant 0 : index
    %c0_224 = arith.constant 0 : index
    %307 = vector.load %arg23[%c0_222, %c0_223, %c0_224] : memref<2x2x64xf32, #tpu.memory_space<vmem>>, vector<1x2x64xf32>
    %308 = vector.shape_cast %307 : vector<1x2x64xf32> to vector<2x64xf32>
    %309 = vector.broadcast %300 : vector<1x1xf32> to vector<2x64xf32>
    %310 = arith.mulf %309, %308 : vector<2x64xf32>
    %c1_225 = arith.constant 1 : index
    %c0_226 = arith.constant 0 : index
    %c0_227 = arith.constant 0 : index
    %311 = vector.load %arg23[%c1_225, %c0_226, %c0_227] : memref<2x2x64xf32, #tpu.memory_space<vmem>>, vector<1x2x64xf32>
    %312 = vector.shape_cast %311 : vector<1x2x64xf32> to vector<2x64xf32>
    %313 = vector.broadcast %306 : vector<1x1xf32> to vector<2x64xf32>
    %314 = arith.mulf %313, %312 : vector<2x64xf32>
    %315 = arith.addf %310, %314 : vector<2x64xf32>
    %c0_228 = arith.constant 0 : index
    %c0_229 = arith.constant 0 : index
    %316 = vector.load %arg24[%c0_228, %c0_229] : memref<2x64xf32, #tpu.memory_space<vmem>>, vector<2x64xf32>
    %317 = arith.addf %315, %316 : vector<2x64xf32>
    %c0_230 = arith.constant 0 : index
    %c0_231 = arith.constant 0 : index
    %c0_232 = arith.constant 0 : index
    %318 = vector.load %arg26[%c0_230, %c0_231, %c0_232] : memref<3x64x32xf32, #tpu.memory_space<vmem>>, vector<1x64x32xf32>
    %319 = vector.shape_cast %318 : vector<1x64x32xf32> to vector<64x32xf32>
    %cst_233 = arith.constant dense<0.000000e+00> : vector<2x32xf32>
    %320 = tpu.matmul %317, %319, %cst_233 {dimension_numbers = #tpu.dot_dimension_numbers<[1], [0], [0], [1], [0, 0, 1, 1], [], []>} : vector<2x64xf32>, vector<64x32xf32>, vector<2x32xf32> -> vector<2x32xf32>
    %c0_234 = arith.constant 0 : index
    %c0_235 = arith.constant 0 : index
    %c0_236 = arith.constant 0 : index
    %321 = vector.load %arg25[%c0_234, %c0_235, %c0_236] : memref<3x2x2xf32, #tpu.memory_space<vmem>>, vector<1x2x2xf32>
    %322 = vector.shape_cast %321 : vector<1x2x2xf32> to vector<2x2xf32>
    %cst_237 = arith.constant dense<0.000000e+00> : vector<2x32xf32>
    %323 = tpu.matmul %322, %320, %cst_237 {dimension_numbers = #tpu.dot_dimension_numbers<[1], [0], [0], [1], [0, 0, 1, 1], [], []>} : vector<2x2xf32>, vector<2x32xf32>, vector<2x32xf32> -> vector<2x32xf32>
    %c1_238 = arith.constant 1 : index
    %c0_239 = arith.constant 0 : index
    %c0_240 = arith.constant 0 : index
    %324 = vector.load %arg26[%c1_238, %c0_239, %c0_240] : memref<3x64x32xf32, #tpu.memory_space<vmem>>, vector<1x64x32xf32>
    %325 = vector.shape_cast %324 : vector<1x64x32xf32> to vector<64x32xf32>
    %cst_241 = arith.constant dense<0.000000e+00> : vector<2x32xf32>
    %326 = tpu.matmul %317, %325, %cst_241 {dimension_numbers = #tpu.dot_dimension_numbers<[1], [0], [0], [1], [0, 0, 1, 1], [], []>} : vector<2x64xf32>, vector<64x32xf32>, vector<2x32xf32> -> vector<2x32xf32>
    %c1_242 = arith.constant 1 : index
    %c0_243 = arith.constant 0 : index
    %c0_244 = arith.constant 0 : index
    %327 = vector.load %arg25[%c1_242, %c0_243, %c0_244] : memref<3x2x2xf32, #tpu.memory_space<vmem>>, vector<1x2x2xf32>
    %328 = vector.shape_cast %327 : vector<1x2x2xf32> to vector<2x2xf32>
    %cst_245 = arith.constant dense<0.000000e+00> : vector<2x32xf32>
    %329 = tpu.matmul %328, %326, %cst_245 {dimension_numbers = #tpu.dot_dimension_numbers<[1], [0], [0], [1], [0, 0, 1, 1], [], []>} : vector<2x2xf32>, vector<2x32xf32>, vector<2x32xf32> -> vector<2x32xf32>
    %330 = arith.addf %323, %329 : vector<2x32xf32>
    %c2_246 = arith.constant 2 : index
    %c0_247 = arith.constant 0 : index
    %c0_248 = arith.constant 0 : index
    %331 = vector.load %arg26[%c2_246, %c0_247, %c0_248] : memref<3x64x32xf32, #tpu.memory_space<vmem>>, vector<1x64x32xf32>
    %332 = vector.shape_cast %331 : vector<1x64x32xf32> to vector<64x32xf32>
    %cst_249 = arith.constant dense<0.000000e+00> : vector<2x32xf32>
    %333 = tpu.matmul %317, %332, %cst_249 {dimension_numbers = #tpu.dot_dimension_numbers<[1], [0], [0], [1], [0, 0, 1, 1], [], []>} : vector<2x64xf32>, vector<64x32xf32>, vector<2x32xf32> -> vector<2x32xf32>
    %c2_250 = arith.constant 2 : index
    %c0_251 = arith.constant 0 : index
    %c0_252 = arith.constant 0 : index
    %334 = vector.load %arg25[%c2_250, %c0_251, %c0_252] : memref<3x2x2xf32, #tpu.memory_space<vmem>>, vector<1x2x2xf32>
    %335 = vector.shape_cast %334 : vector<1x2x2xf32> to vector<2x2xf32>
    %cst_253 = arith.constant dense<0.000000e+00> : vector<2x32xf32>
    %336 = tpu.matmul %335, %333, %cst_253 {dimension_numbers = #tpu.dot_dimension_numbers<[1], [0], [0], [1], [0, 0, 1, 1], [], []>} : vector<2x2xf32>, vector<2x32xf32>, vector<2x32xf32> -> vector<2x32xf32>
    %337 = arith.addf %330, %336 : vector<2x32xf32>
    %c0_254 = arith.constant 0 : index
    %c0_255 = arith.constant 0 : index
    %338 = vector.load %arg27[%c0_254, %c0_255] : memref<1x32xf32, #tpu.memory_space<vmem>>, vector<1x32xf32>
    %339 = vector.broadcast %338 : vector<1x32xf32> to vector<2x32xf32>
    %340 = arith.addf %337, %339 : vector<2x32xf32>
    %cst_256 = arith.constant 5.000000e-01 : f32
    %341 = vector.broadcast %cst_256 : f32 to vector<2x32xf32>
    %342 = arith.mulf %341, %340 : vector<2x32xf32>
    %cst_257 = arith.constant 1.41421354 : f32
    %343 = vector.broadcast %cst_257 : f32 to vector<2x32xf32>
    %344 = arith.divf %340, %343 : vector<2x32xf32>
    %345 = math.absf %344 : vector<2x32xf32>
    %cst_258 = arith.constant 0.327591091 : f32
    %346 = vector.broadcast %cst_258 : f32 to vector<2x32xf32>
    %347 = arith.mulf %346, %345 : vector<2x32xf32>
    %cst_259 = arith.constant 1.000000e+00 : f32
    %348 = vector.broadcast %cst_259 : f32 to vector<2x32xf32>
    %349 = arith.addf %348, %347 : vector<2x32xf32>
    %cst_260 = arith.constant 1.000000e+00 : f32
    %350 = vector.broadcast %cst_260 : f32 to vector<2x32xf32>
    %351 = arith.divf %350, %349 : vector<2x32xf32>
    %cst_261 = arith.constant 1.06140542 : f32
    %352 = vector.broadcast %cst_261 : f32 to vector<2x32xf32>
    %353 = arith.mulf %351, %352 : vector<2x32xf32>
    %cst_262 = arith.constant -1.45315206 : f32
    %354 = vector.broadcast %cst_262 : f32 to vector<2x32xf32>
    %355 = arith.addf %354, %353 : vector<2x32xf32>
    %356 = arith.mulf %351, %355 : vector<2x32xf32>
    %cst_263 = arith.constant 1.42141378 : f32
    %357 = vector.broadcast %cst_263 : f32 to vector<2x32xf32>
    %358 = arith.addf %357, %356 : vector<2x32xf32>
    %359 = arith.mulf %351, %358 : vector<2x32xf32>
    %cst_264 = arith.constant -0.284496725 : f32
    %360 = vector.broadcast %cst_264 : f32 to vector<2x32xf32>
    %361 = arith.addf %360, %359 : vector<2x32xf32>
    %362 = arith.mulf %351, %361 : vector<2x32xf32>
    %cst_265 = arith.constant 0.254829586 : f32
    %363 = vector.broadcast %cst_265 : f32 to vector<2x32xf32>
    %364 = arith.addf %363, %362 : vector<2x32xf32>
    %365 = arith.mulf %351, %364 : vector<2x32xf32>
    %cst_266 = arith.constant 0.000000e+00 : f32
    %366 = vector.broadcast %cst_266 : f32 to vector<2x32xf32>
    %367 = arith.subf %366, %345 : vector<2x32xf32>
    %368 = arith.mulf %367, %345 : vector<2x32xf32>
    %369 = math.exp %368 : vector<2x32xf32>
    %370 = arith.mulf %365, %369 : vector<2x32xf32>
    %cst_267 = arith.constant 1.000000e+00 : f32
    %371 = vector.broadcast %cst_267 : f32 to vector<2x32xf32>
    %372 = arith.subf %371, %370 : vector<2x32xf32>
    %cst_268 = arith.constant 0.000000e+00 : f32
    %373 = vector.broadcast %cst_268 : f32 to vector<2x32xf32>
    %374 = arith.cmpf olt, %344, %373 : vector<2x32xf32>
    %cst_269 = arith.constant 0.000000e+00 : f32
    %375 = vector.broadcast %cst_269 : f32 to vector<2x32xf32>
    %376 = arith.subf %375, %372 : vector<2x32xf32>
    %377 = arith.select %374, %376, %372 : vector<2x32xi1>, vector<2x32xf32>
    %cst_270 = arith.constant 1.000000e+00 : f32
    %378 = vector.broadcast %cst_270 : f32 to vector<2x32xf32>
    %379 = arith.addf %378, %377 : vector<2x32xf32>
    %380 = arith.mulf %342, %379 : vector<2x32xf32>
    %c0_271 = arith.constant 0 : index
    %c0_272 = arith.constant 0 : index
    %381 = vector.load %arg28[%c0_271, %c0_272] : memref<4x2xf32, #tpu.memory_space<vmem>>, vector<4x2xf32>
    %cst_273 = arith.constant dense<0.000000e+00> : vector<4x32xf32>
    %382 = tpu.matmul %381, %380, %cst_273 {dimension_numbers = #tpu.dot_dimension_numbers<[1], [0], [0], [1], [0, 0, 1, 1], [], []>} : vector<4x2xf32>, vector<2x32xf32>, vector<4x32xf32> -> vector<4x32xf32>
    %c0_274 = arith.constant 0 : index
    %c0_275 = arith.constant 0 : index
    %383 = vector.load %arg29[%c0_274, %c0_275] : memref<32x64xf32, #tpu.memory_space<vmem>>, vector<32x64xf32>
    %cst_276 = arith.constant dense<0.000000e+00> : vector<4x64xf32>
    %384 = tpu.matmul %382, %383, %cst_276 {dimension_numbers = #tpu.dot_dimension_numbers<[1], [0], [0], [1], [0, 0, 1, 1], [], []>} : vector<4x32xf32>, vector<32x64xf32>, vector<4x64xf32> -> vector<4x64xf32>
    %c0_277 = arith.constant 0 : index
    %c0_278 = arith.constant 0 : index
    %c0_279 = arith.constant 0 : index
    %385 = vector.load %arg31[%c0_277, %c0_278, %c0_279] : memref<3x64x32xf32, #tpu.memory_space<vmem>>, vector<1x64x32xf32>
    %386 = vector.shape_cast %385 : vector<1x64x32xf32> to vector<64x32xf32>
    %cst_280 = arith.constant dense<0.000000e+00> : vector<4x32xf32>
    %387 = tpu.matmul %384, %386, %cst_280 {dimension_numbers = #tpu.dot_dimension_numbers<[1], [0], [0], [1], [0, 0, 1, 1], [], []>} : vector<4x64xf32>, vector<64x32xf32>, vector<4x32xf32> -> vector<4x32xf32>
    %c0_281 = arith.constant 0 : index
    %c0_282 = arith.constant 0 : index
    %c0_283 = arith.constant 0 : index
    %388 = vector.load %arg30[%c0_281, %c0_282, %c0_283] : memref<3x4x4xf32, #tpu.memory_space<vmem>>, vector<1x4x4xf32>
    %389 = vector.shape_cast %388 : vector<1x4x4xf32> to vector<4x4xf32>
    %cst_284 = arith.constant dense<0.000000e+00> : vector<4x32xf32>
    %390 = tpu.matmul %389, %387, %cst_284 {dimension_numbers = #tpu.dot_dimension_numbers<[1], [0], [0], [1], [0, 0, 1, 1], [], []>} : vector<4x4xf32>, vector<4x32xf32>, vector<4x32xf32> -> vector<4x32xf32>
    %c1_285 = arith.constant 1 : index
    %c0_286 = arith.constant 0 : index
    %c0_287 = arith.constant 0 : index
    %391 = vector.load %arg31[%c1_285, %c0_286, %c0_287] : memref<3x64x32xf32, #tpu.memory_space<vmem>>, vector<1x64x32xf32>
    %392 = vector.shape_cast %391 : vector<1x64x32xf32> to vector<64x32xf32>
    %cst_288 = arith.constant dense<0.000000e+00> : vector<4x32xf32>
    %393 = tpu.matmul %384, %392, %cst_288 {dimension_numbers = #tpu.dot_dimension_numbers<[1], [0], [0], [1], [0, 0, 1, 1], [], []>} : vector<4x64xf32>, vector<64x32xf32>, vector<4x32xf32> -> vector<4x32xf32>
    %c1_289 = arith.constant 1 : index
    %c0_290 = arith.constant 0 : index
    %c0_291 = arith.constant 0 : index
    %394 = vector.load %arg30[%c1_289, %c0_290, %c0_291] : memref<3x4x4xf32, #tpu.memory_space<vmem>>, vector<1x4x4xf32>
    %395 = vector.shape_cast %394 : vector<1x4x4xf32> to vector<4x4xf32>
    %cst_292 = arith.constant dense<0.000000e+00> : vector<4x32xf32>
    %396 = tpu.matmul %395, %393, %cst_292 {dimension_numbers = #tpu.dot_dimension_numbers<[1], [0], [0], [1], [0, 0, 1, 1], [], []>} : vector<4x4xf32>, vector<4x32xf32>, vector<4x32xf32> -> vector<4x32xf32>
    %397 = arith.addf %390, %396 : vector<4x32xf32>
    %c2_293 = arith.constant 2 : index
    %c0_294 = arith.constant 0 : index
    %c0_295 = arith.constant 0 : index
    %398 = vector.load %arg31[%c2_293, %c0_294, %c0_295] : memref<3x64x32xf32, #tpu.memory_space<vmem>>, vector<1x64x32xf32>
    %399 = vector.shape_cast %398 : vector<1x64x32xf32> to vector<64x32xf32>
    %cst_296 = arith.constant dense<0.000000e+00> : vector<4x32xf32>
    %400 = tpu.matmul %384, %399, %cst_296 {dimension_numbers = #tpu.dot_dimension_numbers<[1], [0], [0], [1], [0, 0, 1, 1], [], []>} : vector<4x64xf32>, vector<64x32xf32>, vector<4x32xf32> -> vector<4x32xf32>
    %c2_297 = arith.constant 2 : index
    %c0_298 = arith.constant 0 : index
    %c0_299 = arith.constant 0 : index
    %401 = vector.load %arg30[%c2_297, %c0_298, %c0_299] : memref<3x4x4xf32, #tpu.memory_space<vmem>>, vector<1x4x4xf32>
    %402 = vector.shape_cast %401 : vector<1x4x4xf32> to vector<4x4xf32>
    %cst_300 = arith.constant dense<0.000000e+00> : vector<4x32xf32>
    %403 = tpu.matmul %402, %400, %cst_300 {dimension_numbers = #tpu.dot_dimension_numbers<[1], [0], [0], [1], [0, 0, 1, 1], [], []>} : vector<4x4xf32>, vector<4x32xf32>, vector<4x32xf32> -> vector<4x32xf32>
    %404 = arith.addf %397, %403 : vector<4x32xf32>
    %c0_301 = arith.constant 0 : index
    %c0_302 = arith.constant 0 : index
    %405 = vector.load %arg32[%c0_301, %c0_302] : memref<1x32xf32, #tpu.memory_space<vmem>>, vector<1x32xf32>
    %406 = vector.broadcast %405 : vector<1x32xf32> to vector<4x32xf32>
    %407 = arith.addf %404, %406 : vector<4x32xf32>
    %cst_303 = arith.constant 5.000000e-01 : f32
    %408 = vector.broadcast %cst_303 : f32 to vector<4x32xf32>
    %409 = arith.mulf %408, %407 : vector<4x32xf32>
    %cst_304 = arith.constant 1.41421354 : f32
    %410 = vector.broadcast %cst_304 : f32 to vector<4x32xf32>
    %411 = arith.divf %407, %410 : vector<4x32xf32>
    %412 = math.absf %411 : vector<4x32xf32>
    %cst_305 = arith.constant 0.327591091 : f32
    %413 = vector.broadcast %cst_305 : f32 to vector<4x32xf32>
    %414 = arith.mulf %413, %412 : vector<4x32xf32>
    %cst_306 = arith.constant 1.000000e+00 : f32
    %415 = vector.broadcast %cst_306 : f32 to vector<4x32xf32>
    %416 = arith.addf %415, %414 : vector<4x32xf32>
    %cst_307 = arith.constant 1.000000e+00 : f32
    %417 = vector.broadcast %cst_307 : f32 to vector<4x32xf32>
    %418 = arith.divf %417, %416 : vector<4x32xf32>
    %cst_308 = arith.constant 1.06140542 : f32
    %419 = vector.broadcast %cst_308 : f32 to vector<4x32xf32>
    %420 = arith.mulf %418, %419 : vector<4x32xf32>
    %cst_309 = arith.constant -1.45315206 : f32
    %421 = vector.broadcast %cst_309 : f32 to vector<4x32xf32>
    %422 = arith.addf %421, %420 : vector<4x32xf32>
    %423 = arith.mulf %418, %422 : vector<4x32xf32>
    %cst_310 = arith.constant 1.42141378 : f32
    %424 = vector.broadcast %cst_310 : f32 to vector<4x32xf32>
    %425 = arith.addf %424, %423 : vector<4x32xf32>
    %426 = arith.mulf %418, %425 : vector<4x32xf32>
    %cst_311 = arith.constant -0.284496725 : f32
    %427 = vector.broadcast %cst_311 : f32 to vector<4x32xf32>
    %428 = arith.addf %427, %426 : vector<4x32xf32>
    %429 = arith.mulf %418, %428 : vector<4x32xf32>
    %cst_312 = arith.constant 0.254829586 : f32
    %430 = vector.broadcast %cst_312 : f32 to vector<4x32xf32>
    %431 = arith.addf %430, %429 : vector<4x32xf32>
    %432 = arith.mulf %418, %431 : vector<4x32xf32>
    %cst_313 = arith.constant 0.000000e+00 : f32
    %433 = vector.broadcast %cst_313 : f32 to vector<4x32xf32>
    %434 = arith.subf %433, %412 : vector<4x32xf32>
    %435 = arith.mulf %434, %412 : vector<4x32xf32>
    %436 = math.exp %435 : vector<4x32xf32>
    %437 = arith.mulf %432, %436 : vector<4x32xf32>
    %cst_314 = arith.constant 1.000000e+00 : f32
    %438 = vector.broadcast %cst_314 : f32 to vector<4x32xf32>
    %439 = arith.subf %438, %437 : vector<4x32xf32>
    %cst_315 = arith.constant 0.000000e+00 : f32
    %440 = vector.broadcast %cst_315 : f32 to vector<4x32xf32>
    %441 = arith.cmpf olt, %411, %440 : vector<4x32xf32>
    %cst_316 = arith.constant 0.000000e+00 : f32
    %442 = vector.broadcast %cst_316 : f32 to vector<4x32xf32>
    %443 = arith.subf %442, %439 : vector<4x32xf32>
    %444 = arith.select %441, %443, %439 : vector<4x32xi1>, vector<4x32xf32>
    %cst_317 = arith.constant 1.000000e+00 : f32
    %445 = vector.broadcast %cst_317 : f32 to vector<4x32xf32>
    %446 = arith.addf %445, %444 : vector<4x32xf32>
    %447 = arith.mulf %409, %446 : vector<4x32xf32>
    %c0_318 = arith.constant 0 : index
    %c0_319 = arith.constant 0 : index
    %448 = vector.load %arg33[%c0_318, %c0_319] : memref<8x4xf32, #tpu.memory_space<vmem>>, vector<8x4xf32>
    %cst_320 = arith.constant dense<0.000000e+00> : vector<8x32xf32>
    %449 = tpu.matmul %448, %447, %cst_320 {dimension_numbers = #tpu.dot_dimension_numbers<[1], [0], [0], [1], [0, 0, 1, 1], [], []>} : vector<8x4xf32>, vector<4x32xf32>, vector<8x32xf32> -> vector<8x32xf32>
    %c0_321 = arith.constant 0 : index
    %c0_322 = arith.constant 0 : index
    %450 = vector.load %arg34[%c0_321, %c0_322] : memref<32x64xf32, #tpu.memory_space<vmem>>, vector<32x64xf32>
    %cst_323 = arith.constant dense<0.000000e+00> : vector<8x64xf32>
    %451 = tpu.matmul %449, %450, %cst_323 {dimension_numbers = #tpu.dot_dimension_numbers<[1], [0], [0], [1], [0, 0, 1, 1], [], []>} : vector<8x32xf32>, vector<32x64xf32>, vector<8x64xf32> -> vector<8x64xf32>
    %c0_324 = arith.constant 0 : index
    %c0_325 = arith.constant 0 : index
    %c0_326 = arith.constant 0 : index
    %452 = vector.load %arg36[%c0_324, %c0_325, %c0_326] : memref<3x64x32xf32, #tpu.memory_space<vmem>>, vector<1x64x32xf32>
    %453 = vector.shape_cast %452 : vector<1x64x32xf32> to vector<64x32xf32>
    %cst_327 = arith.constant dense<0.000000e+00> : vector<8x32xf32>
    %454 = tpu.matmul %451, %453, %cst_327 {dimension_numbers = #tpu.dot_dimension_numbers<[1], [0], [0], [1], [0, 0, 1, 1], [], []>} : vector<8x64xf32>, vector<64x32xf32>, vector<8x32xf32> -> vector<8x32xf32>
    %c0_328 = arith.constant 0 : index
    %c0_329 = arith.constant 0 : index
    %c0_330 = arith.constant 0 : index
    %455 = vector.load %arg35[%c0_328, %c0_329, %c0_330] : memref<3x8x8xf32, #tpu.memory_space<vmem>>, vector<1x8x8xf32>
    %456 = vector.shape_cast %455 : vector<1x8x8xf32> to vector<8x8xf32>
    %cst_331 = arith.constant dense<0.000000e+00> : vector<8x32xf32>
    %457 = tpu.matmul %456, %454, %cst_331 {dimension_numbers = #tpu.dot_dimension_numbers<[1], [0], [0], [1], [0, 0, 1, 1], [], []>} : vector<8x8xf32>, vector<8x32xf32>, vector<8x32xf32> -> vector<8x32xf32>
    %c1_332 = arith.constant 1 : index
    %c0_333 = arith.constant 0 : index
    %c0_334 = arith.constant 0 : index
    %458 = vector.load %arg36[%c1_332, %c0_333, %c0_334] : memref<3x64x32xf32, #tpu.memory_space<vmem>>, vector<1x64x32xf32>
    %459 = vector.shape_cast %458 : vector<1x64x32xf32> to vector<64x32xf32>
    %cst_335 = arith.constant dense<0.000000e+00> : vector<8x32xf32>
    %460 = tpu.matmul %451, %459, %cst_335 {dimension_numbers = #tpu.dot_dimension_numbers<[1], [0], [0], [1], [0, 0, 1, 1], [], []>} : vector<8x64xf32>, vector<64x32xf32>, vector<8x32xf32> -> vector<8x32xf32>
    %c1_336 = arith.constant 1 : index
    %c0_337 = arith.constant 0 : index
    %c0_338 = arith.constant 0 : index
    %461 = vector.load %arg35[%c1_336, %c0_337, %c0_338] : memref<3x8x8xf32, #tpu.memory_space<vmem>>, vector<1x8x8xf32>
    %462 = vector.shape_cast %461 : vector<1x8x8xf32> to vector<8x8xf32>
    %cst_339 = arith.constant dense<0.000000e+00> : vector<8x32xf32>
    %463 = tpu.matmul %462, %460, %cst_339 {dimension_numbers = #tpu.dot_dimension_numbers<[1], [0], [0], [1], [0, 0, 1, 1], [], []>} : vector<8x8xf32>, vector<8x32xf32>, vector<8x32xf32> -> vector<8x32xf32>
    %464 = arith.addf %457, %463 : vector<8x32xf32>
    %c2_340 = arith.constant 2 : index
    %c0_341 = arith.constant 0 : index
    %c0_342 = arith.constant 0 : index
    %465 = vector.load %arg36[%c2_340, %c0_341, %c0_342] : memref<3x64x32xf32, #tpu.memory_space<vmem>>, vector<1x64x32xf32>
    %466 = vector.shape_cast %465 : vector<1x64x32xf32> to vector<64x32xf32>
    %cst_343 = arith.constant dense<0.000000e+00> : vector<8x32xf32>
    %467 = tpu.matmul %451, %466, %cst_343 {dimension_numbers = #tpu.dot_dimension_numbers<[1], [0], [0], [1], [0, 0, 1, 1], [], []>} : vector<8x64xf32>, vector<64x32xf32>, vector<8x32xf32> -> vector<8x32xf32>
    %c2_344 = arith.constant 2 : index
    %c0_345 = arith.constant 0 : index
    %c0_346 = arith.constant 0 : index
    %468 = vector.load %arg35[%c2_344, %c0_345, %c0_346] : memref<3x8x8xf32, #tpu.memory_space<vmem>>, vector<1x8x8xf32>
    %469 = vector.shape_cast %468 : vector<1x8x8xf32> to vector<8x8xf32>
    %cst_347 = arith.constant dense<0.000000e+00> : vector<8x32xf32>
    %470 = tpu.matmul %469, %467, %cst_347 {dimension_numbers = #tpu.dot_dimension_numbers<[1], [0], [0], [1], [0, 0, 1, 1], [], []>} : vector<8x8xf32>, vector<8x32xf32>, vector<8x32xf32> -> vector<8x32xf32>
    %471 = arith.addf %464, %470 : vector<8x32xf32>
    %c0_348 = arith.constant 0 : index
    %c0_349 = arith.constant 0 : index
    %472 = vector.load %arg37[%c0_348, %c0_349] : memref<1x32xf32, #tpu.memory_space<vmem>>, vector<1x32xf32>
    %473 = vector.broadcast %472 : vector<1x32xf32> to vector<8x32xf32>
    %474 = arith.addf %471, %473 : vector<8x32xf32>
    %cst_350 = arith.constant 5.000000e-01 : f32
    %475 = vector.broadcast %cst_350 : f32 to vector<8x32xf32>
    %476 = arith.mulf %475, %474 : vector<8x32xf32>
    %cst_351 = arith.constant 1.41421354 : f32
    %477 = vector.broadcast %cst_351 : f32 to vector<8x32xf32>
    %478 = arith.divf %474, %477 : vector<8x32xf32>
    %479 = math.absf %478 : vector<8x32xf32>
    %cst_352 = arith.constant 0.327591091 : f32
    %480 = vector.broadcast %cst_352 : f32 to vector<8x32xf32>
    %481 = arith.mulf %480, %479 : vector<8x32xf32>
    %cst_353 = arith.constant 1.000000e+00 : f32
    %482 = vector.broadcast %cst_353 : f32 to vector<8x32xf32>
    %483 = arith.addf %482, %481 : vector<8x32xf32>
    %cst_354 = arith.constant 1.000000e+00 : f32
    %484 = vector.broadcast %cst_354 : f32 to vector<8x32xf32>
    %485 = arith.divf %484, %483 : vector<8x32xf32>
    %cst_355 = arith.constant 1.06140542 : f32
    %486 = vector.broadcast %cst_355 : f32 to vector<8x32xf32>
    %487 = arith.mulf %485, %486 : vector<8x32xf32>
    %cst_356 = arith.constant -1.45315206 : f32
    %488 = vector.broadcast %cst_356 : f32 to vector<8x32xf32>
    %489 = arith.addf %488, %487 : vector<8x32xf32>
    %490 = arith.mulf %485, %489 : vector<8x32xf32>
    %cst_357 = arith.constant 1.42141378 : f32
    %491 = vector.broadcast %cst_357 : f32 to vector<8x32xf32>
    %492 = arith.addf %491, %490 : vector<8x32xf32>
    %493 = arith.mulf %485, %492 : vector<8x32xf32>
    %cst_358 = arith.constant -0.284496725 : f32
    %494 = vector.broadcast %cst_358 : f32 to vector<8x32xf32>
    %495 = arith.addf %494, %493 : vector<8x32xf32>
    %496 = arith.mulf %485, %495 : vector<8x32xf32>
    %cst_359 = arith.constant 0.254829586 : f32
    %497 = vector.broadcast %cst_359 : f32 to vector<8x32xf32>
    %498 = arith.addf %497, %496 : vector<8x32xf32>
    %499 = arith.mulf %485, %498 : vector<8x32xf32>
    %cst_360 = arith.constant 0.000000e+00 : f32
    %500 = vector.broadcast %cst_360 : f32 to vector<8x32xf32>
    %501 = arith.subf %500, %479 : vector<8x32xf32>
    %502 = arith.mulf %501, %479 : vector<8x32xf32>
    %503 = math.exp %502 : vector<8x32xf32>
    %504 = arith.mulf %499, %503 : vector<8x32xf32>
    %cst_361 = arith.constant 1.000000e+00 : f32
    %505 = vector.broadcast %cst_361 : f32 to vector<8x32xf32>
    %506 = arith.subf %505, %504 : vector<8x32xf32>
    %cst_362 = arith.constant 0.000000e+00 : f32
    %507 = vector.broadcast %cst_362 : f32 to vector<8x32xf32>
    %508 = arith.cmpf olt, %478, %507 : vector<8x32xf32>
    %cst_363 = arith.constant 0.000000e+00 : f32
    %509 = vector.broadcast %cst_363 : f32 to vector<8x32xf32>
    %510 = arith.subf %509, %506 : vector<8x32xf32>
    %511 = arith.select %508, %510, %506 : vector<8x32xi1>, vector<8x32xf32>
    %cst_364 = arith.constant 1.000000e+00 : f32
    %512 = vector.broadcast %cst_364 : f32 to vector<8x32xf32>
    %513 = arith.addf %512, %511 : vector<8x32xf32>
    %514 = arith.mulf %476, %513 : vector<8x32xf32>
    %c0_365 = arith.constant 0 : index
    %c0_366 = arith.constant 0 : index
    %515 = vector.load %arg38[%c0_365, %c0_366] : memref<16x8xf32, #tpu.memory_space<vmem>>, vector<16x8xf32>
    %cst_367 = arith.constant dense<0.000000e+00> : vector<16x32xf32>
    %516 = tpu.matmul %515, %514, %cst_367 {dimension_numbers = #tpu.dot_dimension_numbers<[1], [0], [0], [1], [0, 0, 1, 1], [], []>} : vector<16x8xf32>, vector<8x32xf32>, vector<16x32xf32> -> vector<16x32xf32>
    %c0_368 = arith.constant 0 : index
    %c0_369 = arith.constant 0 : index
    %517 = vector.load %arg39[%c0_368, %c0_369] : memref<32x64xf32, #tpu.memory_space<vmem>>, vector<32x64xf32>
    %cst_370 = arith.constant dense<0.000000e+00> : vector<16x64xf32>
    %518 = tpu.matmul %516, %517, %cst_370 {dimension_numbers = #tpu.dot_dimension_numbers<[1], [0], [0], [1], [0, 0, 1, 1], [], []>} : vector<16x32xf32>, vector<32x64xf32>, vector<16x64xf32> -> vector<16x64xf32>
    %c0_371 = arith.constant 0 : index
    %c0_372 = arith.constant 0 : index
    %c0_373 = arith.constant 0 : index
    %519 = vector.load %arg41[%c0_371, %c0_372, %c0_373] : memref<3x64x16xf32, #tpu.memory_space<vmem>>, vector<1x64x16xf32>
    %520 = vector.shape_cast %519 : vector<1x64x16xf32> to vector<64x16xf32>
    %cst_374 = arith.constant dense<0.000000e+00> : vector<16x16xf32>
    %521 = tpu.matmul %518, %520, %cst_374 {dimension_numbers = #tpu.dot_dimension_numbers<[1], [0], [0], [1], [0, 0, 1, 1], [], []>} : vector<16x64xf32>, vector<64x16xf32>, vector<16x16xf32> -> vector<16x16xf32>
    %c0_375 = arith.constant 0 : index
    %c0_376 = arith.constant 0 : index
    %c0_377 = arith.constant 0 : index
    %522 = vector.load %arg40[%c0_375, %c0_376, %c0_377] : memref<3x16x16xf32, #tpu.memory_space<vmem>>, vector<1x16x16xf32>
    %523 = vector.shape_cast %522 : vector<1x16x16xf32> to vector<16x16xf32>
    %cst_378 = arith.constant dense<0.000000e+00> : vector<16x16xf32>
    %524 = tpu.matmul %523, %521, %cst_378 {dimension_numbers = #tpu.dot_dimension_numbers<[1], [0], [0], [1], [0, 0, 1, 1], [], []>} : vector<16x16xf32>, vector<16x16xf32>, vector<16x16xf32> -> vector<16x16xf32>
    %c1_379 = arith.constant 1 : index
    %c0_380 = arith.constant 0 : index
    %c0_381 = arith.constant 0 : index
    %525 = vector.load %arg41[%c1_379, %c0_380, %c0_381] : memref<3x64x16xf32, #tpu.memory_space<vmem>>, vector<1x64x16xf32>
    %526 = vector.shape_cast %525 : vector<1x64x16xf32> to vector<64x16xf32>
    %cst_382 = arith.constant dense<0.000000e+00> : vector<16x16xf32>
    %527 = tpu.matmul %518, %526, %cst_382 {dimension_numbers = #tpu.dot_dimension_numbers<[1], [0], [0], [1], [0, 0, 1, 1], [], []>} : vector<16x64xf32>, vector<64x16xf32>, vector<16x16xf32> -> vector<16x16xf32>
    %c1_383 = arith.constant 1 : index
    %c0_384 = arith.constant 0 : index
    %c0_385 = arith.constant 0 : index
    %528 = vector.load %arg40[%c1_383, %c0_384, %c0_385] : memref<3x16x16xf32, #tpu.memory_space<vmem>>, vector<1x16x16xf32>
    %529 = vector.shape_cast %528 : vector<1x16x16xf32> to vector<16x16xf32>
    %cst_386 = arith.constant dense<0.000000e+00> : vector<16x16xf32>
    %530 = tpu.matmul %529, %527, %cst_386 {dimension_numbers = #tpu.dot_dimension_numbers<[1], [0], [0], [1], [0, 0, 1, 1], [], []>} : vector<16x16xf32>, vector<16x16xf32>, vector<16x16xf32> -> vector<16x16xf32>
    %531 = arith.addf %524, %530 : vector<16x16xf32>
    %c2_387 = arith.constant 2 : index
    %c0_388 = arith.constant 0 : index
    %c0_389 = arith.constant 0 : index
    %532 = vector.load %arg41[%c2_387, %c0_388, %c0_389] : memref<3x64x16xf32, #tpu.memory_space<vmem>>, vector<1x64x16xf32>
    %533 = vector.shape_cast %532 : vector<1x64x16xf32> to vector<64x16xf32>
    %cst_390 = arith.constant dense<0.000000e+00> : vector<16x16xf32>
    %534 = tpu.matmul %518, %533, %cst_390 {dimension_numbers = #tpu.dot_dimension_numbers<[1], [0], [0], [1], [0, 0, 1, 1], [], []>} : vector<16x64xf32>, vector<64x16xf32>, vector<16x16xf32> -> vector<16x16xf32>
    %c2_391 = arith.constant 2 : index
    %c0_392 = arith.constant 0 : index
    %c0_393 = arith.constant 0 : index
    %535 = vector.load %arg40[%c2_391, %c0_392, %c0_393] : memref<3x16x16xf32, #tpu.memory_space<vmem>>, vector<1x16x16xf32>
    %536 = vector.shape_cast %535 : vector<1x16x16xf32> to vector<16x16xf32>
    %cst_394 = arith.constant dense<0.000000e+00> : vector<16x16xf32>
    %537 = tpu.matmul %536, %534, %cst_394 {dimension_numbers = #tpu.dot_dimension_numbers<[1], [0], [0], [1], [0, 0, 1, 1], [], []>} : vector<16x16xf32>, vector<16x16xf32>, vector<16x16xf32> -> vector<16x16xf32>
    %538 = arith.addf %531, %537 : vector<16x16xf32>
    %c0_395 = arith.constant 0 : index
    %c0_396 = arith.constant 0 : index
    %539 = vector.load %arg42[%c0_395, %c0_396] : memref<1x16xf32, #tpu.memory_space<vmem>>, vector<1x16xf32>
    %540 = vector.broadcast %539 : vector<1x16xf32> to vector<16x16xf32>
    %541 = arith.addf %538, %540 : vector<16x16xf32>
    %c0_397 = arith.constant 0 : index
    %c0_398 = arith.constant 0 : index
    %c0_399 = arith.constant 0 : index
    %542 = vector.load %arg43[%c0_397, %c0_398, %c0_399] : memref<1x16x16xf32, #tpu.memory_space<vmem>>, vector<1x16x16xf32>
    %543 = vector.shape_cast %542 : vector<1x16x16xf32> to vector<16x16xf32>
    %544 = vector.shape_cast %541 : vector<16x16xf32> to vector<1x16x16xf32>
    tpu.vector_store %arg43[%c0_397, %c0_398, %c0_399], %544 {strides = array<i32>} : memref<1x16x16xf32, #tpu.memory_space<vmem>>, vector<1x16x16xf32>,
    return
  }
  func.func @transform_0(%arg0: i32) -> (i32, i32, i32) {
    %c0_i32 = arith.constant 0 : i32
    %c0_i32_0 = arith.constant 0 : i32
    %c0_i32_1 = arith.constant 0 : i32
    return %arg0, %c0_i32, %c0_i32_0 : i32, i32, i32
  }
  func.func @transform_1(%arg0: i32) -> (i32, i32, i32) {
    %c0_i32 = arith.constant 0 : i32
    %c0_i32_0 = arith.constant 0 : i32
    %c0_i32_1 = arith.constant 0 : i32
    return %arg0, %c0_i32, %c0_i32_0 : i32, i32, i32
  }
  func.func @transform_2(%arg0: i32) -> (i32, i32, i32) {
    %c0_i32 = arith.constant 0 : i32
    %c0_i32_0 = arith.constant 0 : i32
    %c0_i32_1 = arith.constant 0 : i32
    %c0_i32_2 = arith.constant 0 : i32
    return %c0_i32, %c0_i32_0, %c0_i32_1 : i32, i32, i32
  }
  func.func @transform_3(%arg0: i32) -> (i32, i32, i32) {
    %c0_i32 = arith.constant 0 : i32
    %c0_i32_0 = arith.constant 0 : i32
    %c0_i32_1 = arith.constant 0 : i32
    %c0_i32_2 = arith.constant 0 : i32
    return %c0_i32, %c0_i32_0, %c0_i32_1 : i32, i32, i32
  }
  func.func @transform_4(%arg0: i32) -> (i32, i32) {
    %c0_i32 = arith.constant 0 : i32
    %c0_i32_0 = arith.constant 0 : i32
    %c0_i32_1 = arith.constant 0 : i32
    return %c0_i32, %c0_i32_0 : i32, i32
  }
  func.func @transform_5(%arg0: i32) -> (i32, i32, i32) {
    %c0_i32 = arith.constant 0 : i32
    %c0_i32_0 = arith.constant 0 : i32
    %c0_i32_1 = arith.constant 0 : i32
    %c0_i32_2 = arith.constant 0 : i32
    return %c0_i32, %c0_i32_0, %c0_i32_1 : i32, i32, i32
  }
  func.func @transform_6(%arg0: i32) -> (i32, i32, i32) {
    %c0_i32 = arith.constant 0 : i32
    %c0_i32_0 = arith.constant 0 : i32
    %c0_i32_1 = arith.constant 0 : i32
    %c0_i32_2 = arith.constant 0 : i32
    return %c0_i32, %c0_i32_0, %c0_i32_1 : i32, i32, i32
  }
  func.func @transform_7(%arg0: i32) -> (i32, i32) {
    %c0_i32 = arith.constant 0 : i32
    %c0_i32_0 = arith.constant 0 : i32
    %c0_i32_1 = arith.constant 0 : i32
    return %c0_i32, %c0_i32_0 : i32, i32
  }
  func.func @transform_8(%arg0: i32) -> (i32, i32, i32) {
    %c0_i32 = arith.constant 0 : i32
    %c0_i32_0 = arith.constant 0 : i32
    %c0_i32_1 = arith.constant 0 : i32
    %c0_i32_2 = arith.constant 0 : i32
    return %c0_i32, %c0_i32_0, %c0_i32_1 : i32, i32, i32
  }
  func.func @transform_9(%arg0: i32) -> (i32, i32, i32) {
    %c0_i32 = arith.constant 0 : i32
    %c0_i32_0 = arith.constant 0 : i32
    %c0_i32_1 = arith.constant 0 : i32
    %c0_i32_2 = arith.constant 0 : i32
    return %c0_i32, %c0_i32_0, %c0_i32_1 : i32, i32, i32
  }
  func.func @transform_10(%arg0: i32) -> (i32, i32, i32) {
    %c0_i32 = arith.constant 0 : i32
    %c0_i32_0 = arith.constant 0 : i32
    %c0_i32_1 = arith.constant 0 : i32
    %c0_i32_2 = arith.constant 0 : i32
    return %c0_i32, %c0_i32_0, %c0_i32_1 : i32, i32, i32
  }
  func.func @transform_11(%arg0: i32) -> (i32, i32, i32) {
    %c0_i32 = arith.constant 0 : i32
    %c0_i32_0 = arith.constant 0 : i32
    %c0_i32_1 = arith.constant 0 : i32
    %c0_i32_2 = arith.constant 0 : i32
    return %c0_i32, %c0_i32_0, %c0_i32_1 : i32, i32, i32
  }
  func.func @transform_12(%arg0: i32) -> (i32, i32) {
    %c0_i32 = arith.constant 0 : i32
    %c0_i32_0 = arith.constant 0 : i32
    %c0_i32_1 = arith.constant 0 : i32
    return %c0_i32, %c0_i32_0 : i32, i32
  }
  func.func @transform_13(%arg0: i32) -> (i32, i32, i32) {
    %c0_i32 = arith.constant 0 : i32
    %c0_i32_0 = arith.constant 0 : i32
    %c0_i32_1 = arith.constant 0 : i32
    %c0_i32_2 = arith.constant 0 : i32
    return %c0_i32, %c0_i32_0, %c0_i32_1 : i32, i32, i32
  }
  func.func @transform_14(%arg0: i32) -> (i32, i32, i32) {
    %c0_i32 = arith.constant 0 : i32
    %c0_i32_0 = arith.constant 0 : i32
    %c0_i32_1 = arith.constant 0 : i32
    %c0_i32_2 = arith.constant 0 : i32
    return %c0_i32, %c0_i32_0, %c0_i32_1 : i32, i32, i32
  }
  func.func @transform_15(%arg0: i32) -> (i32, i32, i32) {
    %c0_i32 = arith.constant 0 : i32
    %c0_i32_0 = arith.constant 0 : i32
    %c0_i32_1 = arith.constant 0 : i32
    %c0_i32_2 = arith.constant 0 : i32
    return %c0_i32, %c0_i32_0, %c0_i32_1 : i32, i32, i32
  }
  func.func @transform_16(%arg0: i32) -> (i32, i32, i32) {
    %c0_i32 = arith.constant 0 : i32
    %c0_i32_0 = arith.constant 0 : i32
    %c0_i32_1 = arith.constant 0 : i32
    %c0_i32_2 = arith.constant 0 : i32
    return %c0_i32, %c0_i32_0, %c0_i32_1 : i32, i32, i32
  }
  func.func @transform_17(%arg0: i32) -> (i32, i32) {
    %c0_i32 = arith.constant 0 : i32
    %c0_i32_0 = arith.constant 0 : i32
    %c0_i32_1 = arith.constant 0 : i32
    return %c0_i32, %c0_i32_0 : i32, i32
  }
  func.func @transform_18(%arg0: i32) -> (i32, i32, i32) {
    %c0_i32 = arith.constant 0 : i32
    %c0_i32_0 = arith.constant 0 : i32
    %c0_i32_1 = arith.constant 0 : i32
    %c0_i32_2 = arith.constant 0 : i32
    return %c0_i32, %c0_i32_0, %c0_i32_1 : i32, i32, i32
  }
  func.func @transform_19(%arg0: i32) -> (i32, i32, i32) {
    %c0_i32 = arith.constant 0 : i32
    %c0_i32_0 = arith.constant 0 : i32
    %c0_i32_1 = arith.constant 0 : i32
    %c0_i32_2 = arith.constant 0 : i32
    return %c0_i32, %c0_i32_0, %c0_i32_1 : i32, i32, i32
  }
  func.func @transform_20(%arg0: i32) -> (i32, i32, i32) {
    %c0_i32 = arith.constant 0 : i32
    %c0_i32_0 = arith.constant 0 : i32
    %c0_i32_1 = arith.constant 0 : i32
    %c0_i32_2 = arith.constant 0 : i32
    return %c0_i32, %c0_i32_0, %c0_i32_1 : i32, i32, i32
  }
  func.func @transform_21(%arg0: i32) -> (i32, i32) {
    %c0_i32 = arith.constant 0 : i32
    %c0_i32_0 = arith.constant 0 : i32
    %c0_i32_1 = arith.constant 0 : i32
    return %c0_i32, %c0_i32_0 : i32, i32
  }
  func.func @transform_22(%arg0: i32) -> (i32, i32, i32) {
    %c0_i32 = arith.constant 0 : i32
    %c0_i32_0 = arith.constant 0 : i32
    %c0_i32_1 = arith.constant 0 : i32
    %c0_i32_2 = arith.constant 0 : i32
    return %c0_i32, %c0_i32_0, %c0_i32_1 : i32, i32, i32
  }
  func.func @transform_23(%arg0: i32) -> (i32, i32) {
    %c0_i32 = arith.constant 0 : i32
    %c0_i32_0 = arith.constant 0 : i32
    %c0_i32_1 = arith.constant 0 : i32
    return %c0_i32, %c0_i32_0 : i32, i32
  }
  func.func @transform_24(%arg0: i32) -> (i32, i32, i32) {
    %c0_i32 = arith.constant 0 : i32
    %c0_i32_0 = arith.constant 0 : i32
    %c0_i32_1 = arith.constant 0 : i32
    %c0_i32_2 = arith.constant 0 : i32
    return %c0_i32, %c0_i32_0, %c0_i32_1 : i32, i32, i32
  }
  func.func @transform_25(%arg0: i32) -> (i32, i32, i32) {
    %c0_i32 = arith.constant 0 : i32
    %c0_i32_0 = arith.constant 0 : i32
    %c0_i32_1 = arith.constant 0 : i32
    %c0_i32_2 = arith.constant 0 : i32
    return %c0_i32, %c0_i32_0, %c0_i32_1 : i32, i32, i32
  }
  func.func @transform_26(%arg0: i32) -> (i32, i32) {
    %c0_i32 = arith.constant 0 : i32
    %c0_i32_0 = arith.constant 0 : i32
    %c0_i32_1 = arith.constant 0 : i32
    return %c0_i32, %c0_i32_0 : i32, i32
  }
  func.func @transform_27(%arg0: i32) -> (i32, i32) {
    %c0_i32 = arith.constant 0 : i32
    %c0_i32_0 = arith.constant 0 : i32
    %c0_i32_1 = arith.constant 0 : i32
    return %c0_i32, %c0_i32_0 : i32, i32
  }
  func.func @transform_28(%arg0: i32) -> (i32, i32) {
    %c0_i32 = arith.constant 0 : i32
    %c0_i32_0 = arith.constant 0 : i32
    %c0_i32_1 = arith.constant 0 : i32
    return %c0_i32, %c0_i32_0 : i32, i32
  }
  func.func @transform_29(%arg0: i32) -> (i32, i32, i32) {
    %c0_i32 = arith.constant 0 : i32
    %c0_i32_0 = arith.constant 0 : i32
    %c0_i32_1 = arith.constant 0 : i32
    %c0_i32_2 = arith.constant 0 : i32
    return %c0_i32, %c0_i32_0, %c0_i32_1 : i32, i32, i32
  }
  func.func @transform_30(%arg0: i32) -> (i32, i32, i32) {
    %c0_i32 = arith.constant 0 : i32
    %c0_i32_0 = arith.constant 0 : i32
    %c0_i32_1 = arith.constant 0 : i32
    %c0_i32_2 = arith.constant 0 : i32
    return %c0_i32, %c0_i32_0, %c0_i32_1 : i32, i32, i32
  }
  func.func @transform_31(%arg0: i32) -> (i32, i32) {
    %c0_i32 = arith.constant 0 : i32
    %c0_i32_0 = arith.constant 0 : i32
    %c0_i32_1 = arith.constant 0 : i32
    return %c0_i32, %c0_i32_0 : i32, i32
  }
  func.func @transform_32(%arg0: i32) -> (i32, i32) {
    %c0_i32 = arith.constant 0 : i32
    %c0_i32_0 = arith.constant 0 : i32
    %c0_i32_1 = arith.constant 0 : i32
    return %c0_i32, %c0_i32_0 : i32, i32
  }
  func.func @transform_33(%arg0: i32) -> (i32, i32) {
    %c0_i32 = arith.constant 0 : i32
    %c0_i32_0 = arith.constant 0 : i32
    %c0_i32_1 = arith.constant 0 : i32
    return %c0_i32, %c0_i32_0 : i32, i32
  }
  func.func @transform_34(%arg0: i32) -> (i32, i32, i32) {
    %c0_i32 = arith.constant 0 : i32
    %c0_i32_0 = arith.constant 0 : i32
    %c0_i32_1 = arith.constant 0 : i32
    %c0_i32_2 = arith.constant 0 : i32
    return %c0_i32, %c0_i32_0, %c0_i32_1 : i32, i32, i32
  }
  func.func @transform_35(%arg0: i32) -> (i32, i32, i32) {
    %c0_i32 = arith.constant 0 : i32
    %c0_i32_0 = arith.constant 0 : i32
    %c0_i32_1 = arith.constant 0 : i32
    %c0_i32_2 = arith.constant 0 : i32
    return %c0_i32, %c0_i32_0, %c0_i32_1 : i32, i32, i32
  }
  func.func @transform_36(%arg0: i32) -> (i32, i32) {
    %c0_i32 = arith.constant 0 : i32
    %c0_i32_0 = arith.constant 0 : i32
    %c0_i32_1 = arith.constant 0 : i32
    return %c0_i32, %c0_i32_0 : i32, i32
  }
  func.func @transform_37(%arg0: i32) -> (i32, i32) {
    %c0_i32 = arith.constant 0 : i32
    %c0_i32_0 = arith.constant 0 : i32
    %c0_i32_1 = arith.constant 0 : i32
    return %c0_i32, %c0_i32_0 : i32, i32
  }
  func.func @transform_38(%arg0: i32) -> (i32, i32) {
    %c0_i32 = arith.constant 0 : i32
    %c0_i32_0 = arith.constant 0 : i32
    %c0_i32_1 = arith.constant 0 : i32
    return %c0_i32, %c0_i32_0 : i32, i32
  }
  func.func @transform_39(%arg0: i32) -> (i32, i32, i32) {
    %c0_i32 = arith.constant 0 : i32
    %c0_i32_0 = arith.constant 0 : i32
    %c0_i32_1 = arith.constant 0 : i32
    %c0_i32_2 = arith.constant 0 : i32
    return %c0_i32, %c0_i32_0, %c0_i32_1 : i32, i32, i32
  }
  func.func @transform_40(%arg0: i32) -> (i32, i32, i32) {
    %c0_i32 = arith.constant 0 : i32
    %c0_i32_0 = arith.constant 0 : i32
    %c0_i32_1 = arith.constant 0 : i32
    %c0_i32_2 = arith.constant 0 : i32
    return %c0_i32, %c0_i32_0, %c0_i32_1 : i32, i32, i32
  }
  func.func @transform_41(%arg0: i32) -> (i32, i32) {
    %c0_i32 = arith.constant 0 : i32
    %c0_i32_0 = arith.constant 0 : i32
    %c0_i32_1 = arith.constant 0 : i32
    return %c0_i32, %c0_i32_0 : i32, i32
  }
  func.func @transform_42(%arg0: i32) -> (i32, i32, i32) {
    %c0_i32 = arith.constant 0 : i32
    %c0_i32_0 = arith.constant 0 : i32
    %c0_i32_1 = arith.constant 0 : i32
    return %arg0, %c0_i32, %c0_i32_0 : i32, i32, i32
  }
}

</mosaic_0001>

<bundles_post_ra>
// kernel: vae_forward.1
= control target key start
LH: loop header
LB: loop body
LE: loop exit
PB: predicated region body
PF: predicated region fallthrough
CT: control target
= control target key end

     0   :  { %s4312_s6 = smov 1   ;;  %s4313_s10 = smov 2   ;;  %s5143_s0 = inlined_call_operand.smem [shape: u32[43], index: -1, kind: input, shape index: {}] }
   0x1   :  { %s4368_s5 = sld [smem:[%s5143_s0]]   ;;  %s4314_s14 = smov 3  }
   0x2   :  { %s4373_s9 = sld [smem:[%s5143_s0 + %s4312_s6]]   ;;  %s4315_s18 = smov 4  }
   0x3   :  { %s4378_s13 = sld [smem:[%s5143_s0 + %s4313_s10]]   ;;  %s4316_s22 = smov 5  }
   0x4   :  { %s4383_s17 = sld [smem:[%s5143_s0 + %s4314_s14]]   ;;  %s4317_s26 = smov 6  }
   0x5   :  { %s4388_s21 = sld [smem:[%s5143_s0 + %s4315_s18]]   ;;  %s4318_s30 = smov 7  }
   0x6   :  { %s4393_s25 = sld [smem:[%s5143_s0 + %s4316_s22]]   ;;  %s4319_s4 = smov 8  }
   0x7   :  { %5178 = sst [smem:[#allocation5_spill]] %s4368_s5  ;;  %s4320_s10 = smov 9  }
   0x8   :  { %5179 = sst [smem:[#allocation6_spill]] %s4373_s9  ;;  %s4321_s15 = smov 10  }
   0x9   :  { %5180 = sst [smem:[#allocation7_spill]] %s4378_s13  ;;  %s4322_s20 = smov 11  }
   0xa   :  { %s4398_s29 = sld [smem:[%s5143_s0 + %s4317_s26]]   ;;  %s4323_s26 = smov 12  }
   0xb   :  { %s4403_s3 = sld [smem:[%s5143_s0 + %s4318_s30]]   ;;  %s4324_s1 = smov 13  }
   0xc   :  { %s4408_s8 = sld [smem:[%s5143_s0 + %s4319_s4]]   ;;  %s4325_s7 = smov 14  }
   0xd   :  { %s4413_s14 = sld [smem:[%s5143_s0 + %s4320_s10]]   ;;  %s4327_s22 = smov 16  }
   0xe   :  { %s4418_s19 = sld [smem:[%s5143_s0 + %s4321_s15]]   ;;  %s4326_s15 = smov 15  }
   0xf   :  { %s4423_s24 = sld [smem:[%s5143_s0 + %s4322_s20]]   ;;  %s4328_s28 = smov 17  }
  0x10   :  { %s4428_s30 = sld [smem:[%s5143_s0 + %s4323_s26]]  }
  0x11   :  { %5181 = sst [smem:[#allocation8_spill]] %s4403_s3 }
  0x12   :  { %5182 = sst [smem:[#allocation9_spill]] %s4408_s8 }
  0x13   :  { %s4433_s6 = sld [smem:[%s5143_s0 + %s4324_s1]]  }
  0x14   :  { %s4438_s12 = sld [smem:[%s5143_s0 + %s4325_s7]]   ;;  %s4329_s7 = smov 18  }
  0x15   :  { %s4443_s20 = sld [smem:[%s5143_s0 + %s4326_s15]]   ;;  %s4330_s15 = smov 19  }
  0x16   :  { %s4448_s27 = sld [smem:[%s5143_s0 + %s4327_s22]]   ;;  %s4331_s22 = smov 20  }
  0x17   :  { %s4453_s4 = sld [smem:[%s5143_s0 + %s4328_s28]]   ;;  %s4332_s28 = smov 21  }
  0x18   :  { %s4458_s9 = sld [smem:[%s5143_s0 + %s4329_s7]]   ;;  %s4333_s7 = smov 22  }
  0x19   :  { %5183 = sst [smem:[#allocation10_spill]] %s4433_s6 }
  0x1a   :  { %5184 = sst [smem:[#allocation11_spill]] %s4438_s12 }
  0x1b   :  { %5185 = sst [smem:[#allocation12_spill]] %s4443_s20 }
  0x1c   :  { %5186 = sst [smem:[#allocation13_spill]] %s4448_s27 }
  0x1d   :  { %5187 = sst [smem:[#allocation14_spill]] %s4453_s4 }
  0x1e   :  { %5188 = sst [smem:[#allocation15_spill]] %s4458_s9 }
  0x1f   :  { %s4463_s20 = sld [smem:[%s5143_s0 + %s4330_s15]]   ;;  %s4334_s15 = smov 23  }
  0x20   :  { %s4468_s27 = sld [smem:[%s5143_s0 + %s4331_s22]]   ;;  %s4335_s22 = smov 24  }
  0x21   :  { %s4473_s4 = sld [smem:[%s5143_s0 + %s4332_s28]]   ;;  %s4336_s28 = smov 25  }
  0x22   :  { %s4478_s9 = sld [smem:[%s5143_s0 + %s4333_s7]]   ;;  %s4337_s7 = smov 26  }
  0x25   :  { %5189 = sst [smem:[#allocation16_spill]] %s4463_s20 }
  0x26   :  { %5190 = sst [smem:[#allocation17_spill]] %s4468_s27 }
  0x27   :  { %5191 = sst [smem:[#allocation18_spill]] %s4473_s4 }
  0x28   :  { %5192 = sst [smem:[#allocation19_spill]] %s4478_s9 }
  0x29   :  { %s4483_s20 = sld [smem:[%s5143_s0 + %s4334_s15]]   ;;  %s4338_s15 = smov 27  }
  0x2a   :  { %s4488_s27 = sld [smem:[%s5143_s0 + %s4335_s22]]   ;;  %s4339_s22 = smov 28  }
  0x2b   :  { %s4493_s4 = sld [smem:[%s5143_s0 + %s4336_s28]]   ;;  %s4340_s28 = smov 29  }
  0x2c   :  { %s4498_s9 = sld [smem:[%s5143_s0 + %s4337_s7]]   ;;  %s4341_s7 = smov 30  }
  0x2f   :  { %5193 = sst [smem:[#allocation20_spill]] %s4483_s20 }
  0x30   :  { %5194 = sst [smem:[#allocation21_spill]] %s4488_s27 }
  0x31   :  { %5195 = sst [smem:[#allocation22_spill]] %s4493_s4 }
  0x32   :  { %5196 = sst [smem:[#allocation23_spill]] %s4498_s9 }
  0x33   :  { %s4503_s20 = sld [smem:[%s5143_s0 + %s4338_s15]]   ;;  %s4342_s15 = smov 31  }
  0x34   :  { %s4508_s27 = sld [smem:[%s5143_s0 + %s4339_s22]]   ;;  %s4343_s22 = smov 32  }
  0x35   :  { %s4513_s4 = sld [smem:[%s5143_s0 + %s4340_s28]]   ;;  %s4344_s28 = smov 33  }
  0x36   :  { %s4518_s9 = sld [smem:[%s5143_s0 + %s4341_s7]]   ;;  %s4345_s7 = smov 34  }
  0x39   :  { %5197 = sst [smem:[#allocation24_spill]] %s4503_s20 }
  0x3a   :  { %5198 = sst [smem:[#allocation25_spill]] %s4508_s27 }
  0x3b   :  { %5199 = sst [smem:[#allocation26_spill]] %s4513_s4 }
  0x3c   :  { %5200 = sst [smem:[#allocation27_spill]] %s4518_s9 }
  0x3d   :  { %s4523_s20 = sld [smem:[%s5143_s0 + %s4342_s15]]   ;;  %s4346_s15 = smov 35  }
  0x3e   :  { %s4528_s27 = sld [smem:[%s5143_s0 + %s4343_s22]]   ;;  %s4347_s22 = smov 36  }
  0x3f   :  { %s4533_s4 = sld [smem:[%s5143_s0 + %s4344_s28]]   ;;  %s4348_s28 = smov 37  }
  0x40   :  { %s4538_s9 = sld [smem:[%s5143_s0 + %s4345_s7]]   ;;  %s4349_s7 = smov 38  }
  0x43   :  { %5201 = sst [smem:[#allocation28_spill]] %s4523_s20 }
  0x44   :  { %5202 = sst [smem:[#allocation29_spill]] %s4528_s27 }
  0x45   :  { %5203 = sst [smem:[#allocation30_spill]] %s4533_s4 }
  0x46   :  { %5204 = sst [smem:[#allocation31_spill]] %s4538_s9 }
  0x47   :  { %s4543_s20 = sld [smem:[%s5143_s0 + %s4346_s15]]   ;;  %s4350_s15 = smov 39  }
  0x48   :  { %s4548_s27 = sld [smem:[%s5143_s0 + %s4347_s22]]   ;;  %s4351_s22 = smov 40  }
  0x49   :  { %s4553_s4 = sld [smem:[%s5143_s0 + %s4348_s28]]   ;;  %s4352_s28 = smov 41  }
  0x4a   :  { %s4558_s9 = sld [smem:[%s5143_s0 + %s4349_s7]]   ;;  %s4353_s7 = smov 42  }
  0x4d   :  { %5205 = sst [smem:[#allocation32_spill]] %s4543_s20 }
  0x4e   :  { %5206 = sst [smem:[#allocation33_spill]] %s4548_s27 }
  0x4f   :  { %5207 = sst [smem:[#allocation34_spill]] %s4553_s4 }
  0x50   :  { %5208 = sst [smem:[#allocation35_spill]] %s4558_s9 }
  0x51   :  { %s4563_s20 = sld [smem:[%s5143_s0 + %s4350_s15]]  }
  0x52   :  { %s4568_s27 = sld [smem:[%s5143_s0 + %s4351_s22]]  }
  0x53   :  { %s4573_s4 = sld [smem:[%s5143_s0 + %s4352_s28]]  }
  0x54   :  { %s4578_s9 = sld [smem:[%s5143_s0 + %s4353_s7]]  }
  0x59   :  { %5209 = sst [smem:[#allocation36_spill]] %s4573_s4 }
  0x5a   :  { %90 = vsyncpa [#allocation3], 0 }
  0x5b   :  { %92 = vsyncpa [#allocation3 + $0x1], 0  ;;  %s4580_s15 = smov 0   ;;  %s4582_s16 = smov 0  }
  0x5c   :  { %s4584_s18 = smov 0   ;;  %s4586_s22 = smov 0  }
  0x5d LB: > { %s5210_s13 = sld [smem:[#allocation7_spill]]  ;;  %s4601_s0 = sadd.s32 4294967295, %s4310_s22   ;;  %s4310_s22 = sphi %s4586_s22, %s5247_s22   ;;  %s4306_s18 = sphi %s4584_s18, %s5246_s18   ;;  %s4302_s16 = sphi %s4582_s16, %s5245_s16   ;;  %s4298_s15 = sphi %s4580_s15, %s5244_s15  }
  0x5e   : > { %s5211_s12 = sld [smem:[#allocation11_spill]]  ;;  %s3816_s23 = sadd.s32 4294967294, %s4310_s22  }
  0x5f   : > { %s5212_s8 = sld [smem:[#allocation9_spill]]  ;;  %s4605_s26 = sadd.s32 1, %s4310_s22  }
  0x60   : > { %s5213_s6 = sld [smem:[#allocation10_spill]]  ;;  %s997_s28 = sadd.s32 1, %s4306_s18 }
  0x61   : > { %s994_s1 = ssub.s32 %s4310_s22, %s4605_s26  ;;  %p1007_p0 = scmp.ne.s32.totalorder %s4306_s18, %s4302_s16 }
  0x62   : > { %p995_p1 = scmp.eq.s32.totalorder %s994_s1, 0  ;;  %p1008_p2 = scmp.eq.s32.totalorder %s4601_s0, 1 }
  0x63   : > { %p1013_p3 = scmp.ne.s32.totalorder %s4302_s16, %s4298_s15  ;;  %p1014_p4 = scmp.eq.s32.totalorder %s3816_s23, 1 }
  0x64   : > { %s4616_s2 = scalar_select %p995_p1, %s4306_s18, %s997_s28  }
  0x65   : > { %p4618_p5 = por %p1008_p2, %p1007_p0  ;;  %p4622_p6 = por %p1014_p4, %p1013_p3 }
  0x66   : > { %p3819_p7 = scmp.ge.s32.totalorder %s4310_s22, 1  ;;  %p1166_p8 = scmp.lt.s32.totalorder %s4310_s22, 3 }
  0x68   : > { %p1167_p9 = pnand %p3819_p7, %p1166_p8 }
  0x69   : > { %s5216_s5 = sld [smem:[#allocation5_spill]] (!%p1167_p9)  ;;  %p1271_p10 = scmp.lt.s32.totalorder (!%p1167_p9), %s4601_s0, 1 }
  0x6a   : > { %1170 = sbr.rel (%p1167_p9) target bundleno = 5322 (0x14ca), region = 188  ;;  %s5217_s3 = sld [smem:[#allocation8_spill]] (!%p1167_p9) }
  0x6b   : > { %s5218_s1 = sld [smem:[#allocation13_spill]] (!%p1167_p9) }
  0x6c   : > { %s5243_s4 = sld [smem:[#allocation36_spill]] (!%p1167_p9) }
  0x6f   : > { %v1282_v0 = vld [vmem:[%s4383_s17 + $0x8] sm:$0xff]  ;;  %v3826_v1 = vld [vmem:[%s4383_s17 + $0x18] sm:$0xff]  ;;  %v1281_v2 = vld [vmem:[%s4383_s17] sm:$0xff]  ;;  %s4635_s11 = scalar_select %p1271_p10, %s4601_s0, 1  ;;  %vm1283_vm0 = vcmask 130048   ;;  %vm1476_vm1 = vcmask 523264  }
  0x70   : > { %1304 = vmatpush.msra.mxu0 %v1282_v0  ;;  %1332 = vmatpush.msra.mxu1 %v3826_v1  ;;  %v3825_v3 = vld [vmem:[%s4383_s17 + $0x10] sm:$0xff]  ;;  %v3836_v4 = vld [vmem:[%s4383_s17 + $0x28] sm:$0xff]  ;;  %v3835_v5 = vld [vmem:[%s4383_s17 + $0x20] sm:$0xff]  ;;  %vm1947_vm13 = vcmask 64512  }
  0x71   : > { %s4114_s23 = sshll.u32 %s4635_s11, 4  ;;  %v3829_v12 = vld [vmem:[%s5210_s13 + $0x10] sm:$0xff]  ;;  %v1313_v13 = vld [vmem:[%s5210_s13] sm:$0xff]  ;;  %v1475_v14 = vld [vmem:[%s4398_s29 + $0x38] sm:$0xff] }
  0x72   : > { %1305 = vmatpush.msra.mxu0 %v1281_v2  ;;  %1333 = vmatpush.msra.mxu1 %v3825_v3  ;;  %s1275_s28 = scalar_lea.vmem %s5216_s5, %s4114_s23  ;;  %v3852_v15 = vld [vmem:[%s4398_s29 + $0x78] sm:$0xff]  ;;  %v1474_v16 = vld [vmem:[%s4398_s29 + $0x30] sm:$0xff]  ;;  %v1473_v18 = vld [vmem:[%s4398_s29 + $0x28] sm:$0xff]  ;;  %s5219_s23 = sld [smem:[#allocation12_spill]] }
  0x73   : > { %v1279_v6 = vld [vmem:[%s1275_s28] sm:$0xff]  ;;  %v1280_v7 = vld [vmem:[%s1275_s28 + $0x8] sm:$0xff]  ;;  %v3851_v17 = vld [vmem:[%s4398_s29 + $0x70] sm:$0xff]  ;;  %s5220_s28 = sld [smem:[#allocation14_spill]]  ;;  %s4355_s5 = smov 126  }
  0x74   : > { %1419 = vmatpush.msrb.mxu0 %v3836_v4  ;;  %3827 = vmatmul.msk.f32.vlgmr.msra.gmra.mxu1 %vm1283_vm0, %v1279_v6  ;;  %v3850_v19 = vld [vmem:[%s4398_s29 + $0x68] sm:$0xff]  ;;  %v1472_v21 = vld [vmem:[%s4398_s29 + $0x20] sm:$0xff]  ;;  %v3830_v23 = vld [vmem:[%s5210_s13 + $0x18] sm:$0xff] }
  0x75   : > { %3823 = vmatmul.msk.f32.vlgmr.msra.gmra.mxu0 %vm1283_vm0, %v1279_v6  ;;  %v3849_v22 = vld [vmem:[%s4398_s29 + $0x60] sm:$0xff]  ;;  %v1314_v24 = vld [vmem:[%s5210_s13 + $0x8] sm:$0xff]  ;;  %v1471_v28 = vld [vmem:[%s4398_s29 + $0x18] sm:$0xff] }
  0x76   : > { %1420 = vmatpush.msrb.mxu0 %v3835_v5  ;;  %v3839_v26 = vld [vmem:[%s5210_s13 + $0x20] sm:$0xff]  ;;  %v3840_v27 = vld [vmem:[%s5210_s13 + $0x28] sm:$0xff]  ;;  %v3848_v29 = vld [vmem:[%s4398_s29 + $0x58] sm:$0xff]  ;;  %v4354_v5 = vmov 1.4142135  }
  0x77   : > { %v1470_v30 = vld [vmem:[%s4398_s29 + $0x10] sm:$0xff]  ;;  %v1469_v32 = vld [vmem:[%s4398_s29 + $0x8] sm:$0xff]  ;;  %v1468_v34 = vld [vmem:[%s4398_s29] sm:$0xff]  ;;  %4214 = vrcp.f32 %v4354_v5 }
  0x78   : > { %v3847_v31 = vld [vmem:[%s4398_s29 + $0x50] sm:$0xff]  ;;  %v3846_v33 = vld [vmem:[%s4398_s29 + $0x48] sm:$0xff]  ;;  %v3845_v35 = vld [vmem:[%s4398_s29 + $0x40] sm:$0xff] }
  0x79   : > { %v3868_v36 = vld [vmem:[%s4398_s29 + $0xb8] sm:$0xff]  ;;  %v3867_v37 = vld [vmem:[%s4398_s29 + $0xb0] sm:$0xff]  ;;  %v3866_v38 = vld [vmem:[%s4398_s29 + $0xa8] sm:$0xff] }
  0x7a   : > { %v3865_v39 = vld [vmem:[%s4398_s29 + $0xa0] sm:$0xff]  ;;  %v3864_v40 = vld [vmem:[%s4398_s29 + $0x98] sm:$0xff]  ;;  %v3863_v41 = vld [vmem:[%s4398_s29 + $0x90] sm:$0xff] }
  0x7b   : > { %v3862_v42 = vld [vmem:[%s4398_s29 + $0x88] sm:$0xff]  ;;  %v3861_v43 = vld [vmem:[%s4398_s29 + $0x80] sm:$0xff]  ;;  %v3855_v61 = vld [vmem:[%s4393_s25 + $0x10] sm:$0xff] }
  0x7c   : > { %3828 = vmatmul.msk.f32.gmra.mxu1 %vm1283_vm0, %v1280_v7  ;;  %v4206_v47 = vld [vmem:[%s4388_s21] ss:$0 sm:$0xff]  ;;  %v3856_v0 = vld [vmem:[%s4393_s25 + $0x18] sm:$0xff]  ;;  %v1507_v1 = vld [vmem:[%s4393_s25 + $0x8] sm:$0xff] }
  0x7d   : > { %3824 = vmatmul.msk.f32.gmra.mxu0 %vm1283_vm0, %v1280_v7  ;;  %v1506_v62 = vld [vmem:[%s4393_s25] sm:$0xff]  ;;  %v3872_v4 = vld [vmem:[%s4393_s25 + $0x28] sm:$0xff] }
  0x7e   : > { %v3871_v3 = vld [vmem:[%s4393_s25 + $0x20] sm:$0xff]  ;;  %v1823_v5 = vld [vmem:[%s4413_s14 + $0x68] sm:$0xff] }
  0x85   : > { %3837 = vmatmul.msk.f32.vlgmr.msrb.gmra.mxu0 %vm1283_vm0, %v1279_v6  ;;  %v4215_v6 = vpop.eup %4214 }
  0x86   : > { %vm1680_vm2 = vweird.f32 %v4215_v6 }
  0x8d   : > { %3838 = vmatmul.msk.f32.gmra.mxu0 %vm1283_vm0, %v1280_v7  ;;  %v1676_v7 = vmul.f32 1.4142135, %v4215_v6 }
  0xf1   : > { %v1335_v9 = vpop.f32.mrf.mxu1 }
  0xf2   : > { %v1307_v8 = vpop.f32.mrf.mxu0 }
  0xf9   : > { %v1338_v11 = vpop.f32.mrf.mxu1 }
  0xfa   : > { %v1310_v10 = vpop.f32.mrf.mxu0  ;;  %1364 = vmatpush.msra.mxu2 %v1338_v11 }
  0xfb   : > { %1393 = vmatpush.msra.mxu3 %v1310_v10 }
  0xfc   : > { %1365 = vmatpush.msra.mxu2 %v1335_v9 }
  0xfd   : > { %1394 = vmatpush.msra.mxu3 %v1307_v8  ;;  %3831 = vmatmul.msk.f32.vlgmr.msra.gmra.mxu2 %vm1283_vm0, %v3829_v12  ;;  %v1677_v8 = vsub.f32 1.0, %v1676_v7 }
  0xfe   : > { %3833 = vmatmul.msk.f32.vlgmr.msra.gmra.mxu3 %vm1283_vm0, %v1313_v13  ;;  %1491 = vmatpush.msrb.mxu2 %v1475_v14  ;;  %v4207_v14 = vld [vmem:[%s5217_s3] ss:$0 sm:$0xff]  ;;  %s5223_s3 = sld [smem:[#allocation17_spill]] }
  0xff   : > { %1525 = vmatpush.msrb.mxu3 %v3852_v15  ;;  %v1678_v11 = vmul.f32 %v4215_v6, %v1677_v8 }
 0x100   : > { %1492 = vmatpush.msrb.mxu2 %v1474_v16 }
 0x101   : > { %1526 = vmatpush.msrb.mxu3 %v3851_v17  ;;  %v1679_v13 = vadd.f32 %v4215_v6, %v1678_v11  ;;  %v3890_v11 = vld [vmem:[%s4413_s14 + $0xe0] sm:$0xff] }
 0x102   : > { %v1422_v20 = vpop.f32.mrf.mxu0  ;;  %1493 = vmatpush.msrb.mxu2 %v1473_v18 }
 0x103   : > { %1527 = vmatpush.msrb.mxu3 %v3850_v19  ;;  %v4702_v17 = vsel %vm1680_vm2, %v4215_v6, %v1679_v13  ;;  %v3891_v6 = vld [vmem:[%s4413_s14 + $0xe8] sm:$0xff] }
 0x104   : > { %1494 = vmatpush.msrb.mxu2 %v1472_v21 }
 0x105   : > { %1528 = vmatpush.msrb.mxu3 %v3849_v22  ;;  %3832 = vmatmul.msk.f32.gmra.mxu2 %vm1283_vm0, %v3830_v23 }
 0x106   : > { %3834 = vmatmul.msk.f32.gmra.mxu3 %vm1283_vm0, %v1314_v24  ;;  %1495 = vmatpush.msrb.mxu2 %v1471_v28 }
 0x107   : > { %1529 = vmatpush.msrb.mxu3 %v3848_v29 }
 0x108   : > { %1496 = vmatpush.msrb.mxu2 %v1470_v30 }
 0x109   : > { %1530 = vmatpush.msrb.mxu3 %v3847_v31 }
 0x10a   : > { %v1425_v25 = vpop.f32.mrf.mxu0  ;;  %1497 = vmatpush.msrb.mxu2 %v1469_v32 }
 0x10b   : > { %1451 = vmatpush.msrb.mxu1 %v1425_v25  ;;  %1531 = vmatpush.msrb.mxu3 %v3846_v33 }
 0x10c   : > { %1498 = vmatpush.msrb.mxu2 %v1468_v34 }
 0x10d   : > { %1452 = vmatpush.msrb.mxu1 %v1422_v20  ;;  %1532 = vmatpush.msrb.mxu3 %v3845_v35 }
 0x10e   : > { %3841 = vmatmul.msk.f32.vlgmr.msrb.gmra.mxu1 %vm1283_vm0, %v3839_v26  ;;  %1618 = vmatpush.msra.mxu2 %v3868_v36 }
 0x110   : > { %1619 = vmatpush.msra.mxu2 %v3867_v37 }
 0x112   : > { %1620 = vmatpush.msra.mxu2 %v3866_v38 }
 0x114   : > { %1621 = vmatpush.msra.mxu2 %v3865_v39 }
 0x116   : > { %3842 = vmatmul.msk.f32.gmra.mxu1 %vm1283_vm0, %v3840_v27  ;;  %1622 = vmatpush.msra.mxu2 %v3864_v40 }
 0x118   : > { %1623 = vmatpush.msra.mxu2 %v3863_v41 }
 0x11a   : > { %1624 = vmatpush.msra.mxu2 %v3862_v42 }
 0x11c   : > { %1625 = vmatpush.msra.mxu2 %v3861_v43 }
 0x180   : > { %v1367_v44 = vpop.f32.mrf.mxu2 }
 0x181   : > { %v1396_v45 = vpop.f32.mrf.mxu3 }
 0x182   : > { %v1397_v46 = vadd.f32 %v1396_v45, %v1367_v44 }
 0x188   : > { %v1370_v50 = vpop.f32.mrf.mxu2 }
 0x189   : > { %v1399_v51 = vpop.f32.mrf.mxu3 }
 0x18a   : > { %v1400_v53 = vadd.f32 %v1399_v51, %v1370_v50 }
 0x18b   : > { %v1454_v48 = vpop.f32.mrf.mxu1 }
 0x18c   : > { %v1460_v49 = vadd.f32 %v1454_v48, %v1397_v46 }
 0x18e   : > { %v1466_v52 = vadd.f32 %v4206_v47, %v1460_v49 }
 0x190   : > { %3843 = vmatmul.msk.f32.vlgmr.msrb.gmra.mxu2 %vm1476_vm1, %v1466_v52  ;;  %3853 = vmatmul.msk.f32.vlgmr.msrb.gmra.mxu3 %vm1476_vm1, %v1466_v52 }
 0x193   : > { %v1457_v54 = vpop.f32.mrf.mxu1 }
 0x194   : > { %v1461_v55 = vadd.f32 %v1457_v54, %v1400_v53 }
 0x196   : > { %v1467_v56 = vadd.f32 %v4206_v47, %v1461_v55 }
 0x198   : > { %3844 = vmatmul.msk.f32.gmra.mxu2 %vm1476_vm1, %v1467_v56  ;;  %3854 = vmatmul.msk.f32.gmra.mxu3 %vm1476_vm1, %v1467_v56 }
 0x1a0   : > { %3869 = vmatmul.msk.f32.vlgmr.msra.gmra.mxu2 %vm1476_vm1, %v1466_v52 }
 0x1a8   : > { %3870 = vmatmul.msk.f32.gmra.mxu2 %vm1476_vm1, %v1467_v56 }
 0x213   : > { %v1500_v57 = vpop.f32.mrf.mxu2  ;;  %v1534_v58 = vpop.f32.mrf.mxu3 }
 0x21b   : > { %v1503_v59 = vpop.f32.mrf.mxu2  ;;  %v1537_v60 = vpop.f32.mrf.mxu3 }
 0x21c   : > { %1563 = vmatpush.msra.mxu0 %v1537_v60  ;;  %1592 = vmatpush.msra.mxu1 %v1503_v59 }
 0x21e   : > { %1564 = vmatpush.msra.mxu0 %v1534_v58  ;;  %1593 = vmatpush.msra.mxu1 %v1500_v57 }
 0x21f   : > { %3857 = vmatmul.msk.f32.vlgmr.msra.gmra.mxu0 %vm1283_vm0, %v3855_v61  ;;  %3859 = vmatmul.msk.f32.vlgmr.msra.gmra.mxu1 %vm1283_vm0, %v1506_v62 }
 0x223   : > { %v1627_v63 = vpop.f32.mrf.mxu2 }
 0x227   : > { %3858 = vmatmul.msk.f32.gmra.mxu0 %vm1283_vm0, %v3856_v0  ;;  %3860 = vmatmul.msk.f32.gmra.mxu1 %vm1283_vm0, %v1507_v1  ;;  %v3893_v0 = vld [vmem:[%s4413_s14 + $0xf8] sm:$0xff] }
 0x22b   : > { %v1630_v2 = vpop.f32.mrf.mxu2 }
 0x22c   : > { %1656 = vmatpush.msra.mxu3 %v1630_v2  ;;  %v1824_v2 = vld [vmem:[%s4413_s14 + $0x70] sm:$0xff] }
 0x22e   : > { %1657 = vmatpush.msra.mxu3 %v1627_v63  ;;  %v1825_v63 = vld [vmem:[%s4413_s14 + $0x78] sm:$0xff] }
 0x22f   : > { %3873 = vmatmul.msk.f32.vlgmr.msra.gmra.mxu3 %vm1283_vm0, %v3871_v3  ;;  %1826 = vmatpush.msrb.mxu2 %v1825_v63  ;;  %v3892_v3 = vld [vmem:[%s4413_s14 + $0xf0] sm:$0xff]  ;;  %v3878_v63 = vld [vmem:[%s4413_s14 + $0x80] sm:$0xff] }
 0x230   : > { %1863 = vmatpush.msrb.mxu3 %v3893_v0  ;;  %v1891_v0 = vld [vmem:[%s4423_s24 + $0x38] sm:$0xff] }
 0x231   : > { %1827 = vmatpush.msrb.mxu2 %v1824_v2  ;;  %v3914_v2 = vld [vmem:[%s4423_s24 + $0xb8] sm:$0xff] }
 0x232   : > { %1864 = vmatpush.msrb.mxu3 %v3892_v3  ;;  %v1890_v3 = vld [vmem:[%s4423_s24 + $0x30] sm:$0xff] }
 0x233   : > { %1828 = vmatpush.msrb.mxu2 %v1823_v5  ;;  %v3913_v5 = vld [vmem:[%s4423_s24 + $0xb0] sm:$0xff] }
 0x234   : > { %1865 = vmatpush.msrb.mxu3 %v3891_v6  ;;  %v1889_v6 = vld [vmem:[%s4423_s24 + $0x28] sm:$0xff] }
 0x236   : > { %1866 = vmatpush.msrb.mxu3 %v3890_v11  ;;  %v3911_v11 = vld [vmem:[%s4423_s24 + $0xa0] sm:$0xff] }
 0x237   : > { %3874 = vmatmul.msk.f32.gmra.mxu3 %vm1283_vm0, %v3872_v4 }
 0x29c   : > { %v1566_v9 = vpop.f32.mrf.mxu0  ;;  %v1595_v10 = vpop.f32.mrf.mxu1 }
 0x29d   : > { %v1596_v12 = vadd.f32 %v1595_v10, %v1566_v9  ;;  %v1822_v10 = vld [vmem:[%s4413_s14 + $0x60] sm:$0xff] }
 0x29e   : > { %1829 = vmatpush.msrb.mxu2 %v1822_v10  ;;  %v3899_v10 = vld [vmem:[%s4423_s24 + $0x60] sm:$0xff] }
 0x2a4   : > { %v1569_v18 = vpop.f32.mrf.mxu0  ;;  %v1598_v19 = vpop.f32.mrf.mxu1 }
 0x2a5   : > { %v1599_v22 = vadd.f32 %v1598_v19, %v1569_v18 }
 0x2b2   : > { %v1659_v15 = vpop.f32.mrf.mxu3 }
 0x2b3   : > { %v1665_v16 = vadd.f32 %v1659_v15, %v1596_v12  ;;  %v3889_v15 = vld [vmem:[%s4413_s14 + $0xd8] sm:$0xff] }
 0x2b4   : > { %1867 = vmatpush.msrb.mxu3 %v3889_v15  ;;  %v1886_v15 = vld [vmem:[%s4423_s24 + $0x10] sm:$0xff] }
 0x2b5   : > { %v4704_v20 = vadd.f32 %v4207_v14, %v1665_v16 }
 0x2b7   : > { %v4708_v21 = vmul.f32 %v4702_v17, %v4704_v20 }
 0x2b9   : > { %v1684_v23 = vand.u32 2147483647, %v4708_v21  ;;  %vm1750_vm11 = vcmp.lt.f32.partialorder %v4708_v21, 0.0  ;;  %v1673_v21 = vmul.f32 0.5, %v4704_v20  ;;  %v1811_v20 = vld [vmem:[%s4413_s14 + $0x8] sm:$0xff] }
 0x2ba   : > { %v1662_v24 = vpop.f32.mrf.mxu3 }
 0x2bb   : > { %v1686_v25 = vmul.f32 0.3275911, %v1684_v23  ;;  %v1666_v26 = vadd.f32 %v1662_v24, %v1599_v22  ;;  %v1738_v45 = vsub.f32 0.0, %v1684_v23  ;;  %v1820_v22 = vld [vmem:[%s4413_s14 + $0x50] sm:$0xff] }
 0x2bd   : > { %v1688_v27 = vadd.f32 1.0, %v1686_v25  ;;  %v4711_v28 = vadd.f32 %v4207_v14, %v1666_v26  ;;  %v1740_v52 = vmul.f32 %v1738_v45, %v1684_v23  ;;  %v1821_v14 = vld [vmem:[%s4413_s14 + $0x58] sm:$0xff]  ;;  %v3888_v23 = vld [vmem:[%s4413_s14 + $0xd0] sm:$0xff]  ;;  %v3883_v45 = vld [vmem:[%s4413_s14 + $0xa8] sm:$0xff] }
 0x2be   : > { %1830 = vmatpush.msrb.mxu2 %v1821_v14  ;;  %1868 = vmatpush.msrb.mxu3 %v3888_v23  ;;  %v3910_v14 = vld [vmem:[%s4423_s24 + $0x98] sm:$0xff] }
 0x2bf   : > { %4216 = vrcp.f32 %v1688_v27  ;;  %v4715_v29 = vmul.f32 %v4702_v17, %v4711_v28  ;;  %v1701_v36 = vand.u32 2147483648, %v1688_v27  ;;  %v1699_v38 = vand.u32 2147483647, %v1688_v27 }
 0x2c0   : > { %vm1695_vm4 = vweird.f32 %v1688_v27  ;;  %v1742_v58 = vmul.f32 1.442695, %v1740_v52  ;;  %1831 = vmatpush.msrb.mxu2 %v1820_v22  ;;  %v3881_v52 = vld [vmem:[%s4413_s14 + $0x98] sm:$0xff] }
 0x2c1   : > { %v1685_v30 = vand.u32 2147483647, %v4715_v29  ;;  %v1702_v40 = vor.u32 1.1754944e-38, %v1701_v36  ;;  %vm1700_vm6 = vcmp.eq.f32.partialorder %v1699_v38, 8.507059e+37  ;;  %v1817_v36 = vld [vmem:[%s4413_s14 + $0x38] sm:$0xff]  ;;  %vm1751_vm12 = vcmp.lt.f32.partialorder %v4715_v29, 0.0 }
 0x2c3   : > { %v1687_v31 = vmul.f32 0.3275911, %v1685_v30  ;;  %v1739_v60 = vsub.f32 0.0, %v1685_v30 }
 0x2c5   : > { %v4217_v32 = vpop.eup %4216  ;;  %v1689_v34 = vadd.f32 1.0, %v1687_v31  ;;  %v1741_v7 = vmul.f32 %v1739_v60, %v1685_v30  ;;  %v3887_v30 = vld [vmem:[%s4413_s14 + $0xc8] sm:$0xff]  ;;  %v1760_v60 = vld [vmem:[%s5212_s8] sm:$0xff] }
 0x2c6   : > { %v1691_v33 = vmul.f32 %v4217_v32, %v1688_v27  ;;  %vm1696_vm3 = vweird.f32 %v4217_v32  ;;  %v1819_v27 = vld [vmem:[%s4413_s14 + $0x48] sm:$0xff]  ;;  %1869 = vmatpush.msrb.mxu3 %v3887_v30  ;;  %v3895_v30 = vld [vmem:[%s4423_s24 + $0x40] sm:$0xff] }
 0x2c7   : > { %4218 = vrcp.f32 %v1689_v34  ;;  %vm1697_vm5 = vmor %vm1695_vm4, %vm1696_vm3  ;;  %v1716_v48 = vand.u32 2147483648, %v1689_v34  ;;  %v1714_v51 = vand.u32 2147483647, %v1689_v34  ;;  %vm1710_vm8 = vweird.f32 %v1689_v34  ;;  %1832 = vmatpush.msrb.mxu2 %v1819_v27  ;;  %v1884_v27 = vld [vmem:[%s4423_s24] sm:$0xff] }
 0x2c8   : > { %v1692_v35 = vsub.f32 1.0, %v1691_v33  ;;  %4220 = vpow2.f32 %v1742_v58  ;;  %v1744_v16 = vmul.f32 1.442695, %v1741_v7  ;;  %v3886_v33 = vld [vmem:[%s4413_s14 + $0xc0] sm:$0xff]  ;;  %v3900_v7 = vld [vmem:[%s4423_s24 + $0x68] sm:$0xff] }
 0x2c9   : > { %v1717_v55 = vor.u32 1.1754944e-38, %v1716_v48  ;;  %vm1715_vm10 = vcmp.eq.f32.partialorder %v1714_v51, 8.507059e+37  ;;  %1870 = vmatpush.msrb.mxu3 %v3886_v33  ;;  %v3882_v48 = vld [vmem:[%s4413_s14 + $0xa0] sm:$0xff]  ;;  %v1813_v51 = vld [vmem:[%s4413_s14 + $0x18] sm:$0xff] }
 0x2ca   : > { %v1693_v37 = vmul.f32 %v4217_v32, %v1692_v35  ;;  %4222 = vpow2.f32 %v1744_v16  ;;  %v3897_v16 = vld [vmem:[%s4423_s24 + $0x50] sm:$0xff] }
 0x2cc   : > { %v1694_v39 = vadd.f32 %v4217_v32, %v1693_v37  ;;  %v3885_v37 = vld [vmem:[%s4413_s14 + $0xb8] sm:$0xff] }
 0x2cd   : > { %v4219_v41 = vpop.eup %4218  ;;  %1871 = vmatpush.msrb.mxu3 %v3885_v37 }
 0x2ce   : > { %v1698_v42 = vsel %vm1697_vm5, %v4217_v32, %v1694_v39  ;;  %v1706_v43 = vmul.f32 %v4219_v41, %v1689_v34  ;;  %vm1711_vm7 = vweird.f32 %v4219_v41  ;;  %v4221_v24 = vpop.eup %4220  ;;  %v1818_v32 = vld [vmem:[%s4413_s14 + $0x40] sm:$0xff]  ;;  %v1816_v39 = vld [vmem:[%s4413_s14 + $0x30] sm:$0xff]  ;;  %vm2285_vm5 = vcmask 1043456  }
 0x2cf   : > { %v1703_v44 = vsel %vm1700_vm6, %v1702_v40, %v1698_v42  ;;  %vm1712_vm9 = vmor %vm1710_vm8, %vm1711_vm7  ;;  %1833 = vmatpush.msrb.mxu2 %v1818_v32  ;;  %v3884_v40 = vld [vmem:[%s4413_s14 + $0xb0] sm:$0xff]  ;;  %vm2281_vm6 = vcmask 31744  }
 0x2d0   : > { %v1720_v46 = vmul.f32 1.0614054, %v1703_v44  ;;  %v1707_v47 = vsub.f32 1.0, %v1706_v43  ;;  %1872 = vmatpush.msrb.mxu3 %v3884_v40 }
 0x2d1   : > { %1834 = vmatpush.msrb.mxu2 %v1817_v36  ;;  %v1915_v36 = vld [vmem:[%s4418_s19] sm:$0xff] }
 0x2d2   : > { %v1722_v49 = vadd.f32 -1.4531521, %v1720_v46  ;;  %v1708_v50 = vmul.f32 %v4219_v41, %v1707_v47  ;;  %v1814_v47 = vld [vmem:[%s4413_s14 + $0x20] sm:$0xff]  ;;  %1873 = vmatpush.msrb.mxu3 %v3883_v45 }
 0x2d3   : > { %1835 = vmatpush.msrb.mxu2 %v1816_v39  ;;  %v3916_v39 = vld [vmem:[%s4418_s19 + $0x10] sm:$0xff] }
 0x2d4   : > { %v1724_v53 = vmul.f32 %v1722_v49, %v1703_v44  ;;  %v1709_v54 = vadd.f32 %v4219_v41, %v1708_v50  ;;  %1874 = vmatpush.msrb.mxu3 %v3882_v48 }
 0x2d6   : > { %v1726_v56 = vadd.f32 1.4214138, %v1724_v53  ;;  %v1713_v57 = vsel %vm1712_vm9, %v4219_v41, %v1709_v54  ;;  %v4223_v41 = vpop.eup %4222  ;;  %v1812_v54 = vld [vmem:[%s4413_s14 + $0x10] sm:$0xff]  ;;  %1875 = vmatpush.msrb.mxu3 %v3881_v52 }
 0x2d7   : > { %v1718_v59 = vsel %vm1715_vm10, %v1717_v55, %v1713_v57  ;;  %v3880_v55 = vld [vmem:[%s4413_s14 + $0x90] sm:$0xff] }
 0x2d8   : > { %v1728_v61 = vmul.f32 %v1726_v56, %v1703_v44  ;;  %v1721_v62 = vmul.f32 1.0614054, %v1718_v59  ;;  %v1674_v56 = vmul.f32 0.5, %v4711_v28  ;;  %1876 = vmatpush.msrb.mxu3 %v3880_v55  ;;  %v3876_v28 = vld [vmem:[%s5212_s8 + $0x8] sm:$0xff] }
 0x2da   : > { %v1730_v1 = vadd.f32 -0.28449672, %v1728_v61  ;;  %v1723_v4 = vadd.f32 -1.4531521, %v1721_v62  ;;  %v3879_v61 = vld [vmem:[%s4413_s14 + $0x88] sm:$0xff]  ;;  %v1810_v62 = vld [vmem:[%s4413_s14] sm:$0xff] }
 0x2db   : > { %1877 = vmatpush.msrb.mxu3 %v3879_v61 }
 0x2dc   : > { %v1732_v8 = vmul.f32 %v1730_v1, %v1703_v44  ;;  %v1725_v9 = vmul.f32 %v1723_v4, %v1718_v59  ;;  %v3902_v1 = vld [vmem:[%s4423_s24 + $0x78] sm:$0xff]  ;;  %v3901_v4 = vld [vmem:[%s4423_s24 + $0x70] sm:$0xff] }
 0x2dd   : > { %1878 = vmatpush.msrb.mxu3 %v3878_v63 }
 0x2de   : > { %v1734_v12 = vadd.f32 0.2548296, %v1732_v8  ;;  %v1727_v13 = vadd.f32 1.4214138, %v1725_v9  ;;  %v3912_v8 = vld [vmem:[%s4423_s24 + $0xa8] sm:$0xff]  ;;  %v1888_v9 = vld [vmem:[%s4423_s24 + $0x20] sm:$0xff] }
 0x2e0   : > { %v1736_v18 = vmul.f32 %v1734_v12, %v1703_v44  ;;  %v1729_v19 = vmul.f32 %v1727_v13, %v1718_v59  ;;  %v1815_v44 = vld [vmem:[%s4413_s14 + $0x28] sm:$0xff]  ;;  %v1887_v12 = vld [vmem:[%s4423_s24 + $0x18] sm:$0xff] }
 0x2e1   : > { %1836 = vmatpush.msrb.mxu2 %v1815_v44  ;;  %v3898_v13 = vld [vmem:[%s4423_s24 + $0x58] sm:$0xff]  ;;  %v4208_v44 = vld [vmem:[%s4428_s30] ss:$0 sm:$0xff] }
 0x2e2   : > { %v1731_v25 = vadd.f32 -0.28449672, %v1729_v19  ;;  %v1746_v26 = vmul.f32 %v4221_v24, %v1736_v18  ;;  %v3909_v18 = vld [vmem:[%s4423_s24 + $0x90] sm:$0xff]  ;;  %v1885_v24 = vld [vmem:[%s4423_s24 + $0x8] sm:$0xff] }
 0x2e3   : > { %1837 = vmatpush.msrb.mxu2 %v1814_v47 }
 0x2e4   : > { %v1733_v31 = vmul.f32 %v1731_v25, %v1718_v59  ;;  %v1748_v35 = vsub.f32 1.0, %v1746_v26  ;;  %v3896_v25 = vld [vmem:[%s4423_s24 + $0x48] sm:$0xff] }
 0x2e5   : > { %1838 = vmatpush.msrb.mxu2 %v1813_v51  ;;  %v3908_v26 = vld [vmem:[%s4423_s24 + $0x88] sm:$0xff] }
 0x2e6   : > { %v1735_v34 = vadd.f32 0.2548296, %v1733_v31  ;;  %v1752_v43 = vsub.f32 0.0, %v1748_v35  ;;  %v3907_v31 = vld [vmem:[%s4423_s24 + $0x80] sm:$0xff] }
 0x2e7   : > { %1839 = vmatpush.msrb.mxu2 %v1812_v54 }
 0x2e8   : > { %v1737_v38 = vmul.f32 %v1735_v34, %v1718_v59  ;;  %v1754_v50 = vsel %vm1750_vm11, %v1752_v43, %v1748_v35  ;;  %v3904_v35 = vld [vmem:[%s4418_s19 + $0x8] sm:$0xff] }
 0x2e9   : > { %v1756_v58 = vadd.f32 1.0, %v1754_v50  ;;  %1840 = vmatpush.msrb.mxu2 %v1811_v20  ;;  %v2158_v20 = vld [vmem:[%s5211_s12 + $0x70] sm:$0xff] }
 0x2ea   : > { %v1747_v42 = vmul.f32 %v4223_v41, %v1737_v38 }
 0x2eb   : > { %v1758_v29 = vmul.f32 %v1756_v58, %v1673_v21  ;;  %1841 = vmatpush.msrb.mxu2 %v1810_v62  ;;  %v2157_v62 = vld [vmem:[%s5211_s12 + $0x68] sm:$0xff] }
 0x2ec   : > { %v1749_v46 = vsub.f32 1.0, %v1747_v42 }
 0x2ed   : > { %2011 = vmatpush.msra.mxu2 %v3914_v2 }
 0x2ee   : > { %v1753_v49 = vsub.f32 0.0, %v1749_v46 }
 0x2ef   : > { %2012 = vmatpush.msra.mxu2 %v3913_v5 }
 0x2f0   : > { %v1755_v53 = vsel %vm1751_vm12, %v1753_v49, %v1749_v46  ;;  %vm2568_vm12 = vcmask 517120  }
 0x2f1   : > { %v1757_v57 = vadd.f32 1.0, %v1755_v53  ;;  %2013 = vmatpush.msra.mxu2 %v3912_v8  ;;  %v2153_v8 = vld [vmem:[%s5211_s12 + $0x48] sm:$0xff] }
 0x2f3   : > { %v1759_v59 = vmul.f32 %v1757_v57, %v1674_v56  ;;  %2014 = vmatpush.msra.mxu2 %v3911_v11 }
 0x2f5   : > { %1778 = vmatpush.msrb.mxu0 %v1759_v59  ;;  %1803 = vmatpush.msrb.mxu1 %v1759_v59 }
 0x2f6   : > { %2015 = vmatpush.msra.mxu2 %v3910_v14  ;;  %v2150_v14 = vld [vmem:[%s5211_s12 + $0x30] sm:$0xff] }
 0x2f7   : > { %1779 = vmatpush.msrb.mxu0 %v1758_v29  ;;  %1804 = vmatpush.msrb.mxu1 %v1758_v29  ;;  %v2159_v29 = vld [vmem:[%s5211_s12 + $0x78] sm:$0xff] }
 0x2f8   : > { %3875 = vmatmul.msk.f32.vlgmr.msrb.gmra.mxu0 %vm1283_vm0, %v1760_v60  ;;  %3877 = vmatmul.msk.f32.vlgmr.msrb.gmra.mxu1 %vm1283_vm0, %v3876_v28 }
 0x2f9   : > { %1903 = vmatpush.msra.mxu0 %v1891_v0  ;;  %1933 = vmatpush.msra.mxu1 %v3902_v1  ;;  %v2156_v1 = vld [vmem:[%s5211_s12 + $0x60] sm:$0xff] }
 0x2fa   : > { %2016 = vmatpush.msra.mxu2 %v3909_v18  ;;  %v2149_v18 = vld [vmem:[%s5211_s12 + $0x28] sm:$0xff] }
 0x2fb   : > { %1904 = vmatpush.msra.mxu0 %v1890_v3  ;;  %1934 = vmatpush.msra.mxu1 %v3901_v4  ;;  %v2155_v3 = vld [vmem:[%s5211_s12 + $0x58] sm:$0xff] }
 0x2fc   : > { %2017 = vmatpush.msra.mxu2 %v3908_v26  ;;  %v2146_v26 = vld [vmem:[%s5211_s12 + $0x10] sm:$0xff] }
 0x2fd   : > { %1905 = vmatpush.msra.mxu0 %v1889_v6  ;;  %1935 = vmatpush.msra.mxu1 %v3900_v7  ;;  %v2154_v6 = vld [vmem:[%s5211_s12 + $0x50] sm:$0xff] }
 0x2fe   : > { %2018 = vmatpush.msra.mxu2 %v3907_v31 }
 0x2ff   : > { %1906 = vmatpush.msra.mxu0 %v1888_v9  ;;  %1936 = vmatpush.msra.mxu1 %v3899_v10  ;;  %v2152_v10 = vld [vmem:[%s5211_s12 + $0x40] sm:$0xff] }
 0x301   : > { %1907 = vmatpush.msra.mxu0 %v1887_v12  ;;  %1937 = vmatpush.msra.mxu1 %v3898_v13  ;;  %v2151_v12 = vld [vmem:[%s5211_s12 + $0x38] sm:$0xff] }
 0x303   : > { %1908 = vmatpush.msra.mxu0 %v1886_v15  ;;  %1938 = vmatpush.msra.mxu1 %v3897_v16 }
 0x305   : > { %1909 = vmatpush.msra.mxu0 %v1885_v24  ;;  %1939 = vmatpush.msra.mxu1 %v3896_v25  ;;  %v2147_v24 = vld [vmem:[%s5211_s12 + $0x18] sm:$0xff] }
 0x307   : > { %1910 = vmatpush.msra.mxu0 %v1884_v27  ;;  %1940 = vmatpush.msra.mxu1 %v3895_v30 }
 0x375   : > { %v1781_v19 = vpop.f32.mrf.mxu0  ;;  %v1806_v22 = vpop.f32.mrf.mxu1 }
 0x376   : > { %v1809_v23 = vmax.f32 %v1781_v19, %v1806_v22  ;;  %v2148_v22 = vld [vmem:[%s5211_s12 + $0x20] sm:$0xff] }
 0x378   : > { %1842 = vmatmul.f32.vlgmr.msrb.gmra.mxu2 %v1809_v23  ;;  %1879 = vmatmul.f32.vlgmr.msrb.gmra.mxu3 %v1809_v23 }
 0x3fb   : > { %v1843_v32 = vpop.f32.mrf.mxu2  ;;  %v1880_v33 = vpop.f32.mrf.mxu3 }
 0x3fc   : > { %v1883_v34 = vmax.f32 %v1843_v32, %v1880_v33  ;;  %v2094_v33 = vld [vmem:[%s5213_s6] sm:$0xf] }
 0x3fe   : > { %3894 = vmatmul.msk.f32.vlgmr.msra.gmra.mxu0 %vm1476_vm1, %v1883_v34  ;;  %3903 = vmatmul.msk.f32.vlgmr.msra.gmra.mxu1 %vm1476_vm1, %v1883_v34 }
 0x3ff   : > { %3915 = vmatmul.msk.f32.vlgmr.msra.gmra.mxu2 %vm1476_vm1, %v1883_v34  ;;  %v3919_v34 = vld [vmem:[%s5213_s6 + $0x4] sm:$0xf] }
 0x47b   : > { %v1912_v37 = vpop.f32.mrf.mxu0  ;;  %v1942_v38 = vpop.f32.mrf.mxu1 }
 0x47c   : > { %1966 = vmatpush.msrb.mxu0 %v1942_v38  ;;  %1989 = vmatpush.msrb.mxu1 %v1912_v37  ;;  %v3934_v37 = vld [vmem:[%s5211_s12 + $0xe8] sm:$0xff]  ;;  %v3933_v38 = vld [vmem:[%s5211_s12 + $0xe0] sm:$0xff] }
 0x47d   : > { %3905 = vmatmul.msk.f32.vlgmr.msrb.gmra.mxu0 %vm1947_vm13, %v3904_v35  ;;  %3906 = vmatmul.msk.f32.vlgmr.msrb.gmra.mxu1 %vm1947_vm13, %v1915_v36  ;;  %v3936_v35 = vld [vmem:[%s5211_s12 + $0xf8] sm:$0xff]  ;;  %v3935_v36 = vld [vmem:[%s5211_s12 + $0xf0] sm:$0xff] }
 0x482   : > { %v2020_v40 = vpop.f32.mrf.mxu2 }
 0x483   : > { %2043 = vmatpush.msra.mxu3 %v2020_v40  ;;  %v3931_v40 = vld [vmem:[%s5211_s12 + $0xd0] sm:$0xff] }
 0x484   : > { %3917 = vmatmul.msk.f32.vlgmr.msra.gmra.mxu3 %vm1947_vm13, %v3916_v39  ;;  %v3932_v39 = vld [vmem:[%s5211_s12 + $0xd8] sm:$0xff] }
 0x485   : > { %2160 = vmatpush.msrb.mxu3 %v2159_v29 }
 0x487   : > { %2161 = vmatpush.msrb.mxu3 %v2158_v20  ;;  %v2221_v20 = vld [vmem:[%s5218_s1 + $0x18] sm:$0xff] }
 0x489   : > { %2162 = vmatpush.msrb.mxu3 %v2157_v62  ;;  %v2220_v62 = vld [vmem:[%s5218_s1 + $0x10] sm:$0xff] }
 0x48b   : > { %2163 = vmatpush.msrb.mxu3 %v2156_v1  ;;  %v3939_v1 = vld [vmem:[%s5218_s1 + $0x48] sm:$0xff] }
 0x48d   : > { %2164 = vmatpush.msrb.mxu3 %v2155_v3  ;;  %v3938_v3 = vld [vmem:[%s5218_s1 + $0x40] sm:$0xff] }
 0x48f   : > { %2165 = vmatpush.msrb.mxu3 %v2154_v6 }
 0x491   : > { %2166 = vmatpush.msrb.mxu3 %v2153_v8 }
 0x493   : > { %2167 = vmatpush.msrb.mxu3 %v2152_v10 }
 0x495   : > { %2168 = vmatpush.msrb.mxu3 %v2151_v12  ;;  %v3958_v12 = vld [vmem:[%s5218_s1 + $0xb0] sm:$0xff] }
 0x497   : > { %2169 = vmatpush.msrb.mxu3 %v2150_v14  ;;  %v3956_v14 = vld [vmem:[%s5218_s1 + $0xa0] sm:$0xff] }
 0x499   : > { %2170 = vmatpush.msrb.mxu3 %v2149_v18  ;;  %v3953_v18 = vld [vmem:[%s5218_s1 + $0x88] sm:$0xff] }
 0x49b   : > { %2171 = vmatpush.msrb.mxu3 %v2148_v22 }
 0x49d   : > { %2172 = vmatpush.msrb.mxu3 %v2147_v24 }
 0x49f   : > { %2173 = vmatpush.msrb.mxu3 %v2146_v26 }
 0x4fa   : > { %v1968_v41 = vpop.f32.mrf.mxu0  ;;  %v1991_v42 = vpop.f32.mrf.mxu1 }
 0x4fb   : > { %v1992_v43 = vadd.f32 %v1991_v42, %v1968_v41  ;;  %v3930_v41 = vld [vmem:[%s5211_s12 + $0xc8] sm:$0xff]  ;;  %v3929_v42 = vld [vmem:[%s5211_s12 + $0xc0] sm:$0xff] }
 0x507   : > { %v2045_v45 = vpop.f32.mrf.mxu3 }
 0x508   : > { %v2048_v46 = vadd.f32 %v2045_v45, %v1992_v43  ;;  %v3928_v43 = vld [vmem:[%s5211_s12 + $0xb8] sm:$0xff]  ;;  %v3926_v45 = vld [vmem:[%s5211_s12 + $0xa8] sm:$0xff] }
 0x50a   : > { %v4792_v47 = vadd.f32 %v4208_v44, %v2048_v46  ;;  %v3927_v44 = vld [vmem:[%s5211_s12 + $0xb0] sm:$0xff]  ;;  %v3925_v46 = vld [vmem:[%s5211_s12 + $0xa0] sm:$0xff] }
 0x50c   : > { %v4796_v48 = vmul.f32 %v4792_v47, %v4702_v17  ;;  %v2054_v30 = vmul.f32 0.5, %v4792_v47  ;;  %v3924_v47 = vld [vmem:[%s5211_s12 + $0x98] sm:$0xff] }
 0x50e   : > { %v2056_v49 = vand.u32 2147483647, %v4796_v48  ;;  %vm2089_vm4 = vcmp.lt.f32.partialorder %v4796_v48, 0.0  ;;  %v3923_v48 = vld [vmem:[%s5211_s12 + $0x90] sm:$0xff] }
 0x510   : > { %v2057_v50 = vmul.f32 0.3275911, %v2056_v49  ;;  %v2083_v28 = vsub.f32 0.0, %v2056_v49 }
 0x512   : > { %v2058_v51 = vadd.f32 1.0, %v2057_v50  ;;  %v2084_v0 = vmul.f32 %v2083_v28, %v2056_v49  ;;  %v2145_v49 = vld [vmem:[%s5211_s12 + $0x8] sm:$0xff]  ;;  %v3942_v28 = vld [vmem:[%s5218_s1 + $0x60] sm:$0xff] }
 0x513   : > { %v3922_v50 = vld [vmem:[%s5211_s12 + $0x88] sm:$0xff]  ;;  %2174 = vmatpush.msrb.mxu3 %v2145_v49 }
 0x514   : > { %4224 = vrcp.f32 %v2058_v51  ;;  %v2070_v55 = vand.u32 2147483648, %v2058_v51  ;;  %v2068_v57 = vand.u32 2147483647, %v2058_v51  ;;  %vm2064_vm15 = vweird.f32 %v2058_v51 }
 0x515   : > { %v2085_v5 = vmul.f32 1.442695, %v2084_v0  ;;  %v2219_v0 = vld [vmem:[%s5218_s1 + $0x8] sm:$0xff] }
 0x516   : > { %v2071_v21 = vor.u32 1.1754944e-38, %v2070_v55  ;;  %vm2069_vm3 = vcmp.eq.f32.partialorder %v2068_v57, 8.507059e+37  ;;  %v2224_v55 = vld [vmem:[%s5218_s1 + $0x30] sm:$0xff]  ;;  %v2223_v57 = vld [vmem:[%s5218_s1 + $0x28] sm:$0xff] }
 0x517   : > { %4226 = vpow2.f32 %v2085_v5 }
 0x51a   : > { %v4225_v52 = vpop.eup %4224 }
 0x51b   : > { %v2060_v53 = vmul.f32 %v4225_v52, %v2058_v51  ;;  %vm2065_vm14 = vweird.f32 %v4225_v52  ;;  %v2144_v51 = vld [vmem:[%s5211_s12] sm:$0xff] }
 0x51c   : > { %vm2066_vm2 = vmor %vm2064_vm15, %vm2065_vm14  ;;  %2175 = vmatpush.msrb.mxu3 %v2144_v51  ;;  %vm2572_vm14 = vcmask 1041408   ;;  %vm2725_vm15 = vcmask 15360  }
 0x51d   : > { %v2061_v54 = vsub.f32 1.0, %v2060_v53  ;;  %v4227_v16 = vpop.eup %4226  ;;  %v2225_v53 = vld [vmem:[%s5218_s1 + $0x38] sm:$0xff] }
 0x51f   : > { %v2062_v56 = vmul.f32 %v4225_v52, %v2061_v54  ;;  %v3945_v54 = vld [vmem:[%s5218_s1 + $0x78] sm:$0xff] }
 0x520   : > { %2267 = vmatpush.msrb.mxu2 %v3945_v54 }
 0x521   : > { %v2063_v58 = vadd.f32 %v4225_v52, %v2062_v56  ;;  %v3944_v56 = vld [vmem:[%s5218_s1 + $0x70] sm:$0xff] }
 0x522   : > { %2268 = vmatpush.msrb.mxu2 %v3944_v56 }
 0x523   : > { %v2067_v59 = vsel %vm2066_vm2, %v4225_v52, %v2063_v58  ;;  %v3921_v52 = vld [vmem:[%s5211_s12 + $0x80] sm:$0xff]  ;;  %v3943_v58 = vld [vmem:[%s5218_s1 + $0x68] sm:$0xff] }
 0x524   : > { %v2072_v60 = vsel %vm2069_vm3, %v2071_v21, %v2067_v59  ;;  %2269 = vmatpush.msrb.mxu2 %v3943_v58 }
 0x525   : > { %v2074_v61 = vmul.f32 1.0614054, %v2072_v60 }
 0x526   : > { %2270 = vmatpush.msrb.mxu2 %v3942_v28 }
 0x527   : > { %v2075_v63 = vadd.f32 -1.4531521, %v2074_v61  ;;  %v3941_v61 = vld [vmem:[%s5218_s1 + $0x58] sm:$0xff] }
 0x528   : > { %2271 = vmatpush.msrb.mxu2 %v3941_v61 }
 0x529   : > { %v2076_v2 = vmul.f32 %v2075_v63, %v2072_v60  ;;  %v3940_v63 = vld [vmem:[%s5218_s1 + $0x50] sm:$0xff] }
 0x52a   : > { %2272 = vmatpush.msrb.mxu2 %v3940_v63 }
 0x52b   : > { %v2077_v4 = vadd.f32 1.4214138, %v2076_v2  ;;  %v2218_v2 = vld [vmem:[%s5218_s1] sm:$0xff] }
 0x52c   : > { %2273 = vmatpush.msrb.mxu2 %v3939_v1 }
 0x52d   : > { %v2078_v7 = vmul.f32 %v2077_v4, %v2072_v60 }
 0x52e   : > { %2274 = vmatpush.msrb.mxu2 %v3938_v3 }
 0x52f   : > { %v2079_v9 = vadd.f32 -0.28449672, %v2078_v7  ;;  %v2249_v7 = vld [vmem:[%s5219_s23] sm:$0xf] }
 0x531   : > { %v2080_v11 = vmul.f32 %v2079_v9, %v2072_v60  ;;  %v3959_v9 = vld [vmem:[%s5218_s1 + $0xb8] sm:$0xff] }
 0x533   : > { %v2081_v13 = vadd.f32 0.2548296, %v2080_v11  ;;  %v3947_v11 = vld [vmem:[%s5219_s23 + $0x4] sm:$0xf] }
 0x535   : > { %v2082_v15 = vmul.f32 %v2081_v13, %v2072_v60  ;;  %v2222_v60 = vld [vmem:[%s5218_s1 + $0x20] sm:$0xff]  ;;  %v3957_v13 = vld [vmem:[%s5218_s1 + $0xa8] sm:$0xff] }
 0x537   : > { %v2087_v19 = vmul.f32 %v4227_v16, %v2082_v15  ;;  %v3955_v15 = vld [vmem:[%s5218_s1 + $0x98] sm:$0xff]  ;;  %v3954_v16 = vld [vmem:[%s5218_s1 + $0x90] sm:$0xff] }
 0x539   : > { %v2088_v23 = vsub.f32 1.0, %v2087_v19  ;;  %v3952_v19 = vld [vmem:[%s5218_s1 + $0x80] sm:$0xff]  ;;  %s5221_s1 = sld [smem:[#allocation16_spill]] }
 0x53b   : > { %v2090_v25 = vsub.f32 0.0, %v2088_v23 }
 0x53d   : > { %v2091_v27 = vsel %vm2089_vm4, %v2090_v25, %v2088_v23  ;;  %v3961_v23 = vld [vmem:[%s5219_s23 + $0x8] sm:$0xf] }
 0x53e   : > { %v2092_v31 = vadd.f32 1.0, %v2091_v27  ;;  %v4209_v27 = vld [vmem:[%s5220_s28] ss:$0 sm:$0xff]  ;;  %s5222_s28 = sld [smem:[#allocation15_spill]] }
 0x53f   : > { %v2505_v49 = vld [vmem:[%s5221_s1 + $0x70] sm:$0xff]  ;;  %v2504_v51 = vld [vmem:[%s5221_s1 + $0x68] sm:$0xff]  ;;  %v2503_v54 = vld [vmem:[%s5221_s1 + $0x60] sm:$0xff] }
 0x540   : > { %v2093_v32 = vmul.f32 %v2092_v31, %v2054_v30  ;;  %v2502_v56 = vld [vmem:[%s5221_s1 + $0x58] sm:$0xff]  ;;  %v2499_v28 = vld [vmem:[%s5221_s1 + $0x40] sm:$0xff]  ;;  %v2497_v63 = vld [vmem:[%s5221_s1 + $0x30] sm:$0xff] }
 0x541   : > { %v2498_v61 = vld [vmem:[%s5221_s1 + $0x38] sm:$0xff] }
 0x542   : > { %2113 = vmatpush.msra.mxu0 %v2093_v32  ;;  %2138 = vmatpush.msra.mxu1 %v2093_v32 }
 0x543   : > { %3918 = vmatmul.msk.f32.vlgmr.msra.gmra.mxu0 %vm1947_vm13, %v2094_v33  ;;  %3920 = vmatmul.msk.f32.vlgmr.msra.gmra.mxu1 %vm1947_vm13, %v3919_v34 }
 0x544   : > { %2197 = vmatpush.msrb.mxu0 %v3936_v35  ;;  %2237 = vmatpush.msrb.mxu1 %v2225_v53 }
 0x546   : > { %2198 = vmatpush.msrb.mxu0 %v3935_v36  ;;  %2238 = vmatpush.msrb.mxu1 %v2224_v55 }
 0x548   : > { %2199 = vmatpush.msrb.mxu0 %v3934_v37  ;;  %2239 = vmatpush.msrb.mxu1 %v2223_v57 }
 0x54a   : > { %2200 = vmatpush.msrb.mxu0 %v3933_v38  ;;  %2240 = vmatpush.msrb.mxu1 %v2222_v60 }
 0x54c   : > { %2201 = vmatpush.msrb.mxu0 %v3932_v39  ;;  %2241 = vmatpush.msrb.mxu1 %v2221_v20 }
 0x54e   : > { %2202 = vmatpush.msrb.mxu0 %v3931_v40  ;;  %2242 = vmatpush.msrb.mxu1 %v2220_v62 }
 0x550   : > { %2203 = vmatpush.msrb.mxu0 %v3930_v41  ;;  %2243 = vmatpush.msrb.mxu1 %v2219_v0 }
 0x552   : > { %2204 = vmatpush.msrb.mxu0 %v3929_v42  ;;  %2244 = vmatpush.msrb.mxu1 %v2218_v2  ;;  %v2496_v2 = vld [vmem:[%s5221_s1 + $0x28] sm:$0xff] }
 0x554   : > { %2205 = vmatpush.msrb.mxu0 %v3928_v43 }
 0x556   : > { %2206 = vmatpush.msrb.mxu0 %v3927_v44 }
 0x558   : > { %2207 = vmatpush.msrb.mxu0 %v3926_v45 }
 0x55a   : > { %2208 = vmatpush.msrb.mxu0 %v3925_v46  ;;  %v2506_v46 = vld [vmem:[%s5221_s1 + $0x78] sm:$0xff] }
 0x55c   : > { %2209 = vmatpush.msrb.mxu0 %v3924_v47 }
 0x55e   : > { %2210 = vmatpush.msrb.mxu0 %v3923_v48 }
 0x560   : > { %2211 = vmatpush.msrb.mxu0 %v3922_v50 }
 0x562   : > { %2212 = vmatpush.msrb.mxu0 %v3921_v52 }
 0x5c0   : > { %v2115_v21 = vpop.f32.mrf.mxu0  ;;  %v2140_v59 = vpop.f32.mrf.mxu1 }
 0x5c1   : > { %v2143_v29 = vmax.f32 %v2115_v21, %v2140_v59  ;;  %v2501_v21 = vld [vmem:[%s5221_s1 + $0x50] sm:$0xff] }
 0x5c3   : > { %2176 = vmatmul.f32.vlgmr.msrb.gmra.mxu3 %v2143_v29  ;;  %2213 = vmatmul.f32.vlgmr.msrb.gmra.mxu0 %v2143_v29  ;;  %v2500_v29 = vld [vmem:[%s5221_s1 + $0x48] sm:$0xff] }
 0x640   : > { %v2214_v4 = vpop.f32.mrf.mxu0 }
 0x646   : > { %v2177_v5 = vpop.f32.mrf.mxu3 }
 0x647   : > { %v2217_v6 = vmax.f32 %v2177_v5, %v2214_v4  ;;  %v2495_v4 = vld [vmem:[%s5221_s1 + $0x20] sm:$0xff] }
 0x649   : > { %3937 = vmatmul.msk.f32.vlgmr.msrb.gmra.mxu1 %vm1476_vm1, %v2217_v6  ;;  %3946 = vmatmul.msk.f32.vlgmr.msrb.gmra.mxu2 %vm1476_vm1, %v2217_v6 }
 0x6c6   : > { %v2246_v8 = vpop.f32.mrf.mxu1 }
 0x6c7   : > { %3950 = vmatpush.msk.msra.mxu2 %vm2285_vm5, %v2246_v8  ;;  %v2493_v8 = vld [vmem:[%s5221_s1 + $0x10] sm:$0xff] }
 0x6c8   : > { %3951 = vmatmul.msk.f32.vlgmr.msra.gmra.mxu2 %vm2281_vm6, %v2249_v7 }
 0x6cc   : > { %v2276_v10 = vpop.f32.mrf.mxu2 }
 0x6cd   : > { %3948 = vmatpush.msk.msra.mxu1 %vm2285_vm5, %v2276_v10 }
 0x6ce   : > { %3949 = vmatmul.msk.f32.vlgmr.msra.gmra.mxu1 %vm2281_vm6, %v3947_v11 }
 0x6cf   : > { %2352 = vmatpush.msrb.mxu1 %v3959_v9 }
 0x6d1   : > { %2353 = vmatpush.msrb.mxu1 %v3958_v12 }
 0x6d3   : > { %2354 = vmatpush.msrb.mxu1 %v3957_v13  ;;  %v2438_v13 = vld [vmem:[%s5222_s28] sm:$0x3] }
 0x6d5   : > { %2355 = vmatpush.msrb.mxu1 %v3956_v14  ;;  %v3966_v14 = vld [vmem:[%s5222_s28 + $0x2] sm:$0x3] }
 0x6d7   : > { %2356 = vmatpush.msrb.mxu1 %v3955_v15  ;;  %v3984_v15 = vld [vmem:[%s5221_s1 + $0xf8] sm:$0xff] }
 0x6d9   : > { %2357 = vmatpush.msrb.mxu1 %v3954_v16  ;;  %v3983_v16 = vld [vmem:[%s5221_s1 + $0xf0] sm:$0xff] }
 0x6db   : > { %2358 = vmatpush.msrb.mxu1 %v3953_v18  ;;  %v3982_v18 = vld [vmem:[%s5221_s1 + $0xe8] sm:$0xff] }
 0x6dd   : > { %2359 = vmatpush.msrb.mxu1 %v3952_v19  ;;  %v3981_v19 = vld [vmem:[%s5221_s1 + $0xe0] sm:$0xff] }
 0x6de   : > { %3960 = vmatmul.msk.f32.vlgmr.msrb.gmra.mxu1 %vm1476_vm1, %v2217_v6  ;;  %v2494_v6 = vld [vmem:[%s5221_s1 + $0x18] sm:$0xff] }
 0x74b   : > { %v2306_v22 = vpop.f32.mrf.mxu1  ;;  %v2332_v25 = vpop.f32.mrf.mxu2 }
 0x74c   : > { %v2333_v26 = vadd.f32 %v2332_v25, %v2306_v22  ;;  %v3980_v22 = vld [vmem:[%s5221_s1 + $0xd8] sm:$0xff]  ;;  %v3977_v25 = vld [vmem:[%s5221_s1 + $0xc0] sm:$0xff] }
 0x75b   : > { %v2361_v24 = vpop.f32.mrf.mxu1 }
 0x75c   : > { %3962 = vmatpush.msk.msrb.mxu2 %vm2285_vm5, %v2361_v24  ;;  %v3978_v24 = vld [vmem:[%s5221_s1 + $0xc8] sm:$0xff] }
 0x75d   : > { %3963 = vmatmul.msk.f32.vlgmr.msrb.gmra.mxu2 %vm2281_vm6, %v3961_v23  ;;  %v3979_v23 = vld [vmem:[%s5221_s1 + $0xd0] sm:$0xff] }
 0x75e   : > { %2507 = vmatpush.msra.mxu2 %v2506_v46 }
 0x760   : > { %2508 = vmatpush.msra.mxu2 %v2505_v49 }
 0x762   : > { %2509 = vmatpush.msra.mxu2 %v2504_v51  ;;  %v3985_v51 = vld [vmem:[%s5223_s3 + $0x2] sm:$0x3] }
 0x764   : > { %2510 = vmatpush.msra.mxu2 %v2503_v54 }
 0x766   : > { %2511 = vmatpush.msra.mxu2 %v2502_v56 }
 0x768   : > { %2512 = vmatpush.msra.mxu2 %v2501_v21 }
 0x76a   : > { %2513 = vmatpush.msra.mxu2 %v2500_v29 }
 0x76c   : > { %2514 = vmatpush.msra.mxu2 %v2499_v28 }
 0x76e   : > { %2515 = vmatpush.msra.mxu2 %v2498_v61 }
 0x770   : > { %2516 = vmatpush.msra.mxu2 %v2497_v63 }
 0x772   : > { %2517 = vmatpush.msra.mxu2 %v2496_v2 }
 0x774   : > { %2518 = vmatpush.msra.mxu2 %v2495_v4 }
 0x776   : > { %2519 = vmatpush.msra.mxu2 %v2494_v6 }
 0x778   : > { %2520 = vmatpush.msra.mxu2 %v2493_v8 }
 0x7e0   : > { %v2389_v30 = vpop.f32.mrf.mxu2 }
 0x7e1   : > { %v2392_v31 = vadd.f32 %v2389_v30, %v2333_v26  ;;  %v3976_v26 = vld [vmem:[%s5221_s1 + $0xb8] sm:$0xff]  ;;  %v3974_v30 = vld [vmem:[%s5221_s1 + $0xa8] sm:$0xff] }
 0x7e3   : > { %v4874_v32 = vadd.f32 %v4209_v27, %v2392_v31  ;;  %v3975_v27 = vld [vmem:[%s5221_s1 + $0xb0] sm:$0xff]  ;;  %v3973_v31 = vld [vmem:[%s5221_s1 + $0xa0] sm:$0xff] }
 0x7e5   : > { %v4878_v33 = vmul.f32 %v4874_v32, %v4702_v17  ;;  %v2398_v10 = vmul.f32 0.5, %v4874_v32  ;;  %v3972_v32 = vld [vmem:[%s5221_s1 + $0x98] sm:$0xff] }
 0x7e7   : > { %v2400_v34 = vand.u32 2147483647, %v4878_v33  ;;  %vm2433_vm11 = vcmp.lt.f32.partialorder %v4878_v33, 0.0  ;;  %v3971_v33 = vld [vmem:[%s5221_s1 + $0x90] sm:$0xff] }
 0x7e9   : > { %v2401_v35 = vmul.f32 0.3275911, %v2400_v34  ;;  %v2427_v48 = vsub.f32 0.0, %v2400_v34 }
 0x7eb   : > { %v2402_v36 = vadd.f32 1.0, %v2401_v35  ;;  %v2428_v53 = vmul.f32 %v2427_v48, %v2400_v34  ;;  %v2492_v34 = vld [vmem:[%s5221_s1 + $0x8] sm:$0xff] }
 0x7ec   : > { %v3970_v35 = vld [vmem:[%s5221_s1 + $0x88] sm:$0xff]  ;;  %2521 = vmatpush.msra.mxu2 %v2492_v34 }
 0x7ed   : > { %4228 = vrcp.f32 %v2402_v36  ;;  %v2414_v40 = vand.u32 2147483648, %v2402_v36  ;;  %v2412_v42 = vand.u32 2147483647, %v2402_v36  ;;  %vm2408_vm8 = vweird.f32 %v2402_v36 }
 0x7ee   : > { %v2429_v58 = vmul.f32 1.442695, %v2428_v53 }
 0x7ef   : > { %v2415_v44 = vor.u32 1.1754944e-38, %v2414_v40  ;;  %vm2413_vm10 = vcmp.eq.f32.partialorder %v2412_v42, 8.507059e+37 }
 0x7f0   : > { %4230 = vpow2.f32 %v2429_v58 }
 0x7f3   : > { %v4229_v37 = vpop.eup %4228 }
 0x7f4   : > { %v2404_v38 = vmul.f32 %v4229_v37, %v2402_v36  ;;  %vm2409_vm7 = vweird.f32 %v4229_v37  ;;  %v2491_v36 = vld [vmem:[%s5221_s1] sm:$0xff] }
 0x7f5   : > { %vm2410_vm9 = vmor %vm2408_vm8, %vm2409_vm7  ;;  %2522 = vmatpush.msra.mxu2 %v2491_v36 }
 0x7f6   : > { %v2405_v39 = vsub.f32 1.0, %v2404_v38  ;;  %v4231_v1 = vpop.eup %4230 }
 0x7f8   : > { %v2406_v41 = vmul.f32 %v4229_v37, %v2405_v39 }
 0x7fa   : > { %v2407_v43 = vadd.f32 %v4229_v37, %v2406_v41 }
 0x7fc   : > { %v2411_v45 = vsel %vm2410_vm9, %v4229_v37, %v2407_v43  ;;  %v3969_v37 = vld [vmem:[%s5221_s1 + $0x80] sm:$0xff]  ;;  %s5224_s1 = sld [smem:[#allocation18_spill]]  ;;  %vm2912_vm9 = vcmask 261120  }
 0x7fd   : > { %v2416_v47 = vsel %vm2413_vm10, %v2415_v44, %v2411_v45  ;;  %v3986_v43 = vld [vmem:[%s5223_s3 + $0x4] sm:$0x3]  ;;  %v2566_v44 = vld [vmem:[%s5223_s3] sm:$0x3] }
 0x7fe   : > { %v2418_v50 = vmul.f32 1.0614054, %v2416_v47 }
 0x800   : > { %v2419_v52 = vadd.f32 -1.4531521, %v2418_v50  ;;  %v3987_v50 = vld [vmem:[%s5223_s3 + $0x6] sm:$0x3]  ;;  %s5225_s3 = sld [smem:[#allocation22_spill]] }
 0x802   : > { %v2420_v55 = vmul.f32 %v2419_v52, %v2416_v47 }
 0x804   : > { %v2421_v57 = vadd.f32 1.4214138, %v2420_v55 }
 0x806   : > { %v2422_v59 = vmul.f32 %v2421_v57, %v2416_v47 }
 0x808   : > { %v2423_v60 = vadd.f32 -0.28449672, %v2422_v59 }
 0x80a   : > { %v2424_v20 = vmul.f32 %v2423_v60, %v2416_v47 }
 0x80c   : > { %v2425_v62 = vadd.f32 0.2548296, %v2424_v20 }
 0x80e   : > { %v2426_v0 = vmul.f32 %v2425_v62, %v2416_v47  ;;  %v2565_v62 = vld [vmem:[%s5224_s1] sm:$0x1]  ;;  %s5226_s1 = sld [smem:[#allocation6_spill]] }
 0x810   : > { %v2431_v3 = vmul.f32 %v4231_v1, %v2426_v0 }
 0x812   : > { %v2432_v5 = vsub.f32 1.0, %v2431_v3 }
 0x814   : > { %v2434_v7 = vsub.f32 0.0, %v2432_v5 }
 0x816   : > { %v2435_v9 = vsel %vm2433_vm11, %v2434_v7, %v2432_v5 }
 0x817   : > { %v2436_v11 = vadd.f32 1.0, %v2435_v9 }
 0x819   : > { %v2437_v12 = vmul.f32 %v2436_v11, %v2398_v10 }
 0x81b   : > { %3964 = vmatpush.msk.msra.mxu3 %vm2285_vm5, %v2437_v12  ;;  %3967 = vmatpush.msk.msra.mxu0 %vm2285_vm5, %v2437_v12 }
 0x81c   : > { %3965 = vmatmul.msk.f32.vlgmr.msra.gmra.mxu3 %vm2281_vm6, %v2438_v13  ;;  %3968 = vmatmul.msk.f32.vlgmr.msra.gmra.mxu0 %vm2281_vm6, %v3966_v14 }
 0x81d   : > { %2544 = vmatpush.msrb.mxu3 %v3984_v15  ;;  %v4356_v15 = vmov 0  }
 0x81e   : > { %4203 = vset.pattern.permute.xlu0 %v4356_v15  ;;  %v4004_v15 = vld [vmem:[%s5225_s3 + $0x80] sm:$0xff] }
 0x81f   : > { %2545 = vmatpush.msrb.mxu3 %v3983_v16 }
 0x821   : > { %2546 = vmatpush.msrb.mxu3 %v3982_v18 }
 0x823   : > { %2547 = vmatpush.msrb.mxu3 %v3981_v19 }
 0x825   : > { %2548 = vmatpush.msrb.mxu3 %v3980_v22 }
 0x827   : > { %2549 = vmatpush.msrb.mxu3 %v3979_v23  ;;  %v4357_v23 = vmov 1  }
 0x828   : > { %4204 = vset.pattern.permute.xlu1 %v4357_v23 }
 0x829   : > { %2550 = vmatpush.msrb.mxu3 %v3978_v24  ;;  %v2669_v24 = vld [vmem:[%s5225_s3 + $0x38] sm:$0xff] }
 0x82a   : > { %2681 = vmatpush.msrb.mxu0 %v2669_v24 }
 0x82b   : > { %2551 = vmatpush.msrb.mxu3 %v3977_v25  ;;  %v3997_v25 = vld [vmem:[%s5225_s3 + $0x78] sm:$0xff] }
 0x82c   : > { %2711 = vmatpush.msra.mxu1 %v3997_v25 }
 0x82d   : > { %2552 = vmatpush.msrb.mxu3 %v3976_v26 }
 0x82f   : > { %2553 = vmatpush.msrb.mxu3 %v3975_v27 }
 0x831   : > { %2554 = vmatpush.msrb.mxu3 %v3974_v30 }
 0x833   : > { %2555 = vmatpush.msrb.mxu3 %v3973_v31 }
 0x835   : > { %2556 = vmatpush.msrb.mxu3 %v3972_v32 }
 0x837   : > { %2557 = vmatpush.msrb.mxu3 %v3971_v33 }
 0x839   : > { %2558 = vmatpush.msrb.mxu3 %v3970_v35 }
 0x83b   : > { %2559 = vmatpush.msrb.mxu3 %v3969_v37 }
 0x899   : > { %v2487_v38 = vpop.f32.mrf.mxu0 }
 0x89f   : > { %v2462_v39 = vpop.f32.mrf.mxu3 }
 0x8a0   : > { %v2490_v40 = vmax.f32 %v2462_v39, %v2487_v38 }
 0x8a2   : > { %2523 = vmatmul.f32.vlgmr.msra.gmra.mxu2 %v2490_v40  ;;  %2560 = vmatmul.f32.vlgmr.msrb.gmra.mxu3 %v2490_v40 }
 0x925   : > { %v2524_v41 = vpop.f32.mrf.mxu2  ;;  %v2561_v42 = vpop.f32.mrf.mxu3 }
 0x926   : > { %v2564_v45 = vmax.f32 %v2524_v41, %v2561_v42 }
 0x928   : > { %v2597_v46 = vmul.f32 %v3986_v43, %v2564_v45  ;;  %v2567_v47 = vmul.f32 %v2566_v44, %v2564_v45  ;;  %v2611_v52 = vmul.f32 %v3987_v50, %v2564_v45  ;;  %v2583_v53 = vmul.f32 %v3985_v51, %v2564_v45  ;;  %v3996_v50 = vld [vmem:[%s5225_s3 + $0x70] sm:$0xff]  ;;  %v2667_v51 = vld [vmem:[%s5225_s3 + $0x28] sm:$0xff] }
 0x929   : > { %2712 = vmatpush.msra.mxu1 %v3996_v50 }
 0x92a   : > { %v2598_v48 = vsel %vm2568_vm12, %v2597_v46, 0.0  ;;  %v2569_v49 = vsel %vm2568_vm12, %v2567_v47, 0.0  ;;  %v2612_v54 = vsel %vm2568_vm12, %v2611_v52, 0.0  ;;  %v2584_v55 = vsel %vm2568_vm12, %v2583_v53, 0.0  ;;  %v3995_v52 = vld [vmem:[%s5225_s3 + $0x68] sm:$0xff]  ;;  %v2666_v53 = vld [vmem:[%s5225_s3 + $0x20] sm:$0xff] }
 0x92b   : > { %2599 = vadd.xlane.f32.xlu0 %v2598_v48  ;;  %2570 = vadd.xlane.f32.xlu1 %v2569_v49  ;;  %v2668_v49 = vld [vmem:[%s5225_s3 + $0x30] sm:$0xff] }
 0x92c   : > { %2682 = vmatpush.msrb.mxu0 %v2668_v49  ;;  %2713 = vmatpush.msra.mxu1 %v3995_v52 }
 0x92e   : > { %2683 = vmatpush.msrb.mxu0 %v2667_v51 }
 0x930   : > { %2684 = vmatpush.msrb.mxu0 %v2666_v53 }
 0x933   : > { %2613 = vadd.xlane.f32.xlu0 %v2612_v54  ;;  %2585 = vadd.xlane.f32.xlu1 %v2584_v55  ;;  %v3994_v54 = vld [vmem:[%s5225_s3 + $0x60] sm:$0xff]  ;;  %v2665_v55 = vld [vmem:[%s5225_s3 + $0x18] sm:$0xff] }
 0x934   : > { %2714 = vmatpush.msra.mxu1 %v3994_v54  ;;  %2685 = vmatpush.msrb.mxu0 %v2665_v55 }
 0x99e   : > { %v2600_v56 = vpop.xlane.xlu0 %2599  ;;  %v2571_v13 = vpop.xlane.xlu1 %2570 }
 0x99f   : > { %v2601_v57 = vsel %vm2572_vm14, %v2600_v56, 0.0  ;;  %v2573_v14 = vsel %vm2572_vm14, %v2571_v13, 0.0  ;;  %v3993_v56 = vld [vmem:[%s5225_s3 + $0x58] sm:$0xff]  ;;  %v4006_v13 = vld [vmem:[%s5225_s3 + $0x90] sm:$0xff] }
 0x9a0   : > { %v2602_v58 = vrot.slane %v2601_v57, 4  ;;  %v2574_v16 = vrot.slane %v2573_v14, 4  ;;  %2715 = vmatpush.msra.mxu1 %v3993_v56 }
 0x9a2   : > { %v2603_v21 = vadd.f32 %v2602_v58, %v2601_v57  ;;  %v2575_v19 = vadd.f32 %v2574_v16, %v2573_v14  ;;  %v2664_v57 = vld [vmem:[%s5225_s3 + $0x10] sm:$0xff]  ;;  %v4005_v14 = vld [vmem:[%s5225_s3 + $0x88] sm:$0xff] }
 0x9a3   : > { %v3992_v58 = vld [vmem:[%s5225_s3 + $0x50] sm:$0xff]  ;;  %2686 = vmatpush.msrb.mxu0 %v2664_v57 }
 0x9a4   : > { %v2604_v59 = vrot.slane %v2603_v21, 2  ;;  %v2576_v26 = vrot.slane %v2575_v19, 2  ;;  %2716 = vmatpush.msra.mxu1 %v3992_v58 }
 0x9a6   : > { %v2605_v29 = vadd.f32 %v2604_v59, %v2603_v21  ;;  %v2614_v60 = vpop.xlane.xlu0 %2613  ;;  %v2586_v18 = vpop.xlane.xlu1 %2585  ;;  %v2577_v30 = vadd.f32 %v2576_v26, %v2575_v19  ;;  %v2663_v21 = vld [vmem:[%s5225_s3 + $0x8] sm:$0xff] }
 0x9a7   : > { %v2615_v28 = vsel %vm2572_vm14, %v2614_v60, 0.0  ;;  %v2587_v22 = vsel %vm2572_vm14, %v2586_v18, 0.0  ;;  %v3991_v59 = vld [vmem:[%s5225_s3 + $0x48] sm:$0xff]  ;;  %2687 = vmatpush.msrb.mxu0 %v2663_v21  ;;  %v3990_v60 = vld [vmem:[%s5225_s3 + $0x40] sm:$0xff] }
 0x9a8   : > { %v2606_v20 = vrot.slane %v2605_v29, 1  ;;  %v2616_v61 = vrot.slane %v2615_v28, 4  ;;  %v2588_v27 = vrot.slane %v2587_v22, 4  ;;  %v2578_v32 = vrot.slane %v2577_v30, 1  ;;  %2717 = vmatpush.msra.mxu1 %v3991_v59 }
 0x9aa   : > { %v2607_v63 = vadd.f32 %v2606_v20, %v2605_v29  ;;  %v2617_v0 = vadd.f32 %v2616_v61, %v2615_v28  ;;  %v2589_v31 = vadd.f32 %v2588_v27, %v2587_v22  ;;  %v2579_v34 = vadd.f32 %v2578_v32, %v2577_v30  ;;  %v2662_v29 = vld [vmem:[%s5225_s3] sm:$0xff]  ;;  %2718 = vmatpush.msra.mxu1 %v3990_v60 }
 0x9ab   : > { %2688 = vmatpush.msrb.mxu0 %v2662_v29 }
 0x9ac   : > { %v2608_v1 = vadd.f32 %v2607_v63, %v2565_v62  ;;  %v2618_v2 = vrot.slane %v2617_v0, 2  ;;  %v2590_v33 = vrot.slane %v2589_v31, 2  ;;  %v2580_v39 = vadd.f32 %v2579_v34, %v2565_v62 }
 0x9ae   : > { %v2619_v3 = vadd.f32 %v2618_v2, %v2617_v0  ;;  %v2624_v4 = vmul.f32 0.5, %v2608_v1  ;;  %v2591_v35 = vadd.f32 %v2590_v33, %v2589_v31 }
 0x9b0   : > { %v2620_v5 = vrot.slane %v2619_v3, 1  ;;  %v2625_v6 = vmul.f32 1.442695, %v2624_v4  ;;  %v2592_v38 = vrot.slane %v2591_v35, 1  ;;  %v4011_v4 = vld [vmem:[%s5225_s3 + $0xb8] sm:$0xff] }
 0x9b2   : > { %v2621_v7 = vadd.f32 %v2620_v5, %v2619_v3  ;;  %4232 = vpow2.f32 %v2625_v6  ;;  %v2593_v42 = vadd.f32 %v2592_v38, %v2591_v35 }
 0x9b4   : > { %v2622_v8 = vadd.f32 %v2621_v7, %v2565_v62  ;;  %v2594_v45 = vadd.f32 %v2593_v42, %v2565_v62 }
 0x9b6   : > { %v2633_v9 = vmul.f32 0.5, %v2622_v8 }
 0x9b8   : > { %v4233_v10 = vpop.eup %4232  ;;  %v2634_v11 = vmul.f32 1.442695, %v2633_v9  ;;  %v4010_v9 = vld [vmem:[%s5225_s3 + $0xb0] sm:$0xff] }
 0x9b9   : > { %2628 = vrot.lane.b32.xlu2 %v4233_v10, %s4355_s5  ;;  %v4009_v10 = vld [vmem:[%s5225_s3 + $0xa8] sm:$0xff] }
 0x9ba   : > { %4234 = vpow2.f32 %v2634_v11  ;;  %v4008_v11 = vld [vmem:[%s5225_s3 + $0xa0] sm:$0xff] }
 0x9c0   : > { %v4235_v12 = vpop.eup %4234 }
 0x9c1   : > { %2637 = vrot.lane.b32.xlu2 %v4235_v12, %s4355_s5  ;;  %s1278_s5 = scalar_lea.vmem %s5226_s1, %s4635_s11  ;;  %s5227_s11 = sld [smem:[#allocation19_spill]]  ;;  %v4007_v12 = vld [vmem:[%s5225_s3 + $0x98] sm:$0xff] }
 0x9c2   : > { %v2623_v36 = vld [vmem:[%s1278_s5] sm:$0x1]  ;;  %s5228_s1 = sld [smem:[#allocation20_spill]] }
 0x9c3   : > { %s5229_s5 = sld [smem:[#allocation21_spill]] }
 0x9c4   : > { %s5231_s3 = sld [smem:[#allocation25_spill]] }
 0x9c7   : > { %v2642_v28 = vld [vmem:[%s5227_s11] sm:$0x3]  ;;  %v3988_v61 = vld [vmem:[%s5227_s11 + $0x2] sm:$0x3] }
 0x9c8   : > { %v2660_v1 = vld [vmem:[%s5228_s1] sm:$0x3]  ;;  %s5230_s1 = sld [smem:[#allocation23_spill]] }
 0x9c9   : > { %v2693_v5 = vld [vmem:[%s5229_s5] sm:$0x3]  ;;  %v3999_v8 = vld [vmem:[%s5229_s5 + $0x2] sm:$0x3]  ;;  %v4013_v18 = vld [vmem:[%s5229_s5 + $0x4] sm:$0x3] }
 0x9ca   : > { %s5233_s5 = sld [smem:[#allocation27_spill]] }
 0x9ce   : > { %v4210_v24 = vld [vmem:[%s5230_s1] ss:$0 sm:$0xff]  ;;  %s5232_s1 = sld [smem:[#allocation24_spill]] }
 0xa13   : > { %v2629_v37 = vpop.permute.xlu2 %2628 }
 0xa14   : > { %v2631_v40 = vmul.f32 %v2629_v37, %v2623_v36 }
 0xa16   : > { %v2632_v41 = vadd.f32 %v2631_v40, %v2580_v39 }
 0xa18   : > { %v2644_v43 = vperm.slane %v2632_v41, 0 }
 0xa1a   : > { %2646 = vperm.xlu0 %4203, %v2644_v43   ;;  %v2911_v43 = vld [vmem:[%s5231_s3 + $0x18] sm:$0xff] }
 0xa1b   : > { %v2638_v44 = vpop.permute.xlu2 %2637  ;;  %2928 = vmatpush.msra.mxu3 %v2911_v43 }
 0xa1c   : > { %v2640_v46 = vmul.f32 %v2638_v44, %v2623_v36  ;;  %v2910_v44 = vld [vmem:[%s5231_s3 + $0x10] sm:$0xff] }
 0xa1d   : > { %2929 = vmatpush.msra.mxu3 %v2910_v44 }
 0xa1e   : > { %v2641_v47 = vadd.f32 %v2640_v46, %v2594_v45 }
 0xa20   : > { %v2653_v48 = vperm.slane %v2641_v47, 0 }
 0xa22   : > { %2655 = vperm.xlu1 %4204, %v2653_v48   ;;  %4205 = vset.pattern.permute.xlu0 %v4357_v23  ;;  %v2909_v48 = vld [vmem:[%s5231_s3 + $0x8] sm:$0xff] }
 0xa23   : > { %2930 = vmatpush.msra.mxu3 %v2909_v48 }
 0xa8c   : > { %v2647_v20 = vpop.permute.xlu0 %2646 }
 0xa8d   : > { %v2649_v63 = vmul.f32 %v2647_v20, %v2642_v28 }
 0xa94   : > { %v2656_v62 = vpop.permute.xlu1 %2655 }
 0xa95   : > { %v2658_v0 = vmul.f32 %v3988_v61, %v2656_v62 }
 0xa97   : > { %v2659_v2 = vadd.f32 %v2658_v0, %v2649_v63  ;;  %v2881_v63 = vld [vmem:[%s5232_s1] sm:$0xf]  ;;  %s5234_s1 = sld [smem:[#allocation26_spill]] }
 0xa98   : > { %v2908_v0 = vld [vmem:[%s5231_s3] sm:$0xff]  ;;  %s5235_s3 = sld [smem:[#allocation28_spill]] }
 0xa99   : > { %v2661_v3 = vadd.f32 %v2660_v1, %v2659_v2  ;;  %2931 = vmatpush.msra.mxu3 %v2908_v0  ;;  %v2943_v1 = vld [vmem:[%s5233_s5 + $0x38] sm:$0xff] }
 0xa9a   : > { %v4027_v2 = vld [vmem:[%s5233_s5 + $0x78] sm:$0xff] }
 0xa9b   : > { %3989 = vmatmul.msk.f32.vlgmr.msrb.gmra.mxu0 %vm1476_vm1, %v2661_v3  ;;  %3998 = vmatmul.msk.f32.vlgmr.msra.gmra.mxu1 %vm1476_vm1, %v2661_v3 }
 0xb18   : > { %v2690_v6 = vpop.f32.mrf.mxu0  ;;  %v2720_v7 = vpop.f32.mrf.mxu1 }
 0xb19   : > { %4000 = vmatpush.msk.msra.mxu0 %vm2572_vm14, %v2720_v7  ;;  %4002 = vmatpush.msk.msrb.mxu1 %vm2572_vm14, %v2690_v6  ;;  %v4025_v6 = vld [vmem:[%s5233_s5 + $0x68] sm:$0xff]  ;;  %v2940_v7 = vld [vmem:[%s5233_s5 + $0x20] sm:$0xff] }
 0xb1a   : > { %4003 = vmatmul.msk.f32.vlgmr.msrb.gmra.mxu1 %vm2725_vm15, %v2693_v5  ;;  %4001 = vmatmul.msk.f32.vlgmr.msra.gmra.mxu0 %vm2725_vm15, %v3999_v8  ;;  %v2941_v5 = vld [vmem:[%s5233_s5 + $0x28] sm:$0xff]  ;;  %v4024_v8 = vld [vmem:[%s5233_s5 + $0x60] sm:$0xff] }
 0xb1b   : > { %2795 = vmatpush.msrb.mxu0 %v4011_v4  ;;  %v4026_v4 = vld [vmem:[%s5233_s5 + $0x70] sm:$0xff] }
 0xb1d   : > { %2796 = vmatpush.msrb.mxu0 %v4010_v9  ;;  %v2939_v9 = vld [vmem:[%s5233_s5 + $0x18] sm:$0xff] }
 0xb1f   : > { %2797 = vmatpush.msrb.mxu0 %v4009_v10  ;;  %v4023_v10 = vld [vmem:[%s5233_s5 + $0x58] sm:$0xff] }
 0xb21   : > { %2798 = vmatpush.msrb.mxu0 %v4008_v11  ;;  %v2938_v11 = vld [vmem:[%s5233_s5 + $0x10] sm:$0xff] }
 0xb23   : > { %2799 = vmatpush.msrb.mxu0 %v4007_v12  ;;  %v4022_v12 = vld [vmem:[%s5233_s5 + $0x50] sm:$0xff] }
 0xb25   : > { %2800 = vmatpush.msrb.mxu0 %v4006_v13  ;;  %v2937_v13 = vld [vmem:[%s5233_s5 + $0x8] sm:$0xff] }
 0xb27   : > { %2801 = vmatpush.msrb.mxu0 %v4005_v14  ;;  %v4021_v14 = vld [vmem:[%s5233_s5 + $0x48] sm:$0xff] }
 0xb29   : > { %2802 = vmatpush.msrb.mxu0 %v4004_v15 }
 0xb2a   : > { %4012 = vmatmul.msk.f32.vlgmr.msrb.gmra.mxu0 %vm1476_vm1, %v2661_v3  ;;  %v2942_v3 = vld [vmem:[%s5233_s5 + $0x30] sm:$0xff] }
 0xb97   : > { %v2749_v16 = vpop.f32.mrf.mxu0  ;;  %v2775_v22 = vpop.f32.mrf.mxu1 }
 0xb98   : > { %v2776_v23 = vadd.f32 %v2775_v22, %v2749_v16  ;;  %v2936_v16 = vld [vmem:[%s5233_s5] sm:$0xff] }
 0xb99   : > { %v2967_v22 = vld [vmem:[%s5234_s1] sm:$0xf] }
 0xba7   : > { %v2804_v19 = vpop.f32.mrf.mxu0 }
 0xba8   : > { %4014 = vmatpush.msk.msra.mxu1 %vm2572_vm14, %v2804_v19 }
 0xba9   : > { %4015 = vmatmul.msk.f32.vlgmr.msra.gmra.mxu1 %vm2725_vm15, %v4013_v18  ;;  %v4020_v18 = vld [vmem:[%s5233_s5 + $0x40] sm:$0xff] }
 0xbaa   : > { %2955 = vmatpush.msrb.mxu1 %v2943_v1 }
 0xbac   : > { %2956 = vmatpush.msrb.mxu1 %v2942_v3 }
 0xbae   : > { %2957 = vmatpush.msrb.mxu1 %v2941_v5 }
 0xbb0   : > { %2958 = vmatpush.msrb.mxu1 %v2940_v7 }
 0xbb2   : > { %2959 = vmatpush.msrb.mxu1 %v2939_v9 }
 0xbb4   : > { %2960 = vmatpush.msrb.mxu1 %v2938_v11 }
 0xbb6   : > { %2961 = vmatpush.msrb.mxu1 %v2937_v13 }
 0xbb8   : > { %2962 = vmatpush.msrb.mxu1 %v2936_v16 }
 0xc26   : > { %v2832_v25 = vpop.f32.mrf.mxu1 }
 0xc27   : > { %v2835_v26 = vadd.f32 %v2832_v25, %v2776_v23 }
 0xc29   : > { %v2840_v27 = vadd.f32 %v4210_v24, %v2835_v26  ;;  %v4041_v24 = vld [vmem:[%s5233_s5 + $0xb8] sm:$0xff]  ;;  %v4029_v26 = vld [vmem:[%s5234_s1 + $0x4] sm:$0xf] }
 0xc2b   : > { %v2842_v30 = vmul.f32 %v2840_v27, %v4702_v17  ;;  %v2841_v20 = vmul.f32 0.5, %v2840_v27  ;;  %v4040_v27 = vld [vmem:[%s5233_s5 + $0xb0] sm:$0xff] }
 0xc2d   : > { %v2843_v31 = vand.u32 2147483647, %v2842_v30  ;;  %vm2876_vm8 = vcmp.lt.f32.partialorder %v2842_v30, 0.0  ;;  %v4039_v30 = vld [vmem:[%s5233_s5 + $0xa8] sm:$0xff] }
 0xc2f   : > { %v2844_v32 = vmul.f32 0.3275911, %v2843_v31  ;;  %v2870_v46 = vsub.f32 0.0, %v2843_v31 }
 0xc31   : > { %v2845_v33 = vadd.f32 1.0, %v2844_v32  ;;  %v2871_v50 = vmul.f32 %v2870_v46, %v2843_v31  ;;  %v4038_v31 = vld [vmem:[%s5233_s5 + $0xa0] sm:$0xff]  ;;  %v4037_v32 = vld [vmem:[%s5233_s5 + $0x98] sm:$0xff] }
 0xc33   : > { %4236 = vrcp.f32 %v2845_v33  ;;  %v2857_v37 = vand.u32 2147483648, %v2845_v33  ;;  %v2855_v39 = vand.u32 2147483647, %v2845_v33  ;;  %vm2851_vm3 = vweird.f32 %v2845_v33 }
 0xc34   : > { %v2872_v53 = vmul.f32 1.442695, %v2871_v50 }
 0xc35   : > { %v2858_v41 = vor.u32 1.1754944e-38, %v2857_v37  ;;  %vm2856_vm7 = vcmp.eq.f32.partialorder %v2855_v39, 8.507059e+37  ;;  %v4043_v37 = vld [vmem:[%s5234_s1 + $0x8] sm:$0xf]  ;;  %s5238_s1 = sld [smem:[#allocation32_spill]] }
 0xc36   : > { %4238 = vpow2.f32 %v2872_v53 }
 0xc39   : > { %v4237_v34 = vpop.eup %4236 }
 0xc3a   : > { %v2847_v35 = vmul.f32 %v4237_v34, %v2845_v33  ;;  %vm2852_vm2 = vweird.f32 %v4237_v34  ;;  %v4036_v33 = vld [vmem:[%s5233_s5 + $0x90] sm:$0xff] }
 0xc3b   : > { %vm2853_vm4 = vmor %vm2851_vm3, %vm2852_vm2  ;;  %v3215_v16 = vld [vmem:[%s5238_s1 + $0x38] sm:$0xff] }
 0xc3c   : > { %v2848_v36 = vsub.f32 1.0, %v2847_v35  ;;  %v4239_v21 = vpop.eup %4238  ;;  %v4034_v35 = vld [vmem:[%s5233_s5 + $0x80] sm:$0xff] }
 0xc3e   : > { %v2849_v38 = vmul.f32 %v4237_v34, %v2848_v36 }
 0xc40   : > { %v2850_v40 = vadd.f32 %v4237_v34, %v2849_v38 }
 0xc42   : > { %v2854_v42 = vsel %vm2853_vm4, %v4237_v34, %v2850_v40  ;;  %v4035_v34 = vld [vmem:[%s5233_s5 + $0x88] sm:$0xff]  ;;  %s5236_s5 = sld [smem:[#allocation30_spill]] }
 0xc43   : > { %v2859_v45 = vsel %vm2856_vm7, %v2858_v41, %v2854_v42  ;;  %v4211_v41 = vld [vmem:[%s5235_s3] ss:$0 sm:$0xff]  ;;  %s5237_s3 = sld [smem:[#allocation29_spill]] }
 0xc44   : > { %v2861_v47 = vmul.f32 1.0614054, %v2859_v45 }
 0xc46   : > { %v2862_v49 = vadd.f32 -1.4531521, %v2861_v47 }
 0xc48   : > { %v2863_v51 = vmul.f32 %v2862_v49, %v2859_v45 }
 0xc4a   : > { %v2864_v52 = vadd.f32 1.4214138, %v2863_v51 }
 0xc4c   : > { %v2865_v54 = vmul.f32 %v2864_v52, %v2859_v45 }
 0xc4e   : > { %v2866_v55 = vadd.f32 -0.28449672, %v2865_v54 }
 0xc50   : > { %v2867_v56 = vmul.f32 %v2866_v55, %v2859_v45 }
 0xc52   : > { %v2868_v57 = vadd.f32 0.2548296, %v2867_v56 }
 0xc54   : > { %v2869_v58 = vmul.f32 %v2868_v57, %v2859_v45 }
 0xc56   : > { %v2874_v59 = vmul.f32 %v4239_v21, %v2869_v58  ;;  %v3184_v58 = vld [vmem:[%s5236_s5 + $0x18] sm:$0xff]  ;;  %v3183_v21 = vld [vmem:[%s5236_s5 + $0x10] sm:$0xff] }
 0xc58   : > { %v2875_v29 = vsub.f32 1.0, %v2874_v59 }
 0xc5a   : > { %v2877_v60 = vsub.f32 0.0, %v2875_v29 }
 0xc5c   : > { %v2878_v28 = vsel %vm2876_vm8, %v2877_v60, %v2875_v29 }
 0xc5d   : > { %v2879_v61 = vadd.f32 1.0, %v2878_v28  ;;  %v3182_v28 = vld [vmem:[%s5236_s5 + $0x8] sm:$0xff] }
 0xc5f   : > { %v2880_v62 = vmul.f32 %v2879_v61, %v2841_v20 }
 0xc61   : > { %4016 = vmatpush.msk.msrb.mxu2 %vm2572_vm14, %v2880_v62 }
 0xc62   : > { %4017 = vmatmul.msk.f32.vlgmr.msrb.gmra.mxu2 %vm2725_vm15, %v2881_v63 }
 0xc63   : > { %2985 = vmatpush.msra.mxu2 %v4027_v2 }
 0xc65   : > { %2986 = vmatpush.msra.mxu2 %v4026_v4 }
 0xc67   : > { %2987 = vmatpush.msra.mxu2 %v4025_v6 }
 0xc69   : > { %2988 = vmatpush.msra.mxu2 %v4024_v8 }
 0xc6b   : > { %2989 = vmatpush.msra.mxu2 %v4023_v10 }
 0xc6d   : > { %2990 = vmatpush.msra.mxu2 %v4022_v12 }
 0xc6f   : > { %2991 = vmatpush.msra.mxu2 %v4021_v14  ;;  %v3154_v14 = vld [vmem:[%s5237_s3] sm:$0xff]  ;;  %s5239_s3 = sld [smem:[#allocation31_spill]] }
 0xc71   : > { %2992 = vmatpush.msra.mxu2 %v4020_v18  ;;  %v4057_v18 = vld [vmem:[%s5238_s1 + $0x78] sm:$0xff] }
 0xc73   : > { %3200 = vmatpush.msrb.mxu2 %v3184_v58 }
 0xc75   : > { %3201 = vmatpush.msrb.mxu2 %v3183_v21 }
 0xc77   : > { %3202 = vmatpush.msrb.mxu2 %v3182_v28 }
 0xce5   : > { %v2905_v15 = vpop.f32.mrf.mxu2 }
 0xce6   : > { %4018 = vmatmul.msk.f32.vlgmr.msra.gmra.mxu3 %vm2912_vm9, %v2905_v15  ;;  %v3181_v15 = vld [vmem:[%s5236_s5] sm:$0xff]  ;;  %s5240_s5 = sld [smem:[#allocation33_spill]] }
 0xce7   : > { %3203 = vmatpush.msrb.mxu2 %v3181_v15 }
 0xd69   : > { %v2933_v19 = vpop.f32.mrf.mxu3 }
 0xd6a   : > { %4019 = vmatmul.msk.f32.vlgmr.msrb.gmra.mxu1 %vm1476_vm1, %v2933_v19  ;;  %4028 = vmatmul.msk.f32.vlgmr.msra.gmra.mxu2 %vm1476_vm1, %v2933_v19 }
 0xde7   : > { %v2964_v23 = vpop.f32.mrf.mxu1 }
 0xde8   : > { %4032 = vmatpush.msk.msra.mxu0 %vm2285_vm5, %v2964_v23  ;;  %v3213_v23 = vld [vmem:[%s5238_s1 + $0x28] sm:$0xff] }
 0xde9   : > { %4033 = vmatmul.msk.f32.vlgmr.msra.gmra.mxu0 %vm2281_vm6, %v2967_v22  ;;  %v4056_v22 = vld [vmem:[%s5238_s1 + $0x70] sm:$0xff] }
 0xded   : > { %v2994_v25 = vpop.f32.mrf.mxu2 }
 0xdee   : > { %4030 = vmatpush.msk.msrb.mxu3 %vm2285_vm5, %v2994_v25  ;;  %v3212_v25 = vld [vmem:[%s5238_s1 + $0x20] sm:$0xff] }
 0xdef   : > { %4031 = vmatmul.msk.f32.vlgmr.msrb.gmra.mxu3 %vm2281_vm6, %v4029_v26  ;;  %v4054_v26 = vld [vmem:[%s5238_s1 + $0x60] sm:$0xff] }
 0xdf0   : > { %3068 = vmatpush.msra.mxu3 %v4041_v24  ;;  %v4055_v24 = vld [vmem:[%s5238_s1 + $0x68] sm:$0xff] }
 0xdf2   : > { %3069 = vmatpush.msra.mxu3 %v4040_v27  ;;  %v3211_v27 = vld [vmem:[%s5238_s1 + $0x18] sm:$0xff] }
 0xdf4   : > { %3070 = vmatpush.msra.mxu3 %v4039_v30  ;;  %v4053_v30 = vld [vmem:[%s5238_s1 + $0x58] sm:$0xff] }
 0xdf6   : > { %3071 = vmatpush.msra.mxu3 %v4038_v31  ;;  %v3210_v31 = vld [vmem:[%s5238_s1 + $0x10] sm:$0xff] }
 0xdf8   : > { %3072 = vmatpush.msra.mxu3 %v4037_v32  ;;  %v4052_v32 = vld [vmem:[%s5238_s1 + $0x50] sm:$0xff] }
 0xdfa   : > { %3073 = vmatpush.msra.mxu3 %v4036_v33  ;;  %v3209_v33 = vld [vmem:[%s5238_s1 + $0x8] sm:$0xff] }
 0xdfc   : > { %3074 = vmatpush.msra.mxu3 %v4035_v34  ;;  %v4051_v34 = vld [vmem:[%s5238_s1 + $0x48] sm:$0xff] }
 0xdfe   : > { %3075 = vmatpush.msra.mxu3 %v4034_v35 }
 0xdff   : > { %4042 = vmatmul.msk.f32.vlgmr.msra.gmra.mxu3 %vm1476_vm1, %v2933_v19  ;;  %v3214_v19 = vld [vmem:[%s5238_s1 + $0x30] sm:$0xff] }
 0xe66   : > { %v3048_v39 = vpop.f32.mrf.mxu0 }
 0xe72   : > { %v3022_v36 = vpop.f32.mrf.mxu3 }
 0xe73   : > { %v3049_v40 = vadd.f32 %v3048_v39, %v3022_v36  ;;  %v3208_v36 = vld [vmem:[%s5238_s1] sm:$0xff]  ;;  %v4069_v39 = vld [vmem:[%s5238_s1 + $0xb8] sm:$0xff] }
 0xe82   : > { %v3077_v38 = vpop.f32.mrf.mxu3 }
 0xe83   : > { %4044 = vmatpush.msk.msrb.mxu0 %vm2285_vm5, %v3077_v38 }
 0xe84   : > { %4045 = vmatmul.msk.f32.vlgmr.msrb.gmra.mxu0 %vm2281_vm6, %v4043_v37  ;;  %v4050_v37 = vld [vmem:[%s5238_s1 + $0x40] sm:$0xff] }
 0xe85   : > { %3227 = vmatpush.msra.mxu0 %v3215_v16 }
 0xe87   : > { %3228 = vmatpush.msra.mxu0 %v3214_v19 }
 0xe89   : > { %3229 = vmatpush.msra.mxu0 %v3213_v23 }
 0xe8b   : > { %3230 = vmatpush.msra.mxu0 %v3212_v25 }
 0xe8d   : > { %3231 = vmatpush.msra.mxu0 %v3211_v27 }
 0xe8f   : > { %3232 = vmatpush.msra.mxu0 %v3210_v31 }
 0xe91   : > { %3233 = vmatpush.msra.mxu0 %v3209_v33 }
 0xe93   : > { %3234 = vmatpush.msra.mxu0 %v3208_v36  ;;  %v3488_v36 = vld [vmem:[%s4568_s27 + $0x38] sm:$0xff] }
 0xf01   : > { %v3105_v42 = vpop.f32.mrf.mxu0 }
 0xf02   : > { %v3108_v43 = vadd.f32 %v3105_v42, %v3049_v40  ;;  %v3239_v40 = vld [vmem:[%s5239_s3] sm:$0xff] }
 0xf04   : > { %v3113_v44 = vadd.f32 %v4211_v41, %v3108_v43  ;;  %v4059_v43 = vld [vmem:[%s5239_s3 + $0x8] sm:$0xff] }
 0xf06   : > { %v3115_v45 = vmul.f32 %v3113_v44, %v4702_v17  ;;  %v3114_v11 = vmul.f32 0.5, %v3113_v44  ;;  %v4068_v44 = vld [vmem:[%s5238_s1 + $0xb0] sm:$0xff] }
 0xf08   : > { %v3116_v46 = vand.u32 2147483647, %v3115_v45  ;;  %vm3149_vm15 = vcmp.lt.f32.partialorder %v3115_v45, 0.0  ;;  %v4067_v45 = vld [vmem:[%s5238_s1 + $0xa8] sm:$0xff] }
 0xf0a   : > { %v3117_v47 = vmul.f32 0.3275911, %v3116_v46  ;;  %v3143_v29 = vsub.f32 0.0, %v3116_v46 }
 0xf0c   : > { %v3118_v48 = vadd.f32 1.0, %v3117_v47  ;;  %v3144_v61 = vmul.f32 %v3143_v29, %v3116_v46  ;;  %v4066_v46 = vld [vmem:[%s5238_s1 + $0xa0] sm:$0xff]  ;;  %v4065_v47 = vld [vmem:[%s5238_s1 + $0x98] sm:$0xff] }
 0xf0e   : > { %4240 = vrcp.f32 %v3118_v48  ;;  %v3130_v52 = vand.u32 2147483648, %v3118_v48  ;;  %v3128_v54 = vand.u32 2147483647, %v3118_v48  ;;  %vm3124_vm11 = vweird.f32 %v3118_v48 }
 0xf0f   : > { %v3145_v0 = vmul.f32 1.442695, %v3144_v61 }
 0xf10   : > { %v3131_v56 = vor.u32 1.1754944e-38, %v3130_v52  ;;  %vm3129_vm14 = vcmp.eq.f32.partialorder %v3128_v54, 8.507059e+37  ;;  %v4071_v52 = vld [vmem:[%s5239_s3 + $0x10] sm:$0xff] }
 0xf11   : > { %4242 = vpow2.f32 %v3145_v0 }
 0xf14   : > { %v4241_v49 = vpop.eup %4240 }
 0xf15   : > { %v3120_v50 = vmul.f32 %v4241_v49, %v3118_v48  ;;  %vm3125_vm10 = vweird.f32 %v4241_v49  ;;  %v4064_v48 = vld [vmem:[%s5238_s1 + $0x90] sm:$0xff] }
 0xf16   : > { %vm3126_vm12 = vmor %vm3124_vm11, %vm3125_vm10 }
 0xf17   : > { %v3121_v51 = vsub.f32 1.0, %v3120_v50  ;;  %v4243_v6 = vpop.eup %4242  ;;  %v4062_v50 = vld [vmem:[%s5238_s1 + $0x80] sm:$0xff] }
 0xf19   : > { %v3122_v53 = vmul.f32 %v4241_v49, %v3121_v51 }
 0xf1b   : > { %v3123_v55 = vadd.f32 %v4241_v49, %v3122_v53 }
 0xf1d   : > { %v3127_v57 = vsel %vm3126_vm12, %v4241_v49, %v3123_v55  ;;  %v4063_v49 = vld [vmem:[%s5238_s1 + $0x88] sm:$0xff]  ;;  %s5241_s1 = sld [smem:[#allocation35_spill]] }
 0xf1e   : > { %v3132_v59 = vsel %vm3129_vm14, %v3131_v56, %v3127_v57  ;;  %v4212_v56 = vld [vmem:[%s5240_s5] ss:$0 sm:$0xff]  ;;  %s5242_s5 = sld [smem:[#allocation34_spill]] }
 0xf1f   : > { %v3134_v60 = vmul.f32 1.0614054, %v3132_v59 }
 0xf21   : > { %v3135_v20 = vadd.f32 -1.4531521, %v3134_v60 }
 0xf23   : > { %v3136_v62 = vmul.f32 %v3135_v20, %v3132_v59  ;;  %v3449_v15 = vld [vmem:[%s5241_s1 + $0x8] sm:$0xff] }
 0xf24   : > { %v3417_v33 = vld [vmem:[%s5242_s5] sm:$0xff] }
 0xf25   : > { %v3137_v63 = vadd.f32 1.4214138, %v3136_v62 }
 0xf27   : > { %v3138_v1 = vmul.f32 %v3137_v63, %v3132_v59 }
 0xf29   : > { %v3139_v2 = vadd.f32 -0.28449672, %v3138_v1 }
 0xf2b   : > { %v3140_v3 = vmul.f32 %v3139_v2, %v3132_v59 }
 0xf2d   : > { %v3141_v4 = vadd.f32 0.2548296, %v3140_v3 }
 0xf2f   : > { %v3142_v5 = vmul.f32 %v3141_v4, %v3132_v59 }
 0xf31   : > { %v3147_v7 = vmul.f32 %v4243_v6, %v3142_v5 }
 0xf33   : > { %v3148_v8 = vsub.f32 1.0, %v3147_v7 }
 0xf35   : > { %v3150_v9 = vsub.f32 0.0, %v3148_v8 }
 0xf37   : > { %v3151_v10 = vsel %vm3149_vm15, %v3150_v9, %v3148_v8 }
 0xf38   : > { %v3152_v12 = vadd.f32 1.0, %v3151_v10 }
 0xf3a   : > { %v3153_v13 = vmul.f32 %v3152_v12, %v3114_v11  ;;  %v3451_v11 = vld [vmem:[%s5241_s1 + $0x18] sm:$0xff]  ;;  %v3450_v12 = vld [vmem:[%s5241_s1 + $0x10] sm:$0xff] }
 0xf3c   : > { %4046 = vmatpush.msk.msra.mxu1 %vm2285_vm5, %v3153_v13 }
 0xf3d   : > { %4047 = vmatmul.msk.f32.vlgmr.msra.gmra.mxu1 %vm2281_vm6, %v3154_v14 }
 0xf3e   : > { %3257 = vmatpush.msrb.mxu1 %v4057_v18 }
 0xf40   : > { %3258 = vmatpush.msrb.mxu1 %v4056_v22 }
 0xf42   : > { %3259 = vmatpush.msrb.mxu1 %v4055_v24 }
 0xf44   : > { %3260 = vmatpush.msrb.mxu1 %v4054_v26 }
 0xf46   : > { %3261 = vmatpush.msrb.mxu1 %v4053_v30 }
 0xf48   : > { %3262 = vmatpush.msrb.mxu1 %v4052_v32 }
 0xf4a   : > { %3263 = vmatpush.msrb.mxu1 %v4051_v34  ;;  %v3418_v34 = vld [vmem:[%s5242_s5 + $0x8] sm:$0xff]  ;;  %s4115_s5 = sshll.u32 %s4601_s0, 4 }
 0xf4b   : > { %s3699_s6 = scalar_lea.hbm %s4578_s9, %s4115_s5 }
 0xf4c   : > { %3264 = vmatpush.msrb.mxu1 %v4050_v37  ;;  %v4086_v37 = vld [vmem:[%s4568_s27 + $0x78] sm:$0xff]  ;;  %s3702_s12 = sshll.u32 %s3699_s6, 4  ;;  %s3703_s12 = int_to_ptr.hbm [resolvable:$true] %s3702_s12 }
 0xf4e   : > { %3470 = vmatpush.msra.mxu1 %v3451_v11  ;;  %v4213_v11 = vld [vmem:[%s5243_s4] ss:$0 sm:$0xff]  ;;  %s4262_s4 = sshra.s32 %s3703_s12, 4  ;;  %s4263_s4 = int_to_ptr.hbm [resolvable:$true] %s4262_s4 }
 0xf4f   : > { %s4264_s5 = scalar_lea.hbm %s4263_s4, 16  ;;  %p4269_p0 = scmp.lt.s32.totalorder %s4263_s4, %s4578_s9 }
 0xf50   : > { %3471 = vmatpush.msra.mxu1 %v3450_v12  ;;  %p4265_p11 = scmp.ne.s32.totalorder %s4263_s4, %s4264_s5 }
 0xf52   : > { %3472 = vmatpush.msra.mxu1 %v3449_v15  ;;  %p4266_p12 = pnand %p4265_p11, %p4618_p5 }
 0xf54   : > { %p4267_p13 = pneg %p4266_p12 }
 0xfba   : > { %v3178_v35 = vpop.f32.mrf.mxu1 }
 0xfbb   : > { %4048 = vmatmul.msk.f32.vlgmr.msrb.gmra.mxu2 %vm2912_vm9, %v3178_v35  ;;  %v3448_v35 = vld [vmem:[%s5241_s1] sm:$0xff]  ;;  %s1268_s1 = sand.u32 1, %s4302_s16  }
 0xfbc   : > { %3473 = vmatpush.msra.mxu1 %v3448_v35  ;;  %s3820_s3 = sshll.u32 %s1268_s1, 4  ;;  %s3688_s0 = scalar_lea.sflag [#allocation3], %s1268_s1 }
 0xfbd   : > { %s1270_s8 = scalar_lea.vmem [#allocation2], %s3820_s3  ;;  %s4268_s3 = scalar_lea.hbm %s4578_s9, 32 }
 0xfbe   : > { %s3700_s11 = sshll.u32 %s1270_s8, 4  ;;  %p4270_p1 = scmp.lt.s32.totalorder %s4268_s3, %s4264_s5  ;;  %s3701_s11 = int_to_ptr.vmem [resolvable:$true] %s3700_s11 }
 0xfc0   : > { %p4271_p2 = por %p4270_p1, %p4269_p0 }
 0xfc2   : > { %p4272_p3 = pnand %p4271_p2, %p4267_p13 }
0x103e   : > { %v3205_v38 = vpop.f32.mrf.mxu2 }
0x103f   : > { %4049 = vmatmul.msk.f32.vlgmr.msra.gmra.mxu0 %vm1476_vm1, %v3205_v38  ;;  %4058 = vmatmul.msk.f32.vlgmr.msrb.gmra.mxu1 %vm1476_vm1, %v3205_v38 }
0x10bc   : > { %v3236_v41 = vpop.f32.mrf.mxu0  ;;  %v3266_v42 = vpop.f32.mrf.mxu1 }
0x10bd   : > { %3289 = vmatpush.msra.mxu2 %v3266_v42  ;;  %3312 = vmatpush.msrb.mxu3 %v3236_v41  ;;  %v4084_v41 = vld [vmem:[%s4568_s27 + $0x68] sm:$0xff]  ;;  %v3485_v42 = vld [vmem:[%s4568_s27 + $0x20] sm:$0xff] }
0x10be   : > { %4061 = vmatmul.msk.f32.vlgmr.msrb.gmra.mxu3 %vm1947_vm13, %v3239_v40  ;;  %4060 = vmatmul.msk.f32.vlgmr.msra.gmra.mxu2 %vm1947_vm13, %v4059_v43  ;;  %v3486_v40 = vld [vmem:[%s4568_s27 + $0x28] sm:$0xff]  ;;  %v4083_v43 = vld [vmem:[%s4568_s27 + $0x60] sm:$0xff] }
0x10bf   : > { %3334 = vmatpush.msrb.mxu2 %v4069_v39  ;;  %v4085_v39 = vld [vmem:[%s4568_s27 + $0x70] sm:$0xff] }
0x10c1   : > { %3335 = vmatpush.msrb.mxu2 %v4068_v44  ;;  %v3484_v44 = vld [vmem:[%s4568_s27 + $0x18] sm:$0xff] }
0x10c3   : > { %3336 = vmatpush.msrb.mxu2 %v4067_v45  ;;  %v4082_v45 = vld [vmem:[%s4568_s27 + $0x58] sm:$0xff] }
0x10c5   : > { %3337 = vmatpush.msrb.mxu2 %v4066_v46  ;;  %v3483_v46 = vld [vmem:[%s4568_s27 + $0x10] sm:$0xff] }
0x10c7   : > { %3338 = vmatpush.msrb.mxu2 %v4065_v47  ;;  %v4081_v47 = vld [vmem:[%s4568_s27 + $0x50] sm:$0xff] }
0x10c9   : > { %3339 = vmatpush.msrb.mxu2 %v4064_v48  ;;  %v3482_v48 = vld [vmem:[%s4568_s27 + $0x8] sm:$0xff] }
0x10cb   : > { %3340 = vmatpush.msrb.mxu2 %v4063_v49  ;;  %v4080_v49 = vld [vmem:[%s4568_s27 + $0x48] sm:$0xff] }
0x10cd   : > { %3341 = vmatpush.msrb.mxu2 %v4062_v50 }
0x10ce   : > { %4070 = vmatmul.msk.f32.vlgmr.msrb.gmra.mxu2 %vm1476_vm1, %v3205_v38  ;;  %v3487_v38 = vld [vmem:[%s4568_s27 + $0x30] sm:$0xff] }
0x1141   : > { %v3291_v51 = vpop.f32.mrf.mxu2  ;;  %v3314_v54 = vpop.f32.mrf.mxu3 }
0x1142   : > { %v3315_v55 = vadd.f32 %v3314_v54, %v3291_v51 }
0x1151   : > { %v3343_v53 = vpop.f32.mrf.mxu2 }
0x1152   : > { %3366 = vmatpush.msra.mxu3 %v3343_v53  ;;  %v4079_v53 = vld [vmem:[%s4568_s27 + $0x40] sm:$0xff] }
0x1153   : > { %4072 = vmatmul.msk.f32.vlgmr.msra.gmra.mxu3 %vm1947_vm13, %v4071_v52  ;;  %v3481_v52 = vld [vmem:[%s4568_s27] sm:$0xff] }
0x1154   : > { %3503 = vmatpush.msrb.mxu3 %v3488_v36 }
0x1156   : > { %3504 = vmatpush.msrb.mxu3 %v3487_v38 }
0x1158   : > { %3505 = vmatpush.msrb.mxu3 %v3486_v40 }
0x115a   : > { %3506 = vmatpush.msrb.mxu3 %v3485_v42 }
0x115c   : > { %3507 = vmatpush.msrb.mxu3 %v3484_v44 }
0x115e   : > { %3508 = vmatpush.msrb.mxu3 %v3483_v46 }
0x1160   : > { %3509 = vmatpush.msrb.mxu3 %v3482_v48 }
0x1162   : > { %3510 = vmatpush.msrb.mxu3 %v3481_v52 }
0x11d6   : > { %v3368_v57 = vpop.f32.mrf.mxu3 }
0x11d7   : > { %v3371_v58 = vadd.f32 %v3368_v57, %v3315_v55 }
0x11d9   : > { %v3376_v21 = vadd.f32 %v4212_v56, %v3371_v58 }
0x11db   : > { %v3378_v59 = vmul.f32 %v3376_v21, %v4702_v17  ;;  %v3377_v30 = vmul.f32 0.5, %v3376_v21  ;;  %v4089_v21 = vld [vmem:[%s4563_s20 + $0x10] sm:$0xff] }
0x11dd   : > { %v3379_v29 = vand.u32 2147483647, %v3378_v59  ;;  %vm3412_vm4 = vcmp.lt.f32.partialorder %v3378_v59, 0.0  ;;  %v4102_v59 = vld [vmem:[%s4568_s27 + $0xb8] sm:$0xff] }
0x11df   : > { %v3380_v60 = vmul.f32 0.3275911, %v3379_v29  ;;  %v3406_v5 = vsub.f32 0.0, %v3379_v29 }
0x11e1   : > { %v3381_v28 = vadd.f32 1.0, %v3380_v60  ;;  %v3407_v8 = vmul.f32 %v3406_v5, %v3379_v29  ;;  %v4101_v29 = vld [vmem:[%s4568_s27 + $0xb0] sm:$0xff] }
0x11e3   : > { %4244 = vrcp.f32 %v3381_v28  ;;  %v3393_v63 = vand.u32 2147483648, %v3381_v28  ;;  %v3391_v1 = vand.u32 2147483647, %v3381_v28  ;;  %vm3387_vm6 = vweird.f32 %v3381_v28 }
0x11e4   : > { %v3408_v13 = vmul.f32 1.442695, %v3407_v8  ;;  %v4106_v8 = vld [vmem:[%s4563_s20 + $0x28] sm:$0xff] }
0x11e5   : > { %v3394_v3 = vor.u32 1.1754944e-38, %v3393_v63  ;;  %vm3392_vm3 = vcmp.eq.f32.partialorder %v3391_v1, 8.507059e+37  ;;  %v4098_v63 = vld [vmem:[%s4568_s27 + $0x98] sm:$0xff]  ;;  %v4096_v1 = vld [vmem:[%s4568_s27 + $0x88] sm:$0xff] }
0x11e6   : > { %4246 = vpow2.f32 %v3408_v13 }
0x11e9   : > { %v4245_v20 = vpop.eup %4244 }
0x11ea   : > { %v3383_v61 = vmul.f32 %v4245_v20, %v3381_v28  ;;  %vm3388_vm5 = vweird.f32 %v4245_v20  ;;  %v4100_v28 = vld [vmem:[%s4568_s27 + $0xa8] sm:$0xff] }
0x11eb   : > { %vm3389_vm2 = vmor %vm3387_vm6, %vm3388_vm5 }
0x11ec   : > { %v3384_v62 = vsub.f32 1.0, %v3383_v61  ;;  %v4247_v23 = vpop.eup %4246  ;;  %v4099_v61 = vld [vmem:[%s4568_s27 + $0xa0] sm:$0xff] }
0x11ee   : > { %v3385_v0 = vmul.f32 %v4245_v20, %v3384_v62  ;;  %v4090_v62 = vld [vmem:[%s4563_s20 + $0x18] sm:$0xff] }
0x11f0   : > { %v3386_v2 = vadd.f32 %v4245_v20, %v3385_v0  ;;  %v4097_v0 = vld [vmem:[%s4568_s27 + $0x90] sm:$0xff] }
0x11f2   : > { %v3390_v4 = vsel %vm3389_vm2, %v4245_v20, %v3386_v2  ;;  %v3518_v20 = vld [vmem:[%s4563_s20] sm:$0xff]  ;;  %v3519_v2 = vld [vmem:[%s4563_s20 + $0x8] sm:$0xff] }
0x11f3   : > { %v3395_v17 = vsel %vm3392_vm3, %v3394_v3, %v3390_v4  ;;  %v4095_v3 = vld [vmem:[%s4568_s27 + $0x80] sm:$0xff] }
0x11f4   : > { %v3397_v6 = vmul.f32 1.0614054, %v3395_v17 }
0x11f6   : > { %v3398_v7 = vadd.f32 -1.4531521, %v3397_v6 }
0x11f8   : > { %v3399_v9 = vmul.f32 %v3398_v7, %v3395_v17  ;;  %v4105_v7 = vld [vmem:[%s4563_s20 + $0x20] sm:$0xff] }
0x11fa   : > { %v3400_v10 = vadd.f32 1.4214138, %v3399_v9 }
0x11fc   : > { %v3401_v14 = vmul.f32 %v3400_v10, %v3395_v17 }
0x11fe   : > { %v3402_v16 = vadd.f32 -0.28449672, %v3401_v14 }
0x1200   : > { %v3403_v18 = vmul.f32 %v3402_v16, %v3395_v17 }
0x1202   : > { %v3404_v19 = vadd.f32 0.2548296, %v3403_v18 }
0x1204   : > { %v3405_v22 = vmul.f32 %v3404_v19, %v3395_v17 }
0x1206   : > { %v3410_v24 = vmul.f32 %v4247_v23, %v3405_v22 }
0x1208   : > { %v3411_v25 = vsub.f32 1.0, %v3410_v24 }
0x120a   : > { %v3413_v26 = vsub.f32 0.0, %v3411_v25 }
0x120c   : > { %v3414_v27 = vsel %vm3412_vm4, %v3413_v26, %v3411_v25 }
0x120d   : > { %v3415_v31 = vadd.f32 1.0, %v3414_v27 }
0x120f   : > { %v3416_v32 = vmul.f32 %v3415_v31, %v3377_v30 }
0x1211   : > { %3440 = vmatpush.msrb.mxu0 %v3416_v32 }
0x1212   : > { %4073 = vmatmul.msk.f32.vlgmr.msrb.gmra.mxu0 %vm1947_vm13, %v3417_v33 }
0x1213   : > { %3537 = vmatpush.msra.mxu0 %v4086_v37 }
0x1215   : > { %3538 = vmatpush.msra.mxu0 %v4085_v39 }
0x1217   : > { %3539 = vmatpush.msra.mxu0 %v4084_v41 }
0x1219   : > { %3540 = vmatpush.msra.mxu0 %v4083_v43 }
0x121a   : > { %4074 = vmatmul.msk.f32.gmra.mxu0 %vm1947_vm13, %v3418_v34 }
0x121b   : > { %3541 = vmatpush.msra.mxu0 %v4082_v45 }
0x121d   : > { %3542 = vmatpush.msra.mxu0 %v4081_v47 }
0x121f   : > { %3543 = vmatpush.msra.mxu0 %v4080_v49 }
0x1221   : > { %3544 = vmatpush.msra.mxu0 %v4079_v53 }
0x128f   : > { %v3442_v50 = vpop.f32.mrf.mxu0 }
0x1290   : > { %4075 = vmatmul.msk.f32.vlgmr.msra.gmra.mxu1 %vm2912_vm9, %v3442_v50 }
0x1297   : > { %v3445_v51 = vpop.f32.mrf.mxu0 }
0x1298   : > { %4076 = vmatmul.msk.f32.gmra.mxu1 %vm2912_vm9, %v3445_v51 }
0x130d   : > { %v3475_v54 = vpop.f32.mrf.mxu1 }
0x130e   : > { %4077 = vmatmul.msk.f32.vlgmr.msrb.gmra.mxu3 %vm1476_vm1, %v3475_v54  ;;  %4087 = vmatmul.msk.f32.vlgmr.msra.gmra.mxu0 %vm1476_vm1, %v3475_v54 }
0x1315   : > { %v3478_v55 = vpop.f32.mrf.mxu1 }
0x1316   : > { %4078 = vmatmul.msk.f32.gmra.mxu3 %vm1476_vm1, %v3478_v55  ;;  %4088 = vmatmul.msk.f32.gmra.mxu0 %vm1476_vm1, %v3478_v55 }
0x138b   : > { %v3546_v56 = vpop.f32.mrf.mxu0 }
0x1391   : > { %v3512_v57 = vpop.f32.mrf.mxu3 }
0x1393   : > { %v3549_v58 = vpop.f32.mrf.mxu0 }
0x1394   : > { %3575 = vmatpush.msra.mxu2 %v3549_v58 }
0x1396   : > { %3576 = vmatpush.msra.mxu2 %v3546_v56 }
0x1397   : > { %4091 = vmatmul.msk.f32.vlgmr.msra.gmra.mxu2 %vm1283_vm0, %v4089_v21 }
0x1398   : > { %3630 = vmatpush.msrb.mxu2 %v4102_v59 }
0x1399   : > { %v3515_v60 = vpop.f32.mrf.mxu3 }
0x139a   : > { %3604 = vmatpush.msrb.mxu1 %v3515_v60  ;;  %3631 = vmatpush.msrb.mxu2 %v4101_v29 }
0x139c   : > { %3605 = vmatpush.msrb.mxu1 %v3512_v57  ;;  %3632 = vmatpush.msrb.mxu2 %v4100_v28 }
0x139d   : > { %4093 = vmatmul.msk.f32.vlgmr.msrb.gmra.mxu1 %vm1283_vm0, %v3518_v20 }
0x139e   : > { %3633 = vmatpush.msrb.mxu2 %v4099_v61 }
0x139f   : > { %4092 = vmatmul.msk.f32.gmra.mxu2 %vm1283_vm0, %v4090_v62 }
0x13a0   : > { %3634 = vmatpush.msrb.mxu2 %v4098_v63 }
0x13a2   : > { %3635 = vmatpush.msrb.mxu2 %v4097_v0 }
0x13a4   : > { %3636 = vmatpush.msrb.mxu2 %v4096_v1 }
0x13a5   : > { %4094 = vmatmul.msk.f32.gmra.mxu1 %vm1283_vm0, %v3519_v2 }
0x13a6   : > { %3637 = vmatpush.msrb.mxu2 %v4095_v3 }
0x13a7   : > { %4103 = vmatmul.msk.f32.vlgmr.msrb.gmra.mxu2 %vm1476_vm1, %v3475_v54 }
0x13af   : > { %4104 = vmatmul.msk.f32.gmra.mxu2 %vm1476_vm1, %v3478_v55 }
0x141a   : > { %v3578_v4 = vpop.f32.mrf.mxu2  ;;  %v3607_v9 = vpop.f32.mrf.mxu1 }
0x141b   : > { %v3608_v10 = vadd.f32 %v3607_v9, %v3578_v4 }
0x1422   : > { %v3581_v17 = vpop.f32.mrf.mxu2  ;;  %v3610_v15 = vpop.f32.mrf.mxu1 }
0x1423   : > { %v3611_v16 = vadd.f32 %v3610_v15, %v3581_v17 }
0x142a   : > { %v3639_v5 = vpop.f32.mrf.mxu2 }
0x1432   : > { %v3642_v6 = vpop.f32.mrf.mxu2 }
0x1433   : > { %3668 = vmatpush.msra.mxu3 %v3642_v6 }
0x1435   : > { %3669 = vmatpush.msra.mxu3 %v3639_v5 }
0x1436   : > { %4107 = vmatmul.msk.f32.vlgmr.msra.gmra.mxu3 %vm1283_vm0, %v4105_v7 }
0x143e   : > { %4108 = vmatmul.msk.f32.gmra.mxu3 %vm1283_vm0, %v4106_v8 }
0x14b9   : > { %v3671_v12 = vpop.f32.mrf.mxu3 }
0x14ba   : > { %v3677_v13 = vadd.f32 %v3671_v12, %v3608_v10 }
0x14bc   : > { %v3683_v14 = vadd.f32 %v4213_v11, %v3677_v13 }
0x14be   : > { %3685 = vst.msk [vmem:[%s1270_s8] sm:$0xff] %vm1283_vm0, %v3683_v14 }
0x14c1   : > { %v3674_v18 = vpop.f32.mrf.mxu3 }
0x14c2   : > { %v3678_v19 = vadd.f32 %v3674_v18, %v3611_v16 }
0x14c4   : > { %v3684_v22 = vadd.f32 %v4213_v11, %v3678_v19 }
0x14c6   : > { %3686 = vst.msk [vmem:[%s1270_s8 + $0x8] sm:$0xff] %vm1283_vm0, %v3684_v22 }
0x14c7   : > { %4275 = shalt.err (!%p4272_p3)
}
0x14c8   : > { %s4358_s6 = smov 128   ;;  %s4359_s13 = smov 8  }
0x14c9   : > { %4116 = dma.vmem_to_hbm [thread:$0]  (%p4618_p5), %s3701_s11, 256, %s3703_s12, %s3688_s0, %s4358_s6, %s4358_s6, %s4359_s13  }
0x14ca PF: > { %p4122_p4 = scmp.ge.s32.totalorder %s4310_s22, 2  ;;  %s3717_s8 = sand.u32 1, %s4298_s15  }
0x14cb   : > { %s3718_s1 = scalar_lea.sflag [#allocation3], %s3717_s8 }
0x14cc   : > { %p4119_p7 = pnand %p4122_p4, %p4622_p6 }
0x14ce   : > { %p4120_p8 = pneg %p4119_p7 }
0x14d0   : > { %4293 = dma.done.wait (%p4120_p8), %s3718_s1, 256  }
0x14d1   : > { %4295 = vsyncadd (%p4120_p8), %s3718_s1, 4294967040  ;;  %p95_p9 = scmp.ge.s32.totalorder %s4605_s26, 4   ;;  %s5244_s15 = smov %s4302_s16 }
0x14d2   : > { %s5245_s16 = smov %s4306_s18  ;;  %s5246_s18 = smov %s4616_s2 }
0x14d3   : > { %s5247_s22 = smov %s4605_s26  ;;  %97 = sbr.rel (!%p95_p9) target bundleno = 93 (0x5d), region = 310 }
0x14d8   :  { %3724 = vsyncpa [#allocation3], 1 }
0x14d9   :  { %3726 = vsyncpa [#allocation3 + $0x1], 1 }

</bundles_post_ra>
